<compile_context>
chip_gen: v7x
topology: tpu7x:2x2x1
jax: 0.10.0
libtpu: 0.0.40
codegen_flags: <defaults>
</compile_context>

<pallas_src>
import numpy as np
import jax
import jax.numpy as jnp
from jax.experimental import pallas as pl
from jax.experimental.pallas import tpu as pltpu


# ---------------------------------------------------------------------------
# Host-side constant construction (trace time, numpy)
# ---------------------------------------------------------------------------
def _interp_matrix(in_size: int, out_size: int) -> np.ndarray:
    """Bilinear interpolation matrix (align_corners=True, as in the PyTorch module)."""
    A = np.zeros((out_size, in_size), dtype=np.float64)
    if out_size == 1:
        A[0, 0] = 1.0
        return A
    scale = (in_size - 1) / (out_size - 1)
    for i in range(out_size):
        src = i * scale
        i0 = min(int(np.floor(src)), in_size - 1)
        i1 = min(i0 + 1, in_size - 1)
        frac = src - i0
        A[i, i0] += 1.0 - frac
        A[i, i1] += frac
    return A


def _shift_rows(A: np.ndarray, off: int) -> np.ndarray:
    """B[p, :] = A[p + off, :] if 0 <= p + off < rows else 0 (zero-pad shift)."""
    B = np.zeros_like(A)
    R = A.shape[0]
    if off == 0:
        B[...] = A
    elif off > 0:
        B[:R - off, :] = A[off:, :]
    else:
        B[-off:, :] = A[:R + off, :]
    return B


def _tap_operators(H: int, W: int) -> np.ndarray:
    """U[t] (H*W, 2H*2W): x_flat @ U[t] = zero-padded window of the x2-upsampled image,
    shifted by tap t = ky*3 + kx (offsets oy=ky-1, ox=kx-1), flattened row-major."""
    H2, W2 = 2 * H, 2 * W
    Ah = _interp_matrix(H, H2)   # (H2, H)
    Aw = _interp_matrix(W, W2)   # (W2, W)
    ops = []
    for ky in range(3):
        for kx in range(3):
            M = np.kron(_shift_rows(Ah, ky - 1), _shift_rows(Aw, kx - 1))  # (H2*W2, H*W)
            ops.append(M.T)                                                # (H*W, H2*W2)
    return np.stack(ops, axis=0).astype(np.float32)                       # (9, HW_in, HW_out)


def _pick_nb(n: int) -> int:
    """Largest divisor of N in {8,4,2,1}: folds batches into the MXU M dim, bounds VMEM."""
    for cand in (8, 4, 2, 1):
        if n % cand == 0:
            return cand
    return 1


# ---------------------------------------------------------------------------
# Fused Pallas kernel: upsample + 3x3 conv + BN(inference) + ReLU
# ---------------------------------------------------------------------------
def _up_conv_kernel(x_ref, u_ref, w_ref, bn_ref, o_ref, win_ref):
    # x_ref  : (Nb*C_in, HW_in)            bf16   Nb batch elements, flattened spatial
    # u_ref  : (9, HW_in, TCOL)            bf16   resident tap operators (column tile j)
    # w_ref  : (Nb*C_out, 9*Nb*C_in)       f32    block-diagonal per-batch conv weights
    # bn_ref : (2, Nb*C_out, 1)            f32    folded BN scale / shift (incl. conv bias)
    # o_ref  : (Nb*C_out, TCOL)            f32    lane-dense output block
    # win_ref: (9, Nb*C_in, TCOL)          f32    VMEM scratch staging the 9 tap windows
    n_tap, rows, tcol = win_ref.shape

    x2d = x_ref[...]                                     # (Nb*C_in, HW_in) bf16
    for t in range(n_tap):                               # static unroll over the 9 conv taps
        win_ref[t] = jnp.dot(x2d, u_ref[t], preferred_element_type=jnp.float32)

    big = win_ref[...].reshape(n_tap * rows, tcol)       # (9*Nb*C_in, TCOL), free leading merge
    acc = jnp.dot(w_ref[...], big, preferred_element_type=jnp.float32)   # (Nb*C_out, TCOL)
    o_ref[...] = jnp.maximum(acc * bn_ref[0] + bn_ref[1], 0.0)


@jax.jit
def up_conv_forward(x, params, eps=1e-5):
    N, C_in, H, W = x.shape
    H2, W2 = 2 * H, 2 * W
    HW_in, HW_out = H * W, H2 * W2

    w_conv = params["w_conv"]                            # (C_out, C_in, 3, 3)
    C_out = w_conv.shape[0]

    Nb = _pick_nb(N)
    n_blk = N // Nb
    J = 2 if HW_out % 256 == 0 else 1                    # lane-dense column tiles (v7x: 2 TCs)
    TCOL = HW_out // J

    # Constant tap operators (upsample + shift + zero-pad folded); bf16 halves HBM/VMEM.
    u_taps = jnp.asarray(_tap_operators(H, W), dtype=jnp.bfloat16)        # (9, HW_in, HW_out)

    # Block-diagonal conv weights: one (Nb*C_out, 9*Nb*C_in) matmul covers all taps & batches.
    w_tap = jnp.transpose(w_conv, (2, 3, 0, 1)).reshape(9, C_out, C_in)   # (t, o, c)
    w_sel = jnp.einsum("toc,nm->notmc", w_tap, jnp.eye(Nb, dtype=jnp.float32))
    w_sel = w_sel.reshape(Nb * C_out, 9 * Nb * C_in).astype(jnp.float32)

    # Fold conv bias + BN (inference, running stats) into per-channel scale/shift, tiled
    # over the Nb batch elements sharing a grid step; single (2, Nb*C_out, 1) table.
    inv_std = 1.0 / jnp.sqrt(params["run_var"] + eps)
    scale = params["gamma"] * inv_std
    shift = params["beta"] + (params["b_conv"] - params["run_mean"]) * scale
    bn_tbl = jnp.stack([jnp.tile(scale, Nb), jnp.tile(shift, Nb)], axis=0)
    bn_tbl = bn_tbl.reshape(2, Nb * C_out, 1).astype(jnp.float32)

    x2d = x.reshape(N * C_in, HW_in).astype(jnp.bfloat16)                 # rows ordered (n, c)

    out2d = pl.pallas_call(
        _up_conv_kernel,
        out_shape=jax.ShapeDtypeStruct((N * C_out, HW_out), jnp.float32),
        grid_spec=pltpu.PrefetchScalarGridSpec(
            num_scalar_prefetch=0,
            # column tiles outermost, batch blocks innermost -> U block index constant along
            # the inner axis, so each U column tile is DMA'd exactly once.
            grid=(J, n_blk),
            in_specs=[
                pl.BlockSpec((Nb * C_in, HW_in), lambda j, n: (n, 0)),
                pl.BlockSpec((9, HW_in, TCOL), lambda j, n: (0, 0, j)),
                pl.BlockSpec((Nb * C_out, 9 * Nb * C_in), lambda j, n: (0, 0)),
                pl.BlockSpec((2, Nb * C_out, 1), lambda j, n: (0, 0, 0)),
            ],
            out_specs=pl.BlockSpec((Nb * C_out, TCOL), lambda j, n: (n, j)),
            scratch_shapes=[pltpu.VMEM((9, Nb * C_in, TCOL), jnp.float32)],
        ),
        compiler_params=pltpu.CompilerParams(
            dimension_semantics=("parallel", "parallel"),
            vmem_limit_bytes=32 * 1024 * 1024,
        ),
    )(x2d, u_taps, w_sel, bn_tbl)

    # Free reshape to NCHW: rows are already (n, c_out) and lanes are row-major H2*W2.
    return out2d.reshape(N, C_out, H2, W2)


# ---------------------------------------------------------------------------
# Parameters and pure-JAX reference
# ---------------------------------------------------------------------------
def init_params(key, ch_in, ch_out):
    k1, k2, k3, k4, k5 = jax.random.split(key, 5)
    return {
        "w_conv": 0.1 * jax.random.normal(k1, (ch_out, ch_in, 3, 3), jnp.float32),
        "b_conv": 0.05 * jax.random.normal(k2, (ch_out,), jnp.float32),
        "gamma": 1.0 + 0.1 * jax.random.normal(k3, (ch_out,), jnp.float32),
        "beta": 0.05 * jax.random.normal(k4, (ch_out,), jnp.float32),
        "run_mean": 0.05 * jax.random.normal(k5, (ch_out,), jnp.float32),
        "run_var": jnp.ones((ch_out,), jnp.float32) * 0.9,
    }


def _reference(x, params, eps=1e-5):
    """Pure-JAX f32 reference: bilinear x2 (align_corners=True) -> conv3x3(pad=1,+bias)
    -> BN(eval) -> ReLU."""
    N, C, H, W = x.shape
    ah = jnp.asarray(_interp_matrix(H, 2 * H), dtype=jnp.float32)
    aw = jnp.asarray(_interp_matrix(W, 2 * W), dtype=jnp.float32)
    xu = jnp.einsum("ph,nchw,qw->ncpq", ah, x, aw)
    y = jax.lax.conv_general_dilated(
        xu, params["w_conv"], window_strides=(1, 1), padding=((1, 1), (1, 1)),
        dimension_numbers=("NCHW", "OIHW", "NCHW"),
    ) + params["b_conv"][None, :, None, None]
    inv_std = 1.0 / jnp.sqrt(params["run_var"] + eps)
    y = (y - params["run_mean"][None, :, None, None]) \
        * (params["gamma"] * inv_std)[None, :, None, None] \
        + params["beta"][None, :, None, None]
    return jnp.maximum(y, 0.0)


if __name__ == "__main__":
    key = jax.random.PRNGKey(0)
    kx, kp = jax.random.split(key)

    N, C_in, C_out, H, W = 2, 4, 8, 16, 16
    x = jax.random.normal(kx, (N, C_in, H, W), jnp.float32)
    params = init_params(kp, C_in, C_out)

    out = jax.block_until_ready(up_conv_forward(x, params))

    ref = _reference(x, params)
    assert out.shape == (N, C_out, 2 * H, 2 * W), out.shape
    # bf16 operands (x, U) in the kernel vs. pure-f32 reference -> loosened tolerance.
    np.testing.assert_allclose(np.asarray(out), np.asarray(ref), rtol=3e-2, atol=3e-2)

    print("KERNEL_OK")
</pallas_src>

<mosaic_0001>
module attributes {stable_mosaic.version = 11 : i64} {
  func.func @_up_conv_kernel(%arg0: i32, %arg1: i32, %arg2: memref<8x256xbf16, #tpu.memory_space<vmem>>, %arg3: memref<9x256x512xbf16, #tpu.memory_space<vmem>>, %arg4: memref<16x72xf32, #tpu.memory_space<vmem>>, %arg5: memref<2x16x1xf32, #tpu.memory_space<vmem>>, %arg6: memref<16x512xf32, #tpu.memory_space<vmem>>, %arg7: memref<9x8x512xf32, #tpu.memory_space<vmem>>) attributes {dimension_semantics = [#tpu.dimension_semantics<parallel>, #tpu.dimension_semantics<parallel>], iteration_bounds = array<i64: 2, 1>, scalar_prefetch = 0 : i64, scratch_operands = 1 : i64, tpu.core_type = #tpu.core_type<tc>, window_params = [{transform_indices = @transform_0, window_bounds = array<i64: 8, 256>}, {transform_indices = @transform_1, window_bounds = array<i64: 9, 256, 512>}, {pipeline_mode = #tpu.pipeline_mode<synchronous>, transform_indices = @transform_2, window_bounds = array<i64: 16, 72>}, {pipeline_mode = #tpu.pipeline_mode<synchronous>, transform_indices = @transform_3, window_bounds = array<i64: 2, 16, 1>}, {transform_indices = @transform_4, window_bounds = array<i64: 16, 512>}]} {
    %c0 = arith.constant 0 : index
    %c0_0 = arith.constant 0 : index
    %0 = vector.load %arg2[%c0, %c0_0] : memref<8x256xbf16, #tpu.memory_space<vmem>>, vector<8x256xbf16>
    %c0_1 = arith.constant 0 : index
    %c0_2 = arith.constant 0 : index
    %c0_3 = arith.constant 0 : index
    %1 = vector.load %arg3[%c0_1, %c0_2, %c0_3] : memref<9x256x512xbf16, #tpu.memory_space<vmem>>, vector<1x256x512xbf16>
    %2 = vector.shape_cast %1 : vector<1x256x512xbf16> to vector<256x512xbf16>
    %cst = arith.constant dense<0.000000e+00> : vector<8x512xf32>
    %3 = tpu.matmul %0, %2, %cst {dimension_numbers = #tpu.dot_dimension_numbers<[1], [0], [0], [1], [0, 0, 1, 1], [], []>} : vector<8x256xbf16>, vector<256x512xbf16>, vector<8x512xf32> -> vector<8x512xf32>
    %c0_4 = arith.constant 0 : index
    %c0_5 = arith.constant 0 : index
    %c0_6 = arith.constant 0 : index
    %4 = vector.load %arg7[%c0_4, %c0_5, %c0_6] : memref<9x8x512xf32, #tpu.memory_space<vmem>>, vector<1x8x512xf32>
    %5 = vector.shape_cast %4 : vector<1x8x512xf32> to vector<8x512xf32>
    %6 = vector.shape_cast %3 : vector<8x512xf32> to vector<1x8x512xf32>
    tpu.vector_store %arg7[%c0_4, %c0_5, %c0_6], %6 {strides = array<i32>} : memref<9x8x512xf32, #tpu.memory_space<vmem>>, vector<1x8x512xf32>,
    %c1 = arith.constant 1 : index
    %c0_7 = arith.constant 0 : index
    %c0_8 = arith.constant 0 : index
    %7 = vector.load %arg3[%c1, %c0_7, %c0_8] : memref<9x256x512xbf16, #tpu.memory_space<vmem>>, vector<1x256x512xbf16>
    %8 = vector.shape_cast %7 : vector<1x256x512xbf16> to vector<256x512xbf16>
    %cst_9 = arith.constant dense<0.000000e+00> : vector<8x512xf32>
    %9 = tpu.matmul %0, %8, %cst_9 {dimension_numbers = #tpu.dot_dimension_numbers<[1], [0], [0], [1], [0, 0, 1, 1], [], []>} : vector<8x256xbf16>, vector<256x512xbf16>, vector<8x512xf32> -> vector<8x512xf32>
    %c1_10 = arith.constant 1 : index
    %c0_11 = arith.constant 0 : index
    %c0_12 = arith.constant 0 : index
    %10 = vector.load %arg7[%c1_10, %c0_11, %c0_12] : memref<9x8x512xf32, #tpu.memory_space<vmem>>, vector<1x8x512xf32>
    %11 = vector.shape_cast %10 : vector<1x8x512xf32> to vector<8x512xf32>
    %12 = vector.shape_cast %9 : vector<8x512xf32> to vector<1x8x512xf32>
    tpu.vector_store %arg7[%c1_10, %c0_11, %c0_12], %12 {strides = array<i32>} : memref<9x8x512xf32, #tpu.memory_space<vmem>>, vector<1x8x512xf32>,
    %c2 = arith.constant 2 : index
    %c0_13 = arith.constant 0 : index
    %c0_14 = arith.constant 0 : index
    %13 = vector.load %arg3[%c2, %c0_13, %c0_14] : memref<9x256x512xbf16, #tpu.memory_space<vmem>>, vector<1x256x512xbf16>
    %14 = vector.shape_cast %13 : vector<1x256x512xbf16> to vector<256x512xbf16>
    %cst_15 = arith.constant dense<0.000000e+00> : vector<8x512xf32>
    %15 = tpu.matmul %0, %14, %cst_15 {dimension_numbers = #tpu.dot_dimension_numbers<[1], [0], [0], [1], [0, 0, 1, 1], [], []>} : vector<8x256xbf16>, vector<256x512xbf16>, vector<8x512xf32> -> vector<8x512xf32>
    %c2_16 = arith.constant 2 : index
    %c0_17 = arith.constant 0 : index
    %c0_18 = arith.constant 0 : index
    %16 = vector.load %arg7[%c2_16, %c0_17, %c0_18] : memref<9x8x512xf32, #tpu.memory_space<vmem>>, vector<1x8x512xf32>
    %17 = vector.shape_cast %16 : vector<1x8x512xf32> to vector<8x512xf32>
    %18 = vector.shape_cast %15 : vector<8x512xf32> to vector<1x8x512xf32>
    tpu.vector_store %arg7[%c2_16, %c0_17, %c0_18], %18 {strides = array<i32>} : memref<9x8x512xf32, #tpu.memory_space<vmem>>, vector<1x8x512xf32>,
    %c3 = arith.constant 3 : index
    %c0_19 = arith.constant 0 : index
    %c0_20 = arith.constant 0 : index
    %19 = vector.load %arg3[%c3, %c0_19, %c0_20] : memref<9x256x512xbf16, #tpu.memory_space<vmem>>, vector<1x256x512xbf16>
    %20 = vector.shape_cast %19 : vector<1x256x512xbf16> to vector<256x512xbf16>
    %cst_21 = arith.constant dense<0.000000e+00> : vector<8x512xf32>
    %21 = tpu.matmul %0, %20, %cst_21 {dimension_numbers = #tpu.dot_dimension_numbers<[1], [0], [0], [1], [0, 0, 1, 1], [], []>} : vector<8x256xbf16>, vector<256x512xbf16>, vector<8x512xf32> -> vector<8x512xf32>
    %c3_22 = arith.constant 3 : index
    %c0_23 = arith.constant 0 : index
    %c0_24 = arith.constant 0 : index
    %22 = vector.load %arg7[%c3_22, %c0_23, %c0_24] : memref<9x8x512xf32, #tpu.memory_space<vmem>>, vector<1x8x512xf32>
    %23 = vector.shape_cast %22 : vector<1x8x512xf32> to vector<8x512xf32>
    %24 = vector.shape_cast %21 : vector<8x512xf32> to vector<1x8x512xf32>
    tpu.vector_store %arg7[%c3_22, %c0_23, %c0_24], %24 {strides = array<i32>} : memref<9x8x512xf32, #tpu.memory_space<vmem>>, vector<1x8x512xf32>,
    %c4 = arith.constant 4 : index
    %c0_25 = arith.constant 0 : index
    %c0_26 = arith.constant 0 : index
    %25 = vector.load %arg3[%c4, %c0_25, %c0_26] : memref<9x256x512xbf16, #tpu.memory_space<vmem>>, vector<1x256x512xbf16>
    %26 = vector.shape_cast %25 : vector<1x256x512xbf16> to vector<256x512xbf16>
    %cst_27 = arith.constant dense<0.000000e+00> : vector<8x512xf32>
    %27 = tpu.matmul %0, %26, %cst_27 {dimension_numbers = #tpu.dot_dimension_numbers<[1], [0], [0], [1], [0, 0, 1, 1], [], []>} : vector<8x256xbf16>, vector<256x512xbf16>, vector<8x512xf32> -> vector<8x512xf32>
    %c4_28 = arith.constant 4 : index
    %c0_29 = arith.constant 0 : index
    %c0_30 = arith.constant 0 : index
    %28 = vector.load %arg7[%c4_28, %c0_29, %c0_30] : memref<9x8x512xf32, #tpu.memory_space<vmem>>, vector<1x8x512xf32>
    %29 = vector.shape_cast %28 : vector<1x8x512xf32> to vector<8x512xf32>
    %30 = vector.shape_cast %27 : vector<8x512xf32> to vector<1x8x512xf32>
    tpu.vector_store %arg7[%c4_28, %c0_29, %c0_30], %30 {strides = array<i32>} : memref<9x8x512xf32, #tpu.memory_space<vmem>>, vector<1x8x512xf32>,
    %c5 = arith.constant 5 : index
    %c0_31 = arith.constant 0 : index
    %c0_32 = arith.constant 0 : index
    %31 = vector.load %arg3[%c5, %c0_31, %c0_32] : memref<9x256x512xbf16, #tpu.memory_space<vmem>>, vector<1x256x512xbf16>
    %32 = vector.shape_cast %31 : vector<1x256x512xbf16> to vector<256x512xbf16>
    %cst_33 = arith.constant dense<0.000000e+00> : vector<8x512xf32>
    %33 = tpu.matmul %0, %32, %cst_33 {dimension_numbers = #tpu.dot_dimension_numbers<[1], [0], [0], [1], [0, 0, 1, 1], [], []>} : vector<8x256xbf16>, vector<256x512xbf16>, vector<8x512xf32> -> vector<8x512xf32>
    %c5_34 = arith.constant 5 : index
    %c0_35 = arith.constant 0 : index
    %c0_36 = arith.constant 0 : index
    %34 = vector.load %arg7[%c5_34, %c0_35, %c0_36] : memref<9x8x512xf32, #tpu.memory_space<vmem>>, vector<1x8x512xf32>
    %35 = vector.shape_cast %34 : vector<1x8x512xf32> to vector<8x512xf32>
    %36 = vector.shape_cast %33 : vector<8x512xf32> to vector<1x8x512xf32>
    tpu.vector_store %arg7[%c5_34, %c0_35, %c0_36], %36 {strides = array<i32>} : memref<9x8x512xf32, #tpu.memory_space<vmem>>, vector<1x8x512xf32>,
    %c6 = arith.constant 6 : index
    %c0_37 = arith.constant 0 : index
    %c0_38 = arith.constant 0 : index
    %37 = vector.load %arg3[%c6, %c0_37, %c0_38] : memref<9x256x512xbf16, #tpu.memory_space<vmem>>, vector<1x256x512xbf16>
    %38 = vector.shape_cast %37 : vector<1x256x512xbf16> to vector<256x512xbf16>
    %cst_39 = arith.constant dense<0.000000e+00> : vector<8x512xf32>
    %39 = tpu.matmul %0, %38, %cst_39 {dimension_numbers = #tpu.dot_dimension_numbers<[1], [0], [0], [1], [0, 0, 1, 1], [], []>} : vector<8x256xbf16>, vector<256x512xbf16>, vector<8x512xf32> -> vector<8x512xf32>
    %c6_40 = arith.constant 6 : index
    %c0_41 = arith.constant 0 : index
    %c0_42 = arith.constant 0 : index
    %40 = vector.load %arg7[%c6_40, %c0_41, %c0_42] : memref<9x8x512xf32, #tpu.memory_space<vmem>>, vector<1x8x512xf32>
    %41 = vector.shape_cast %40 : vector<1x8x512xf32> to vector<8x512xf32>
    %42 = vector.shape_cast %39 : vector<8x512xf32> to vector<1x8x512xf32>
    tpu.vector_store %arg7[%c6_40, %c0_41, %c0_42], %42 {strides = array<i32>} : memref<9x8x512xf32, #tpu.memory_space<vmem>>, vector<1x8x512xf32>,
    %c7 = arith.constant 7 : index
    %c0_43 = arith.constant 0 : index
    %c0_44 = arith.constant 0 : index
    %43 = vector.load %arg3[%c7, %c0_43, %c0_44] : memref<9x256x512xbf16, #tpu.memory_space<vmem>>, vector<1x256x512xbf16>
    %44 = vector.shape_cast %43 : vector<1x256x512xbf16> to vector<256x512xbf16>
    %cst_45 = arith.constant dense<0.000000e+00> : vector<8x512xf32>
    %45 = tpu.matmul %0, %44, %cst_45 {dimension_numbers = #tpu.dot_dimension_numbers<[1], [0], [0], [1], [0, 0, 1, 1], [], []>} : vector<8x256xbf16>, vector<256x512xbf16>, vector<8x512xf32> -> vector<8x512xf32>
    %c7_46 = arith.constant 7 : index
    %c0_47 = arith.constant 0 : index
    %c0_48 = arith.constant 0 : index
    %46 = vector.load %arg7[%c7_46, %c0_47, %c0_48] : memref<9x8x512xf32, #tpu.memory_space<vmem>>, vector<1x8x512xf32>
    %47 = vector.shape_cast %46 : vector<1x8x512xf32> to vector<8x512xf32>
    %48 = vector.shape_cast %45 : vector<8x512xf32> to vector<1x8x512xf32>
    tpu.vector_store %arg7[%c7_46, %c0_47, %c0_48], %48 {strides = array<i32>} : memref<9x8x512xf32, #tpu.memory_space<vmem>>, vector<1x8x512xf32>,
    %c8 = arith.constant 8 : index
    %c0_49 = arith.constant 0 : index
    %c0_50 = arith.constant 0 : index
    %49 = vector.load %arg3[%c8, %c0_49, %c0_50] : memref<9x256x512xbf16, #tpu.memory_space<vmem>>, vector<1x256x512xbf16>
    %50 = vector.shape_cast %49 : vector<1x256x512xbf16> to vector<256x512xbf16>
    %cst_51 = arith.constant dense<0.000000e+00> : vector<8x512xf32>
    %51 = tpu.matmul %0, %50, %cst_51 {dimension_numbers = #tpu.dot_dimension_numbers<[1], [0], [0], [1], [0, 0, 1, 1], [], []>} : vector<8x256xbf16>, vector<256x512xbf16>, vector<8x512xf32> -> vector<8x512xf32>
    %c8_52 = arith.constant 8 : index
    %c0_53 = arith.constant 0 : index
    %c0_54 = arith.constant 0 : index
    %52 = vector.load %arg7[%c8_52, %c0_53, %c0_54] : memref<9x8x512xf32, #tpu.memory_space<vmem>>, vector<1x8x512xf32>
    %53 = vector.shape_cast %52 : vector<1x8x512xf32> to vector<8x512xf32>
    %54 = vector.shape_cast %51 : vector<8x512xf32> to vector<1x8x512xf32>
    tpu.vector_store %arg7[%c8_52, %c0_53, %c0_54], %54 {strides = array<i32>} : memref<9x8x512xf32, #tpu.memory_space<vmem>>, vector<1x8x512xf32>,
    %c0_55 = arith.constant 0 : index
    %c0_56 = arith.constant 0 : index
    %c0_57 = arith.constant 0 : index
    %55 = vector.load %arg7[%c0_55, %c0_56, %c0_57] : memref<9x8x512xf32, #tpu.memory_space<vmem>>, vector<9x8x512xf32>
    %56 = vector.shape_cast %55 : vector<9x8x512xf32> to vector<72x512xf32>
    %c0_58 = arith.constant 0 : index
    %c0_59 = arith.constant 0 : index
    %57 = vector.load %arg4[%c0_58, %c0_59] : memref<16x72xf32, #tpu.memory_space<vmem>>, vector<16x72xf32>
    %cst_60 = arith.constant dense<0.000000e+00> : vector<16x512xf32>
    %58 = tpu.matmul %57, %56, %cst_60 {dimension_numbers = #tpu.dot_dimension_numbers<[1], [0], [0], [1], [0, 0, 1, 1], [], []>} : vector<16x72xf32>, vector<72x512xf32>, vector<16x512xf32> -> vector<16x512xf32>
    %c0_61 = arith.constant 0 : index
    %c0_62 = arith.constant 0 : index
    %c0_63 = arith.constant 0 : index
    %59 = vector.load %arg5[%c0_61, %c0_62, %c0_63] : memref<2x16x1xf32, #tpu.memory_space<vmem>>, vector<1x16x1xf32>
    %60 = vector.shape_cast %59 : vector<1x16x1xf32> to vector<16x1xf32>
    %61 = vector.broadcast %60 : vector<16x1xf32> to vector<16x512xf32>
    %62 = arith.mulf %58, %61 : vector<16x512xf32>
    %c1_64 = arith.constant 1 : index
    %c0_65 = arith.constant 0 : index
    %c0_66 = arith.constant 0 : index
    %63 = vector.load %arg5[%c1_64, %c0_65, %c0_66] : memref<2x16x1xf32, #tpu.memory_space<vmem>>, vector<1x16x1xf32>
    %64 = vector.shape_cast %63 : vector<1x16x1xf32> to vector<16x1xf32>
    %65 = vector.broadcast %64 : vector<16x1xf32> to vector<16x512xf32>
    %66 = arith.addf %62, %65 : vector<16x512xf32>
    %cst_67 = arith.constant 0.000000e+00 : f32
    %67 = vector.broadcast %cst_67 : f32 to vector<16x512xf32>
    %68 = arith.maximumf %66, %67 : vector<16x512xf32>
    %c0_68 = arith.constant 0 : index
    %c0_69 = arith.constant 0 : index
    %69 = vector.load %arg6[%c0_68, %c0_69] : memref<16x512xf32, #tpu.memory_space<vmem>>, vector<16x512xf32>
    tpu.vector_store %arg6[%c0_68, %c0_69], %68 {strides = array<i32>} : memref<16x512xf32, #tpu.memory_space<vmem>>, vector<16x512xf32>,
    return
  }
  func.func @transform_0(%arg0: i32, %arg1: i32) -> (i32, i32) {
    %c0_i32 = arith.constant 0 : i32
    %c0_i32_0 = arith.constant 0 : i32
    return %arg1, %c0_i32 : i32, i32
  }
  func.func @transform_1(%arg0: i32, %arg1: i32) -> (i32, i32, i32) {
    %c0_i32 = arith.constant 0 : i32
    %c0_i32_0 = arith.constant 0 : i32
    %c0_i32_1 = arith.constant 0 : i32
    return %c0_i32, %c0_i32_0, %arg0 : i32, i32, i32
  }
  func.func @transform_2(%arg0: i32, %arg1: i32) -> (i32, i32) {
    %c0_i32 = arith.constant 0 : i32
    %c0_i32_0 = arith.constant 0 : i32
    %c0_i32_1 = arith.constant 0 : i32
    return %c0_i32, %c0_i32_0 : i32, i32
  }
  func.func @transform_3(%arg0: i32, %arg1: i32) -> (i32, i32, i32) {
    %c0_i32 = arith.constant 0 : i32
    %c0_i32_0 = arith.constant 0 : i32
    %c0_i32_1 = arith.constant 0 : i32
    %c0_i32_2 = arith.constant 0 : i32
    return %c0_i32, %c0_i32_0, %c0_i32_1 : i32, i32, i32
  }
  func.func @transform_4(%arg0: i32, %arg1: i32) -> (i32, i32) {
    %c0_i32 = arith.constant 0 : i32
    return %arg1, %arg0 : i32, i32
  }
}

</mosaic_0001>

<bundles_post_ra>
// kernel: tile.17
= control target key start
LH: loop header
LB: loop body
LE: loop exit
PB: predicated region body
PF: predicated region fallthrough
CT: control target
= control target key end

     0   :  { %s22_s0 = inlined_call_operand.vmem [shape: f32[8], index: 0, kind: input, shape index: {}]   ;;  %s23_s1 = inlined_call_operand.vmem [shape: f32[2,8], index: 1, kind: output, shape index: {}]  }
   0x1   :  { %v4_v0 = vld [vmem:[%s22_s0] ss:$0 sm:$0xff] }
   0x2   :  { %5 = vst [vmem:[%s23_s1] sm:$0x3] %v4_v0 }

// kernel: tile.19
= control target key start
LH: loop header
LB: loop body
LE: loop exit
PB: predicated region body
PF: predicated region fallthrough
CT: control target
= control target key end

     0   :  { %vm7_vm0 = vcmask 64512   ;;  %vm13_vm1 = vcmask 130112   ;;  %s39_s0 = inlined_call_operand.vmem [shape: f32[2,8], index: 0, kind: input, shape index: {}]   ;;  %s40_s1 = inlined_call_operand.vmem [shape: f32[1,16], index: 1, kind: output, shape index: {}]  }
   0x1   :  { %v4_v0 = vld [vmem:[%s39_s0] sm:$0x3]  ;;  %s22_s0 = smov 8  }
   0x2   :  { %5 = vst [vmem:[#allocation1] sm:$0x3] %v4_v0 }
   0x9   :  { %v10_v1 = vld [vmem:[#allocation1 + $0x1] sm:$0x1]   ;;  %v6_v2 = vld [vmem:[#allocation1] sm:$0x1]  }
   0xa   :  { %11 = vrot.lane.b32.xlu0 %v10_v1, %s22_s0  ;;  %8 = vst.msk [vmem:[#allocation0] sm:$0x1] %vm7_vm0, %v6_v2  }
  0x7c   :  { %v12_v3 = vpop.permute.xlu0 %11  }
  0x7d   :  { %14 = vst.msk [vmem:[#allocation0] sm:$0x1] %vm13_vm1, %v12_v3  }
  0x84   :  { %v18_v4 = vld [vmem:[#allocation0] sm:$0x1] }
  0x85   :  { %20 = vst [vmem:[%s40_s1] sm:$0x1] %v18_v4 }

// kernel: up_conv_forward.1
= control target key start
LH: loop header
LB: loop body
LE: loop exit
PB: predicated region body
PF: predicated region fallthrough
CT: control target
= control target key end

     0   :  { %s8159_s15 = smov 0   ;;  %s8161_s16 = smov 0   ;;  %s10138_s0 = inlined_call_operand.vmem [shape: bf16[8,256], index: 0, kind: input, shape index: {}]   ;;  %s10139_s1 = inlined_call_operand.vmem [shape: bf16[9,256,1024], index: 1, kind: input, shape index: {}]   ;;  %s10140_s2 = inlined_call_operand.vmem [shape: f32[16,72], index: 2, kind: input, shape index: {}]   ;;  %s10141_s3 = inlined_call_operand.vmem [shape: f32[2,16,1], index: 3, kind: input, shape index: {}]   ;;  %s10142_s4 = inlined_call_operand.vmem [shape: f32[16,1024], index: 4, kind: output, shape index: {}]  }
   0x1   :  { %s8163_s17 = smov 0   ;;  %s8165_s18 = smov 0  }
   0x2   :  { %s8167_s19 = smov 0  }
   0x3 LB: > { %s26_s20 = sadd.s32 1, %s8126_s18  ;;  %s6036_s21 = sadd.s32 4294967295, %s8130_s19   ;;  %s8130_s19 = sphi %s8167_s19, %s14_s19   ;;  %s8126_s18 = sphi %s8165_s18, %s10147_s18   ;;  %s8122_s17 = sphi %s8163_s17, %s10146_s17   ;;  %s8118_s16 = sphi %s8161_s16, %s10145_s16   ;;  %s8114_s15 = sphi %s8159_s15, %s10144_s15  }
   0x4   : > { %p28_p0 = scmp.ge.s32.totalorder %s26_s20, 2  ;;  %p66_p1 = scmp.ne.s32.totalorder %s8118_s16, %s8114_s15 }
   0x5   : > { %p67_p2 = scmp.eq.s32.totalorder %s8130_s19, 0  ;;  %p140_p4 = scmp.eq.s32.totalorder %s6036_s21, 1 }
   0x6   : > { %s10149_s20 = smov (%p28_p0, %s26_s20), 0  ;;  %s59_s23 = sadd.s32 1, %s8118_s16 }
   0x7   : > { %p68_p3 = por %p67_p2, %p66_p1  ;;  %s56_s22 = ssub.s32 %s8126_s18, %s10149_s20 }
   0x8   : > { %p57_p5 = scmp.eq.s32.totalorder %s56_s22, 0  ;;  %p8194_p6 = por %p140_p4, %p66_p1 }
   0x9   : > { %p6040_p7 = scmp.ge.s32.totalorder %s8130_s19, 2 }
   0xa   : > { %s8199_s25 = scalar_select %p57_p5, %s8118_s16, %s59_s23  }
   0xb   : > { %176 = sbr.rel (%p6040_p7) target bundleno = 310 (0x136), region = 28 }
  0x12   : > { %179 = sbr.rel (!%p68_p3) target bundleno = 310 (0x136), region = 32  ;;  %s181_s26 = sand.u32 (%p68_p3), 1, %s8118_s16  }
  0x13   : > { %s7146_s27 = sshll.u32 (%p68_p3), %s8126_s18, 4  ;;  %s7180_s28 = smul.u32 (%p68_p3), 4608, %s181_s26 }
  0x14   : > { %s8207_s5 = scalar_lea.vmem (%p68_p3), %s10139_s1, %s7146_s27 }
  0x15   : > { %v199_v0 = vld [vmem:[%s8207_s5] sm:$0xff] (%p68_p3)  ;;  %v201_v1 = vld [vmem:[%s8207_s5 + $0x8] sm:$0xff] (%p68_p3)  ;;  %s8215_s6 = scalar_lea.vmem (%p68_p3), [#allocation3], %s7180_s28 }
  0x16   : > { %v203_v2 = vld [vmem:[%s8207_s5 + $0x20] sm:$0xff] (%p68_p3)  ;;  %v205_v3 = vld [vmem:[%s8207_s5 + $0x28] sm:$0xff] (%p68_p3)  ;;  %200 = vst [vmem:[%s8215_s6] sm:$0xff] (%p68_p3), %v199_v0  ;;  %202 = vst [vmem:[%s8215_s6 + $0x8] sm:$0xff] (%p68_p3), %v201_v1 }
  0x17   : > { %v207_v4 = vld [vmem:[%s8207_s5 + $0x40] sm:$0xff] (%p68_p3)  ;;  %v209_v5 = vld [vmem:[%s8207_s5 + $0x48] sm:$0xff] (%p68_p3)  ;;  %204 = vst [vmem:[%s8215_s6 + $0x10] sm:$0xff] (%p68_p3), %v203_v2  ;;  %206 = vst [vmem:[%s8215_s6 + $0x18] sm:$0xff] (%p68_p3), %v205_v3 }
  0x18   : > { %208 = vst [vmem:[%s8215_s6 + $0x20] sm:$0xff] (%p68_p3), %v207_v4  ;;  %210 = vst [vmem:[%s8215_s6 + $0x28] sm:$0xff] (%p68_p3), %v209_v5  ;;  %v211_v6 = vld [vmem:[%s8207_s5 + $0x60] sm:$0xff] (%p68_p3)  ;;  %v213_v7 = vld [vmem:[%s8207_s5 + $0x68] sm:$0xff] (%p68_p3) }
  0x19   : > { %v215_v8 = vld [vmem:[%s8207_s5 + $0x80] sm:$0xff]  ;;  %212 = vst [vmem:[%s8215_s6 + $0x30] sm:$0xff] %v211_v6  ;;  %214 = vst [vmem:[%s8215_s6 + $0x38] sm:$0xff] %v213_v7  ;;  %v217_v9 = vld [vmem:[%s8207_s5 + $0x88] sm:$0xff] }
  0x1a   : > { %216 = vst [vmem:[%s8215_s6 + $0x40] sm:$0xff] %v215_v8  ;;  %v219_v10 = vld [vmem:[%s8207_s5 + $0xa0] sm:$0xff]  ;;  %v221_v11 = vld [vmem:[%s8207_s5 + $0xa8] sm:$0xff]  ;;  %218 = vst [vmem:[%s8215_s6 + $0x48] sm:$0xff] %v217_v9 }
  0x1b   : > { %220 = vst [vmem:[%s8215_s6 + $0x50] sm:$0xff] %v219_v10  ;;  %222 = vst [vmem:[%s8215_s6 + $0x58] sm:$0xff] %v221_v11  ;;  %v223_v12 = vld [vmem:[%s8207_s5 + $0xc0] sm:$0xff]  ;;  %v225_v13 = vld [vmem:[%s8207_s5 + $0xc8] sm:$0xff] }
  0x1c   : > { %v227_v14 = vld [vmem:[%s8207_s5 + $0xe0] sm:$0xff]  ;;  %224 = vst [vmem:[%s8215_s6 + $0x60] sm:$0xff] %v223_v12  ;;  %226 = vst [vmem:[%s8215_s6 + $0x68] sm:$0xff] %v225_v13  ;;  %v229_v15 = vld [vmem:[%s8207_s5 + $0xe8] sm:$0xff] }
  0x1d   : > { %228 = vst [vmem:[%s8215_s6 + $0x70] sm:$0xff] %v227_v14  ;;  %v231_v16 = vld [vmem:[%s8207_s5 + $0x100] sm:$0xff]  ;;  %v233_v17 = vld [vmem:[%s8207_s5 + $0x108] sm:$0xff]  ;;  %230 = vst [vmem:[%s8215_s6 + $0x78] sm:$0xff] %v229_v15 }
  0x1e   : > { %232 = vst [vmem:[%s8215_s6 + $0x80] sm:$0xff] %v231_v16  ;;  %234 = vst [vmem:[%s8215_s6 + $0x88] sm:$0xff] %v233_v17  ;;  %v235_v18 = vld [vmem:[%s8207_s5 + $0x120] sm:$0xff]  ;;  %v237_v19 = vld [vmem:[%s8207_s5 + $0x128] sm:$0xff] }
  0x1f   : > { %v239_v20 = vld [vmem:[%s8207_s5 + $0x140] sm:$0xff]  ;;  %236 = vst [vmem:[%s8215_s6 + $0x90] sm:$0xff] %v235_v18  ;;  %238 = vst [vmem:[%s8215_s6 + $0x98] sm:$0xff] %v237_v19  ;;  %v241_v21 = vld [vmem:[%s8207_s5 + $0x148] sm:$0xff] }
  0x20   : > { %240 = vst [vmem:[%s8215_s6 + $0xa0] sm:$0xff] %v239_v20  ;;  %v243_v22 = vld [vmem:[%s8207_s5 + $0x160] sm:$0xff]  ;;  %v245_v23 = vld [vmem:[%s8207_s5 + $0x168] sm:$0xff]  ;;  %242 = vst [vmem:[%s8215_s6 + $0xa8] sm:$0xff] %v241_v21 }
  0x21   : > { %244 = vst [vmem:[%s8215_s6 + $0xb0] sm:$0xff] %v243_v22  ;;  %246 = vst [vmem:[%s8215_s6 + $0xb8] sm:$0xff] %v245_v23  ;;  %v247_v24 = vld [vmem:[%s8207_s5 + $0x180] sm:$0xff]  ;;  %v249_v25 = vld [vmem:[%s8207_s5 + $0x188] sm:$0xff] }
  0x22   : > { %v251_v26 = vld [vmem:[%s8207_s5 + $0x1a0] sm:$0xff]  ;;  %248 = vst [vmem:[%s8215_s6 + $0xc0] sm:$0xff] %v247_v24  ;;  %250 = vst [vmem:[%s8215_s6 + $0xc8] sm:$0xff] %v249_v25  ;;  %v253_v27 = vld [vmem:[%s8207_s5 + $0x1a8] sm:$0xff] }
  0x23   : > { %252 = vst [vmem:[%s8215_s6 + $0xd0] sm:$0xff] %v251_v26  ;;  %v255_v28 = vld [vmem:[%s8207_s5 + $0x1c0] sm:$0xff]  ;;  %v257_v29 = vld [vmem:[%s8207_s5 + $0x1c8] sm:$0xff]  ;;  %254 = vst [vmem:[%s8215_s6 + $0xd8] sm:$0xff] %v253_v27 }
  0x24   : > { %256 = vst [vmem:[%s8215_s6 + $0xe0] sm:$0xff] %v255_v28  ;;  %258 = vst [vmem:[%s8215_s6 + $0xe8] sm:$0xff] %v257_v29  ;;  %v259_v30 = vld [vmem:[%s8207_s5 + $0x1e0] sm:$0xff]  ;;  %v261_v31 = vld [vmem:[%s8207_s5 + $0x1e8] sm:$0xff] }
  0x25   : > { %v263_v32 = vld [vmem:[%s8207_s5 + $0x200] sm:$0xff]  ;;  %260 = vst [vmem:[%s8215_s6 + $0xf0] sm:$0xff] %v259_v30  ;;  %262 = vst [vmem:[%s8215_s6 + $0xf8] sm:$0xff] %v261_v31  ;;  %v265_v33 = vld [vmem:[%s8207_s5 + $0x208] sm:$0xff] }
  0x26   : > { %264 = vst [vmem:[%s8215_s6 + $0x100] sm:$0xff] %v263_v32  ;;  %v267_v34 = vld [vmem:[%s8207_s5 + $0x220] sm:$0xff]  ;;  %v269_v35 = vld [vmem:[%s8207_s5 + $0x228] sm:$0xff]  ;;  %266 = vst [vmem:[%s8215_s6 + $0x108] sm:$0xff] %v265_v33 }
  0x27   : > { %268 = vst [vmem:[%s8215_s6 + $0x110] sm:$0xff] %v267_v34  ;;  %270 = vst [vmem:[%s8215_s6 + $0x118] sm:$0xff] %v269_v35  ;;  %v271_v36 = vld [vmem:[%s8207_s5 + $0x240] sm:$0xff]  ;;  %v273_v37 = vld [vmem:[%s8207_s5 + $0x248] sm:$0xff] }
  0x28   : > { %v275_v38 = vld [vmem:[%s8207_s5 + $0x260] sm:$0xff]  ;;  %272 = vst [vmem:[%s8215_s6 + $0x120] sm:$0xff] %v271_v36  ;;  %274 = vst [vmem:[%s8215_s6 + $0x128] sm:$0xff] %v273_v37  ;;  %v277_v39 = vld [vmem:[%s8207_s5 + $0x268] sm:$0xff] }
  0x29   : > { %276 = vst [vmem:[%s8215_s6 + $0x130] sm:$0xff] %v275_v38  ;;  %v279_v40 = vld [vmem:[%s8207_s5 + $0x280] sm:$0xff]  ;;  %v281_v41 = vld [vmem:[%s8207_s5 + $0x288] sm:$0xff]  ;;  %278 = vst [vmem:[%s8215_s6 + $0x138] sm:$0xff] %v277_v39 }
  0x2a   : > { %280 = vst [vmem:[%s8215_s6 + $0x140] sm:$0xff] %v279_v40  ;;  %282 = vst [vmem:[%s8215_s6 + $0x148] sm:$0xff] %v281_v41  ;;  %v283_v42 = vld [vmem:[%s8207_s5 + $0x2a0] sm:$0xff]  ;;  %v285_v43 = vld [vmem:[%s8207_s5 + $0x2a8] sm:$0xff] }
  0x2b   : > { %v287_v44 = vld [vmem:[%s8207_s5 + $0x2c0] sm:$0xff]  ;;  %284 = vst [vmem:[%s8215_s6 + $0x150] sm:$0xff] %v283_v42  ;;  %286 = vst [vmem:[%s8215_s6 + $0x158] sm:$0xff] %v285_v43  ;;  %v289_v45 = vld [vmem:[%s8207_s5 + $0x2c8] sm:$0xff] }
  0x2c   : > { %288 = vst [vmem:[%s8215_s6 + $0x160] sm:$0xff] %v287_v44  ;;  %v291_v46 = vld [vmem:[%s8207_s5 + $0x2e0] sm:$0xff]  ;;  %v293_v47 = vld [vmem:[%s8207_s5 + $0x2e8] sm:$0xff]  ;;  %290 = vst [vmem:[%s8215_s6 + $0x168] sm:$0xff] %v289_v45 }
  0x2d   : > { %292 = vst [vmem:[%s8215_s6 + $0x170] sm:$0xff] %v291_v46  ;;  %294 = vst [vmem:[%s8215_s6 + $0x178] sm:$0xff] %v293_v47  ;;  %v295_v48 = vld [vmem:[%s8207_s5 + $0x300] sm:$0xff]  ;;  %v297_v49 = vld [vmem:[%s8207_s5 + $0x308] sm:$0xff] }
  0x2e   : > { %v299_v50 = vld [vmem:[%s8207_s5 + $0x320] sm:$0xff]  ;;  %296 = vst [vmem:[%s8215_s6 + $0x180] sm:$0xff] %v295_v48  ;;  %298 = vst [vmem:[%s8215_s6 + $0x188] sm:$0xff] %v297_v49  ;;  %v301_v51 = vld [vmem:[%s8207_s5 + $0x328] sm:$0xff] }
  0x2f   : > { %300 = vst [vmem:[%s8215_s6 + $0x190] sm:$0xff] %v299_v50  ;;  %v303_v52 = vld [vmem:[%s8207_s5 + $0x340] sm:$0xff]  ;;  %v305_v53 = vld [vmem:[%s8207_s5 + $0x348] sm:$0xff]  ;;  %302 = vst [vmem:[%s8215_s6 + $0x198] sm:$0xff] %v301_v51 }
  0x30   : > { %304 = vst [vmem:[%s8215_s6 + $0x1a0] sm:$0xff] %v303_v52  ;;  %306 = vst [vmem:[%s8215_s6 + $0x1a8] sm:$0xff] %v305_v53  ;;  %v307_v54 = vld [vmem:[%s8207_s5 + $0x360] sm:$0xff]  ;;  %v309_v55 = vld [vmem:[%s8207_s5 + $0x368] sm:$0xff] }
  0x31   : > { %v311_v56 = vld [vmem:[%s8207_s5 + $0x380] sm:$0xff]  ;;  %308 = vst [vmem:[%s8215_s6 + $0x1b0] sm:$0xff] %v307_v54  ;;  %310 = vst [vmem:[%s8215_s6 + $0x1b8] sm:$0xff] %v309_v55  ;;  %v313_v57 = vld [vmem:[%s8207_s5 + $0x388] sm:$0xff] }
  0x32   : > { %312 = vst [vmem:[%s8215_s6 + $0x1c0] sm:$0xff] %v311_v56  ;;  %v315_v58 = vld [vmem:[%s8207_s5 + $0x3a0] sm:$0xff]  ;;  %v317_v59 = vld [vmem:[%s8207_s5 + $0x3a8] sm:$0xff]  ;;  %314 = vst [vmem:[%s8215_s6 + $0x1c8] sm:$0xff] %v313_v57 }
  0x33   : > { %316 = vst [vmem:[%s8215_s6 + $0x1d0] sm:$0xff] %v315_v58  ;;  %318 = vst [vmem:[%s8215_s6 + $0x1d8] sm:$0xff] %v317_v59  ;;  %v319_v60 = vld [vmem:[%s8207_s5 + $0x3c0] sm:$0xff]  ;;  %v321_v61 = vld [vmem:[%s8207_s5 + $0x3c8] sm:$0xff] }
  0x34   : > { %v323_v62 = vld [vmem:[%s8207_s5 + $0x3e0] sm:$0xff]  ;;  %320 = vst [vmem:[%s8215_s6 + $0x1e0] sm:$0xff] %v319_v60  ;;  %322 = vst [vmem:[%s8215_s6 + $0x1e8] sm:$0xff] %v321_v61  ;;  %v325_v63 = vld [vmem:[%s8207_s5 + $0x3e8] sm:$0xff] }
  0x35   : > { %324 = vst [vmem:[%s8215_s6 + $0x1f0] sm:$0xff] %v323_v62  ;;  %v327_v0 = vld [vmem:[%s8207_s5 + $0x400] sm:$0xff]  ;;  %v329_v1 = vld [vmem:[%s8207_s5 + $0x408] sm:$0xff]  ;;  %326 = vst [vmem:[%s8215_s6 + $0x1f8] sm:$0xff] %v325_v63 }
  0x36   : > { %328 = vst [vmem:[%s8215_s6 + $0x200] sm:$0xff] %v327_v0  ;;  %330 = vst [vmem:[%s8215_s6 + $0x208] sm:$0xff] %v329_v1  ;;  %v331_v2 = vld [vmem:[%s8207_s5 + $0x420] sm:$0xff]  ;;  %v333_v3 = vld [vmem:[%s8207_s5 + $0x428] sm:$0xff] }
  0x37   : > { %v335_v4 = vld [vmem:[%s8207_s5 + $0x440] sm:$0xff]  ;;  %332 = vst [vmem:[%s8215_s6 + $0x210] sm:$0xff] %v331_v2  ;;  %334 = vst [vmem:[%s8215_s6 + $0x218] sm:$0xff] %v333_v3  ;;  %v337_v5 = vld [vmem:[%s8207_s5 + $0x448] sm:$0xff] }
  0x38   : > { %336 = vst [vmem:[%s8215_s6 + $0x220] sm:$0xff] %v335_v4  ;;  %v339_v6 = vld [vmem:[%s8207_s5 + $0x460] sm:$0xff]  ;;  %v341_v7 = vld [vmem:[%s8207_s5 + $0x468] sm:$0xff]  ;;  %338 = vst [vmem:[%s8215_s6 + $0x228] sm:$0xff] %v337_v5 }
  0x39   : > { %340 = vst [vmem:[%s8215_s6 + $0x230] sm:$0xff] %v339_v6  ;;  %342 = vst [vmem:[%s8215_s6 + $0x238] sm:$0xff] %v341_v7  ;;  %v343_v8 = vld [vmem:[%s8207_s5 + $0x480] sm:$0xff]  ;;  %v345_v9 = vld [vmem:[%s8207_s5 + $0x488] sm:$0xff] }
  0x3a   : > { %v347_v10 = vld [vmem:[%s8207_s5 + $0x4a0] sm:$0xff]  ;;  %344 = vst [vmem:[%s8215_s6 + $0x240] sm:$0xff] %v343_v8  ;;  %346 = vst [vmem:[%s8215_s6 + $0x248] sm:$0xff] %v345_v9  ;;  %v349_v11 = vld [vmem:[%s8207_s5 + $0x4a8] sm:$0xff] }
  0x3b   : > { %348 = vst [vmem:[%s8215_s6 + $0x250] sm:$0xff] %v347_v10  ;;  %v351_v12 = vld [vmem:[%s8207_s5 + $0x4c0] sm:$0xff]  ;;  %v353_v13 = vld [vmem:[%s8207_s5 + $0x4c8] sm:$0xff]  ;;  %350 = vst [vmem:[%s8215_s6 + $0x258] sm:$0xff] %v349_v11 }
  0x3c   : > { %352 = vst [vmem:[%s8215_s6 + $0x260] sm:$0xff] %v351_v12  ;;  %354 = vst [vmem:[%s8215_s6 + $0x268] sm:$0xff] %v353_v13  ;;  %v355_v14 = vld [vmem:[%s8207_s5 + $0x4e0] sm:$0xff]  ;;  %v357_v15 = vld [vmem:[%s8207_s5 + $0x4e8] sm:$0xff] }
  0x3d   : > { %v359_v16 = vld [vmem:[%s8207_s5 + $0x500] sm:$0xff]  ;;  %356 = vst [vmem:[%s8215_s6 + $0x270] sm:$0xff] %v355_v14  ;;  %358 = vst [vmem:[%s8215_s6 + $0x278] sm:$0xff] %v357_v15  ;;  %v361_v17 = vld [vmem:[%s8207_s5 + $0x508] sm:$0xff] }
  0x3e   : > { %360 = vst [vmem:[%s8215_s6 + $0x280] sm:$0xff] %v359_v16  ;;  %v363_v18 = vld [vmem:[%s8207_s5 + $0x520] sm:$0xff]  ;;  %v365_v19 = vld [vmem:[%s8207_s5 + $0x528] sm:$0xff]  ;;  %362 = vst [vmem:[%s8215_s6 + $0x288] sm:$0xff] %v361_v17 }
  0x3f   : > { %364 = vst [vmem:[%s8215_s6 + $0x290] sm:$0xff] %v363_v18  ;;  %366 = vst [vmem:[%s8215_s6 + $0x298] sm:$0xff] %v365_v19  ;;  %v367_v20 = vld [vmem:[%s8207_s5 + $0x540] sm:$0xff]  ;;  %v369_v21 = vld [vmem:[%s8207_s5 + $0x548] sm:$0xff] }
  0x40   : > { %v371_v22 = vld [vmem:[%s8207_s5 + $0x560] sm:$0xff]  ;;  %368 = vst [vmem:[%s8215_s6 + $0x2a0] sm:$0xff] %v367_v20  ;;  %370 = vst [vmem:[%s8215_s6 + $0x2a8] sm:$0xff] %v369_v21  ;;  %v373_v23 = vld [vmem:[%s8207_s5 + $0x568] sm:$0xff] }
  0x41   : > { %372 = vst [vmem:[%s8215_s6 + $0x2b0] sm:$0xff] %v371_v22  ;;  %v375_v24 = vld [vmem:[%s8207_s5 + $0x580] sm:$0xff]  ;;  %v377_v25 = vld [vmem:[%s8207_s5 + $0x588] sm:$0xff]  ;;  %374 = vst [vmem:[%s8215_s6 + $0x2b8] sm:$0xff] %v373_v23 }
  0x42   : > { %376 = vst [vmem:[%s8215_s6 + $0x2c0] sm:$0xff] %v375_v24  ;;  %378 = vst [vmem:[%s8215_s6 + $0x2c8] sm:$0xff] %v377_v25  ;;  %v379_v26 = vld [vmem:[%s8207_s5 + $0x5a0] sm:$0xff]  ;;  %v381_v27 = vld [vmem:[%s8207_s5 + $0x5a8] sm:$0xff] }
  0x43   : > { %v383_v28 = vld [vmem:[%s8207_s5 + $0x5c0] sm:$0xff]  ;;  %380 = vst [vmem:[%s8215_s6 + $0x2d0] sm:$0xff] %v379_v26  ;;  %382 = vst [vmem:[%s8215_s6 + $0x2d8] sm:$0xff] %v381_v27  ;;  %v385_v29 = vld [vmem:[%s8207_s5 + $0x5c8] sm:$0xff] }
  0x44   : > { %384 = vst [vmem:[%s8215_s6 + $0x2e0] sm:$0xff] %v383_v28  ;;  %v387_v30 = vld [vmem:[%s8207_s5 + $0x5e0] sm:$0xff]  ;;  %v389_v31 = vld [vmem:[%s8207_s5 + $0x5e8] sm:$0xff]  ;;  %386 = vst [vmem:[%s8215_s6 + $0x2e8] sm:$0xff] %v385_v29 }
  0x45   : > { %388 = vst [vmem:[%s8215_s6 + $0x2f0] sm:$0xff] %v387_v30  ;;  %390 = vst [vmem:[%s8215_s6 + $0x2f8] sm:$0xff] %v389_v31  ;;  %v391_v32 = vld [vmem:[%s8207_s5 + $0x600] sm:$0xff]  ;;  %v393_v33 = vld [vmem:[%s8207_s5 + $0x608] sm:$0xff] }
  0x46   : > { %v395_v34 = vld [vmem:[%s8207_s5 + $0x620] sm:$0xff]  ;;  %392 = vst [vmem:[%s8215_s6 + $0x300] sm:$0xff] %v391_v32  ;;  %394 = vst [vmem:[%s8215_s6 + $0x308] sm:$0xff] %v393_v33  ;;  %v397_v35 = vld [vmem:[%s8207_s5 + $0x628] sm:$0xff] }
  0x47   : > { %396 = vst [vmem:[%s8215_s6 + $0x310] sm:$0xff] %v395_v34  ;;  %v399_v36 = vld [vmem:[%s8207_s5 + $0x640] sm:$0xff]  ;;  %v401_v37 = vld [vmem:[%s8207_s5 + $0x648] sm:$0xff]  ;;  %398 = vst [vmem:[%s8215_s6 + $0x318] sm:$0xff] %v397_v35 }
  0x48   : > { %400 = vst [vmem:[%s8215_s6 + $0x320] sm:$0xff] %v399_v36  ;;  %402 = vst [vmem:[%s8215_s6 + $0x328] sm:$0xff] %v401_v37  ;;  %v403_v38 = vld [vmem:[%s8207_s5 + $0x660] sm:$0xff]  ;;  %v405_v39 = vld [vmem:[%s8207_s5 + $0x668] sm:$0xff] }
  0x49   : > { %v407_v40 = vld [vmem:[%s8207_s5 + $0x680] sm:$0xff]  ;;  %404 = vst [vmem:[%s8215_s6 + $0x330] sm:$0xff] %v403_v38  ;;  %406 = vst [vmem:[%s8215_s6 + $0x338] sm:$0xff] %v405_v39  ;;  %v409_v41 = vld [vmem:[%s8207_s5 + $0x688] sm:$0xff] }
  0x4a   : > { %408 = vst [vmem:[%s8215_s6 + $0x340] sm:$0xff] %v407_v40  ;;  %v411_v42 = vld [vmem:[%s8207_s5 + $0x6a0] sm:$0xff]  ;;  %v413_v43 = vld [vmem:[%s8207_s5 + $0x6a8] sm:$0xff]  ;;  %410 = vst [vmem:[%s8215_s6 + $0x348] sm:$0xff] %v409_v41 }
  0x4b   : > { %412 = vst [vmem:[%s8215_s6 + $0x350] sm:$0xff] %v411_v42  ;;  %414 = vst [vmem:[%s8215_s6 + $0x358] sm:$0xff] %v413_v43  ;;  %v415_v44 = vld [vmem:[%s8207_s5 + $0x6c0] sm:$0xff]  ;;  %v417_v45 = vld [vmem:[%s8207_s5 + $0x6c8] sm:$0xff] }
  0x4c   : > { %v419_v46 = vld [vmem:[%s8207_s5 + $0x6e0] sm:$0xff]  ;;  %416 = vst [vmem:[%s8215_s6 + $0x360] sm:$0xff] %v415_v44  ;;  %418 = vst [vmem:[%s8215_s6 + $0x368] sm:$0xff] %v417_v45  ;;  %v421_v47 = vld [vmem:[%s8207_s5 + $0x6e8] sm:$0xff] }
  0x4d   : > { %420 = vst [vmem:[%s8215_s6 + $0x370] sm:$0xff] %v419_v46  ;;  %v423_v48 = vld [vmem:[%s8207_s5 + $0x700] sm:$0xff]  ;;  %v425_v49 = vld [vmem:[%s8207_s5 + $0x708] sm:$0xff]  ;;  %422 = vst [vmem:[%s8215_s6 + $0x378] sm:$0xff] %v421_v47 }
  0x4e   : > { %424 = vst [vmem:[%s8215_s6 + $0x380] sm:$0xff] %v423_v48  ;;  %426 = vst [vmem:[%s8215_s6 + $0x388] sm:$0xff] %v425_v49  ;;  %v427_v50 = vld [vmem:[%s8207_s5 + $0x720] sm:$0xff]  ;;  %v429_v51 = vld [vmem:[%s8207_s5 + $0x728] sm:$0xff] }
  0x4f   : > { %v431_v52 = vld [vmem:[%s8207_s5 + $0x740] sm:$0xff]  ;;  %428 = vst [vmem:[%s8215_s6 + $0x390] sm:$0xff] %v427_v50  ;;  %430 = vst [vmem:[%s8215_s6 + $0x398] sm:$0xff] %v429_v51  ;;  %v433_v53 = vld [vmem:[%s8207_s5 + $0x748] sm:$0xff] }
  0x50   : > { %432 = vst [vmem:[%s8215_s6 + $0x3a0] sm:$0xff] %v431_v52  ;;  %v435_v54 = vld [vmem:[%s8207_s5 + $0x760] sm:$0xff]  ;;  %v437_v55 = vld [vmem:[%s8207_s5 + $0x768] sm:$0xff]  ;;  %434 = vst [vmem:[%s8215_s6 + $0x3a8] sm:$0xff] %v433_v53 }
  0x51   : > { %436 = vst [vmem:[%s8215_s6 + $0x3b0] sm:$0xff] %v435_v54  ;;  %438 = vst [vmem:[%s8215_s6 + $0x3b8] sm:$0xff] %v437_v55  ;;  %v439_v56 = vld [vmem:[%s8207_s5 + $0x780] sm:$0xff]  ;;  %v441_v57 = vld [vmem:[%s8207_s5 + $0x788] sm:$0xff] }
  0x52   : > { %v443_v58 = vld [vmem:[%s8207_s5 + $0x7a0] sm:$0xff]  ;;  %440 = vst [vmem:[%s8215_s6 + $0x3c0] sm:$0xff] %v439_v56  ;;  %442 = vst [vmem:[%s8215_s6 + $0x3c8] sm:$0xff] %v441_v57  ;;  %v445_v59 = vld [vmem:[%s8207_s5 + $0x7a8] sm:$0xff] }
  0x53   : > { %444 = vst [vmem:[%s8215_s6 + $0x3d0] sm:$0xff] %v443_v58  ;;  %v447_v60 = vld [vmem:[%s8207_s5 + $0x7c0] sm:$0xff]  ;;  %v449_v61 = vld [vmem:[%s8207_s5 + $0x7c8] sm:$0xff]  ;;  %446 = vst [vmem:[%s8215_s6 + $0x3d8] sm:$0xff] %v445_v59 }
  0x54   : > { %448 = vst [vmem:[%s8215_s6 + $0x3e0] sm:$0xff] %v447_v60  ;;  %450 = vst [vmem:[%s8215_s6 + $0x3e8] sm:$0xff] %v449_v61  ;;  %v451_v62 = vld [vmem:[%s8207_s5 + $0x7e0] sm:$0xff]  ;;  %v453_v63 = vld [vmem:[%s8207_s5 + $0x7e8] sm:$0xff] }
  0x55   : > { %v455_v0 = vld [vmem:[%s8207_s5 + $0x800] sm:$0xff]  ;;  %452 = vst [vmem:[%s8215_s6 + $0x3f0] sm:$0xff] %v451_v62  ;;  %454 = vst [vmem:[%s8215_s6 + $0x3f8] sm:$0xff] %v453_v63  ;;  %v457_v1 = vld [vmem:[%s8207_s5 + $0x808] sm:$0xff] }
  0x56   : > { %456 = vst [vmem:[%s8215_s6 + $0x400] sm:$0xff] %v455_v0  ;;  %v459_v2 = vld [vmem:[%s8207_s5 + $0x820] sm:$0xff]  ;;  %v461_v3 = vld [vmem:[%s8207_s5 + $0x828] sm:$0xff]  ;;  %458 = vst [vmem:[%s8215_s6 + $0x408] sm:$0xff] %v457_v1 }
  0x57   : > { %460 = vst [vmem:[%s8215_s6 + $0x410] sm:$0xff] %v459_v2  ;;  %462 = vst [vmem:[%s8215_s6 + $0x418] sm:$0xff] %v461_v3  ;;  %v463_v4 = vld [vmem:[%s8207_s5 + $0x840] sm:$0xff]  ;;  %v465_v5 = vld [vmem:[%s8207_s5 + $0x848] sm:$0xff] }
  0x58   : > { %v467_v6 = vld [vmem:[%s8207_s5 + $0x860] sm:$0xff]  ;;  %464 = vst [vmem:[%s8215_s6 + $0x420] sm:$0xff] %v463_v4  ;;  %466 = vst [vmem:[%s8215_s6 + $0x428] sm:$0xff] %v465_v5  ;;  %v469_v7 = vld [vmem:[%s8207_s5 + $0x868] sm:$0xff] }
  0x59   : > { %468 = vst [vmem:[%s8215_s6 + $0x430] sm:$0xff] %v467_v6  ;;  %v471_v8 = vld [vmem:[%s8207_s5 + $0x880] sm:$0xff]  ;;  %v473_v9 = vld [vmem:[%s8207_s5 + $0x888] sm:$0xff]  ;;  %470 = vst [vmem:[%s8215_s6 + $0x438] sm:$0xff] %v469_v7 }
  0x5a   : > { %472 = vst [vmem:[%s8215_s6 + $0x440] sm:$0xff] %v471_v8  ;;  %474 = vst [vmem:[%s8215_s6 + $0x448] sm:$0xff] %v473_v9  ;;  %v475_v10 = vld [vmem:[%s8207_s5 + $0x8a0] sm:$0xff]  ;;  %v477_v11 = vld [vmem:[%s8207_s5 + $0x8a8] sm:$0xff] }
  0x5b   : > { %v479_v12 = vld [vmem:[%s8207_s5 + $0x8c0] sm:$0xff]  ;;  %476 = vst [vmem:[%s8215_s6 + $0x450] sm:$0xff] %v475_v10  ;;  %478 = vst [vmem:[%s8215_s6 + $0x458] sm:$0xff] %v477_v11  ;;  %v481_v13 = vld [vmem:[%s8207_s5 + $0x8c8] sm:$0xff] }
  0x5c   : > { %480 = vst [vmem:[%s8215_s6 + $0x460] sm:$0xff] %v479_v12  ;;  %v483_v14 = vld [vmem:[%s8207_s5 + $0x8e0] sm:$0xff]  ;;  %v485_v15 = vld [vmem:[%s8207_s5 + $0x8e8] sm:$0xff]  ;;  %482 = vst [vmem:[%s8215_s6 + $0x468] sm:$0xff] %v481_v13 }
  0x5d   : > { %484 = vst [vmem:[%s8215_s6 + $0x470] sm:$0xff] %v483_v14  ;;  %486 = vst [vmem:[%s8215_s6 + $0x478] sm:$0xff] %v485_v15  ;;  %v487_v16 = vld [vmem:[%s8207_s5 + $0x900] sm:$0xff]  ;;  %v489_v17 = vld [vmem:[%s8207_s5 + $0x908] sm:$0xff] }
  0x5e   : > { %v491_v18 = vld [vmem:[%s8207_s5 + $0x920] sm:$0xff]  ;;  %488 = vst [vmem:[%s8215_s6 + $0x480] sm:$0xff] %v487_v16  ;;  %490 = vst [vmem:[%s8215_s6 + $0x488] sm:$0xff] %v489_v17  ;;  %v493_v19 = vld [vmem:[%s8207_s5 + $0x928] sm:$0xff] }
  0x5f   : > { %492 = vst [vmem:[%s8215_s6 + $0x490] sm:$0xff] %v491_v18  ;;  %v495_v20 = vld [vmem:[%s8207_s5 + $0x940] sm:$0xff]  ;;  %v497_v21 = vld [vmem:[%s8207_s5 + $0x948] sm:$0xff]  ;;  %494 = vst [vmem:[%s8215_s6 + $0x498] sm:$0xff] %v493_v19 }
  0x60   : > { %496 = vst [vmem:[%s8215_s6 + $0x4a0] sm:$0xff] %v495_v20  ;;  %498 = vst [vmem:[%s8215_s6 + $0x4a8] sm:$0xff] %v497_v21  ;;  %v499_v22 = vld [vmem:[%s8207_s5 + $0x960] sm:$0xff]  ;;  %v501_v23 = vld [vmem:[%s8207_s5 + $0x968] sm:$0xff] }
  0x61   : > { %v503_v24 = vld [vmem:[%s8207_s5 + $0x980] sm:$0xff]  ;;  %500 = vst [vmem:[%s8215_s6 + $0x4b0] sm:$0xff] %v499_v22  ;;  %502 = vst [vmem:[%s8215_s6 + $0x4b8] sm:$0xff] %v501_v23  ;;  %v505_v25 = vld [vmem:[%s8207_s5 + $0x988] sm:$0xff] }
  0x62   : > { %504 = vst [vmem:[%s8215_s6 + $0x4c0] sm:$0xff] %v503_v24  ;;  %v507_v26 = vld [vmem:[%s8207_s5 + $0x9a0] sm:$0xff]  ;;  %v509_v27 = vld [vmem:[%s8207_s5 + $0x9a8] sm:$0xff]  ;;  %506 = vst [vmem:[%s8215_s6 + $0x4c8] sm:$0xff] %v505_v25 }
  0x63   : > { %508 = vst [vmem:[%s8215_s6 + $0x4d0] sm:$0xff] %v507_v26  ;;  %510 = vst [vmem:[%s8215_s6 + $0x4d8] sm:$0xff] %v509_v27  ;;  %v511_v28 = vld [vmem:[%s8207_s5 + $0x9c0] sm:$0xff]  ;;  %v513_v29 = vld [vmem:[%s8207_s5 + $0x9c8] sm:$0xff] }
  0x64   : > { %v515_v30 = vld [vmem:[%s8207_s5 + $0x9e0] sm:$0xff]  ;;  %512 = vst [vmem:[%s8215_s6 + $0x4e0] sm:$0xff] %v511_v28  ;;  %514 = vst [vmem:[%s8215_s6 + $0x4e8] sm:$0xff] %v513_v29  ;;  %v517_v31 = vld [vmem:[%s8207_s5 + $0x9e8] sm:$0xff] }
  0x65   : > { %516 = vst [vmem:[%s8215_s6 + $0x4f0] sm:$0xff] %v515_v30  ;;  %v519_v32 = vld [vmem:[%s8207_s5 + $0xa00] sm:$0xff]  ;;  %v521_v33 = vld [vmem:[%s8207_s5 + $0xa08] sm:$0xff]  ;;  %518 = vst [vmem:[%s8215_s6 + $0x4f8] sm:$0xff] %v517_v31 }
  0x66   : > { %520 = vst [vmem:[%s8215_s6 + $0x500] sm:$0xff] %v519_v32  ;;  %522 = vst [vmem:[%s8215_s6 + $0x508] sm:$0xff] %v521_v33  ;;  %v523_v34 = vld [vmem:[%s8207_s5 + $0xa20] sm:$0xff]  ;;  %v525_v35 = vld [vmem:[%s8207_s5 + $0xa28] sm:$0xff] }
  0x67   : > { %v527_v36 = vld [vmem:[%s8207_s5 + $0xa40] sm:$0xff]  ;;  %524 = vst [vmem:[%s8215_s6 + $0x510] sm:$0xff] %v523_v34  ;;  %526 = vst [vmem:[%s8215_s6 + $0x518] sm:$0xff] %v525_v35  ;;  %v529_v37 = vld [vmem:[%s8207_s5 + $0xa48] sm:$0xff] }
  0x68   : > { %528 = vst [vmem:[%s8215_s6 + $0x520] sm:$0xff] %v527_v36  ;;  %v531_v38 = vld [vmem:[%s8207_s5 + $0xa60] sm:$0xff]  ;;  %v533_v39 = vld [vmem:[%s8207_s5 + $0xa68] sm:$0xff]  ;;  %530 = vst [vmem:[%s8215_s6 + $0x528] sm:$0xff] %v529_v37 }
  0x69   : > { %532 = vst [vmem:[%s8215_s6 + $0x530] sm:$0xff] %v531_v38  ;;  %534 = vst [vmem:[%s8215_s6 + $0x538] sm:$0xff] %v533_v39  ;;  %v535_v40 = vld [vmem:[%s8207_s5 + $0xa80] sm:$0xff]  ;;  %v537_v41 = vld [vmem:[%s8207_s5 + $0xa88] sm:$0xff] }
  0x6a   : > { %v539_v42 = vld [vmem:[%s8207_s5 + $0xaa0] sm:$0xff]  ;;  %536 = vst [vmem:[%s8215_s6 + $0x540] sm:$0xff] %v535_v40  ;;  %538 = vst [vmem:[%s8215_s6 + $0x548] sm:$0xff] %v537_v41  ;;  %v541_v43 = vld [vmem:[%s8207_s5 + $0xaa8] sm:$0xff] }
  0x6b   : > { %540 = vst [vmem:[%s8215_s6 + $0x550] sm:$0xff] %v539_v42  ;;  %v543_v44 = vld [vmem:[%s8207_s5 + $0xac0] sm:$0xff]  ;;  %v545_v45 = vld [vmem:[%s8207_s5 + $0xac8] sm:$0xff]  ;;  %542 = vst [vmem:[%s8215_s6 + $0x558] sm:$0xff] %v541_v43 }
  0x6c   : > { %544 = vst [vmem:[%s8215_s6 + $0x560] sm:$0xff] %v543_v44  ;;  %546 = vst [vmem:[%s8215_s6 + $0x568] sm:$0xff] %v545_v45  ;;  %v547_v46 = vld [vmem:[%s8207_s5 + $0xae0] sm:$0xff]  ;;  %v549_v47 = vld [vmem:[%s8207_s5 + $0xae8] sm:$0xff] }
  0x6d   : > { %v551_v48 = vld [vmem:[%s8207_s5 + $0xb00] sm:$0xff]  ;;  %548 = vst [vmem:[%s8215_s6 + $0x570] sm:$0xff] %v547_v46  ;;  %550 = vst [vmem:[%s8215_s6 + $0x578] sm:$0xff] %v549_v47  ;;  %v553_v49 = vld [vmem:[%s8207_s5 + $0xb08] sm:$0xff] }
  0x6e   : > { %552 = vst [vmem:[%s8215_s6 + $0x580] sm:$0xff] %v551_v48  ;;  %v555_v50 = vld [vmem:[%s8207_s5 + $0xb20] sm:$0xff]  ;;  %v557_v51 = vld [vmem:[%s8207_s5 + $0xb28] sm:$0xff]  ;;  %554 = vst [vmem:[%s8215_s6 + $0x588] sm:$0xff] %v553_v49 }
  0x6f   : > { %556 = vst [vmem:[%s8215_s6 + $0x590] sm:$0xff] %v555_v50  ;;  %558 = vst [vmem:[%s8215_s6 + $0x598] sm:$0xff] %v557_v51  ;;  %v559_v52 = vld [vmem:[%s8207_s5 + $0xb40] sm:$0xff]  ;;  %v561_v53 = vld [vmem:[%s8207_s5 + $0xb48] sm:$0xff] }
  0x70   : > { %v563_v54 = vld [vmem:[%s8207_s5 + $0xb60] sm:$0xff]  ;;  %560 = vst [vmem:[%s8215_s6 + $0x5a0] sm:$0xff] %v559_v52  ;;  %562 = vst [vmem:[%s8215_s6 + $0x5a8] sm:$0xff] %v561_v53  ;;  %v565_v55 = vld [vmem:[%s8207_s5 + $0xb68] sm:$0xff] }
  0x71   : > { %564 = vst [vmem:[%s8215_s6 + $0x5b0] sm:$0xff] %v563_v54  ;;  %v567_v56 = vld [vmem:[%s8207_s5 + $0xb80] sm:$0xff]  ;;  %v569_v57 = vld [vmem:[%s8207_s5 + $0xb88] sm:$0xff]  ;;  %566 = vst [vmem:[%s8215_s6 + $0x5b8] sm:$0xff] %v565_v55 }
  0x72   : > { %568 = vst [vmem:[%s8215_s6 + $0x5c0] sm:$0xff] %v567_v56  ;;  %570 = vst [vmem:[%s8215_s6 + $0x5c8] sm:$0xff] %v569_v57  ;;  %v571_v58 = vld [vmem:[%s8207_s5 + $0xba0] sm:$0xff]  ;;  %v573_v59 = vld [vmem:[%s8207_s5 + $0xba8] sm:$0xff] }
  0x73   : > { %v575_v60 = vld [vmem:[%s8207_s5 + $0xbc0] sm:$0xff]  ;;  %572 = vst [vmem:[%s8215_s6 + $0x5d0] sm:$0xff] %v571_v58  ;;  %574 = vst [vmem:[%s8215_s6 + $0x5d8] sm:$0xff] %v573_v59  ;;  %v577_v61 = vld [vmem:[%s8207_s5 + $0xbc8] sm:$0xff] }
  0x74   : > { %576 = vst [vmem:[%s8215_s6 + $0x5e0] sm:$0xff] %v575_v60  ;;  %v579_v62 = vld [vmem:[%s8207_s5 + $0xbe0] sm:$0xff]  ;;  %v581_v63 = vld [vmem:[%s8207_s5 + $0xbe8] sm:$0xff]  ;;  %578 = vst [vmem:[%s8215_s6 + $0x5e8] sm:$0xff] %v577_v61 }
  0x75   : > { %580 = vst [vmem:[%s8215_s6 + $0x5f0] sm:$0xff] %v579_v62  ;;  %582 = vst [vmem:[%s8215_s6 + $0x5f8] sm:$0xff] %v581_v63  ;;  %v583_v0 = vld [vmem:[%s8207_s5 + $0xc00] sm:$0xff]  ;;  %v585_v1 = vld [vmem:[%s8207_s5 + $0xc08] sm:$0xff] }
  0x76   : > { %v587_v2 = vld [vmem:[%s8207_s5 + $0xc20] sm:$0xff]  ;;  %584 = vst [vmem:[%s8215_s6 + $0x600] sm:$0xff] %v583_v0  ;;  %586 = vst [vmem:[%s8215_s6 + $0x608] sm:$0xff] %v585_v1  ;;  %v589_v3 = vld [vmem:[%s8207_s5 + $0xc28] sm:$0xff] }
  0x77   : > { %588 = vst [vmem:[%s8215_s6 + $0x610] sm:$0xff] %v587_v2  ;;  %v591_v4 = vld [vmem:[%s8207_s5 + $0xc40] sm:$0xff]  ;;  %v593_v5 = vld [vmem:[%s8207_s5 + $0xc48] sm:$0xff]  ;;  %590 = vst [vmem:[%s8215_s6 + $0x618] sm:$0xff] %v589_v3 }
  0x78   : > { %592 = vst [vmem:[%s8215_s6 + $0x620] sm:$0xff] %v591_v4  ;;  %594 = vst [vmem:[%s8215_s6 + $0x628] sm:$0xff] %v593_v5  ;;  %v595_v6 = vld [vmem:[%s8207_s5 + $0xc60] sm:$0xff]  ;;  %v597_v7 = vld [vmem:[%s8207_s5 + $0xc68] sm:$0xff] }
  0x79   : > { %v599_v8 = vld [vmem:[%s8207_s5 + $0xc80] sm:$0xff]  ;;  %596 = vst [vmem:[%s8215_s6 + $0x630] sm:$0xff] %v595_v6  ;;  %598 = vst [vmem:[%s8215_s6 + $0x638] sm:$0xff] %v597_v7  ;;  %v601_v9 = vld [vmem:[%s8207_s5 + $0xc88] sm:$0xff] }
  0x7a   : > { %600 = vst [vmem:[%s8215_s6 + $0x640] sm:$0xff] %v599_v8  ;;  %v603_v10 = vld [vmem:[%s8207_s5 + $0xca0] sm:$0xff]  ;;  %v605_v11 = vld [vmem:[%s8207_s5 + $0xca8] sm:$0xff]  ;;  %602 = vst [vmem:[%s8215_s6 + $0x648] sm:$0xff] %v601_v9 }
  0x7b   : > { %604 = vst [vmem:[%s8215_s6 + $0x650] sm:$0xff] %v603_v10  ;;  %606 = vst [vmem:[%s8215_s6 + $0x658] sm:$0xff] %v605_v11  ;;  %v607_v12 = vld [vmem:[%s8207_s5 + $0xcc0] sm:$0xff]  ;;  %v609_v13 = vld [vmem:[%s8207_s5 + $0xcc8] sm:$0xff] }
  0x7c   : > { %v611_v14 = vld [vmem:[%s8207_s5 + $0xce0] sm:$0xff]  ;;  %608 = vst [vmem:[%s8215_s6 + $0x660] sm:$0xff] %v607_v12  ;;  %610 = vst [vmem:[%s8215_s6 + $0x668] sm:$0xff] %v609_v13  ;;  %v613_v15 = vld [vmem:[%s8207_s5 + $0xce8] sm:$0xff] }
  0x7d   : > { %612 = vst [vmem:[%s8215_s6 + $0x670] sm:$0xff] %v611_v14  ;;  %v615_v16 = vld [vmem:[%s8207_s5 + $0xd00] sm:$0xff]  ;;  %v617_v17 = vld [vmem:[%s8207_s5 + $0xd08] sm:$0xff]  ;;  %614 = vst [vmem:[%s8215_s6 + $0x678] sm:$0xff] %v613_v15 }
  0x7e   : > { %616 = vst [vmem:[%s8215_s6 + $0x680] sm:$0xff] %v615_v16  ;;  %618 = vst [vmem:[%s8215_s6 + $0x688] sm:$0xff] %v617_v17  ;;  %v619_v18 = vld [vmem:[%s8207_s5 + $0xd20] sm:$0xff]  ;;  %v621_v19 = vld [vmem:[%s8207_s5 + $0xd28] sm:$0xff] }
  0x7f   : > { %v623_v20 = vld [vmem:[%s8207_s5 + $0xd40] sm:$0xff]  ;;  %620 = vst [vmem:[%s8215_s6 + $0x690] sm:$0xff] %v619_v18  ;;  %622 = vst [vmem:[%s8215_s6 + $0x698] sm:$0xff] %v621_v19  ;;  %v625_v21 = vld [vmem:[%s8207_s5 + $0xd48] sm:$0xff] }
  0x80   : > { %624 = vst [vmem:[%s8215_s6 + $0x6a0] sm:$0xff] %v623_v20  ;;  %v627_v22 = vld [vmem:[%s8207_s5 + $0xd60] sm:$0xff]  ;;  %v629_v23 = vld [vmem:[%s8207_s5 + $0xd68] sm:$0xff]  ;;  %626 = vst [vmem:[%s8215_s6 + $0x6a8] sm:$0xff] %v625_v21 }
  0x81   : > { %628 = vst [vmem:[%s8215_s6 + $0x6b0] sm:$0xff] %v627_v22  ;;  %630 = vst [vmem:[%s8215_s6 + $0x6b8] sm:$0xff] %v629_v23  ;;  %v631_v24 = vld [vmem:[%s8207_s5 + $0xd80] sm:$0xff]  ;;  %v633_v25 = vld [vmem:[%s8207_s5 + $0xd88] sm:$0xff] }
  0x82   : > { %v635_v26 = vld [vmem:[%s8207_s5 + $0xda0] sm:$0xff]  ;;  %632 = vst [vmem:[%s8215_s6 + $0x6c0] sm:$0xff] %v631_v24  ;;  %634 = vst [vmem:[%s8215_s6 + $0x6c8] sm:$0xff] %v633_v25  ;;  %v637_v27 = vld [vmem:[%s8207_s5 + $0xda8] sm:$0xff] }
  0x83   : > { %636 = vst [vmem:[%s8215_s6 + $0x6d0] sm:$0xff] %v635_v26  ;;  %v639_v28 = vld [vmem:[%s8207_s5 + $0xdc0] sm:$0xff]  ;;  %v641_v29 = vld [vmem:[%s8207_s5 + $0xdc8] sm:$0xff]  ;;  %638 = vst [vmem:[%s8215_s6 + $0x6d8] sm:$0xff] %v637_v27 }
  0x84   : > { %640 = vst [vmem:[%s8215_s6 + $0x6e0] sm:$0xff] %v639_v28  ;;  %642 = vst [vmem:[%s8215_s6 + $0x6e8] sm:$0xff] %v641_v29  ;;  %v643_v30 = vld [vmem:[%s8207_s5 + $0xde0] sm:$0xff]  ;;  %v645_v31 = vld [vmem:[%s8207_s5 + $0xde8] sm:$0xff] }
  0x85   : > { %v647_v32 = vld [vmem:[%s8207_s5 + $0xe00] sm:$0xff]  ;;  %644 = vst [vmem:[%s8215_s6 + $0x6f0] sm:$0xff] %v643_v30  ;;  %646 = vst [vmem:[%s8215_s6 + $0x6f8] sm:$0xff] %v645_v31  ;;  %v649_v33 = vld [vmem:[%s8207_s5 + $0xe08] sm:$0xff] }
  0x86   : > { %648 = vst [vmem:[%s8215_s6 + $0x700] sm:$0xff] %v647_v32  ;;  %v651_v34 = vld [vmem:[%s8207_s5 + $0xe20] sm:$0xff]  ;;  %v653_v35 = vld [vmem:[%s8207_s5 + $0xe28] sm:$0xff]  ;;  %650 = vst [vmem:[%s8215_s6 + $0x708] sm:$0xff] %v649_v33 }
  0x87   : > { %652 = vst [vmem:[%s8215_s6 + $0x710] sm:$0xff] %v651_v34  ;;  %654 = vst [vmem:[%s8215_s6 + $0x718] sm:$0xff] %v653_v35  ;;  %v655_v36 = vld [vmem:[%s8207_s5 + $0xe40] sm:$0xff]  ;;  %v657_v37 = vld [vmem:[%s8207_s5 + $0xe48] sm:$0xff] }
  0x88   : > { %v659_v38 = vld [vmem:[%s8207_s5 + $0xe60] sm:$0xff]  ;;  %656 = vst [vmem:[%s8215_s6 + $0x720] sm:$0xff] %v655_v36  ;;  %658 = vst [vmem:[%s8215_s6 + $0x728] sm:$0xff] %v657_v37  ;;  %v661_v39 = vld [vmem:[%s8207_s5 + $0xe68] sm:$0xff] }
  0x89   : > { %660 = vst [vmem:[%s8215_s6 + $0x730] sm:$0xff] %v659_v38  ;;  %v663_v40 = vld [vmem:[%s8207_s5 + $0xe80] sm:$0xff]  ;;  %v665_v41 = vld [vmem:[%s8207_s5 + $0xe88] sm:$0xff]  ;;  %662 = vst [vmem:[%s8215_s6 + $0x738] sm:$0xff] %v661_v39 }
  0x8a   : > { %664 = vst [vmem:[%s8215_s6 + $0x740] sm:$0xff] %v663_v40  ;;  %666 = vst [vmem:[%s8215_s6 + $0x748] sm:$0xff] %v665_v41  ;;  %v667_v42 = vld [vmem:[%s8207_s5 + $0xea0] sm:$0xff]  ;;  %v669_v43 = vld [vmem:[%s8207_s5 + $0xea8] sm:$0xff] }
  0x8b   : > { %v671_v44 = vld [vmem:[%s8207_s5 + $0xec0] sm:$0xff]  ;;  %668 = vst [vmem:[%s8215_s6 + $0x750] sm:$0xff] %v667_v42  ;;  %670 = vst [vmem:[%s8215_s6 + $0x758] sm:$0xff] %v669_v43  ;;  %v673_v45 = vld [vmem:[%s8207_s5 + $0xec8] sm:$0xff] }
  0x8c   : > { %672 = vst [vmem:[%s8215_s6 + $0x760] sm:$0xff] %v671_v44  ;;  %v675_v46 = vld [vmem:[%s8207_s5 + $0xee0] sm:$0xff]  ;;  %v677_v47 = vld [vmem:[%s8207_s5 + $0xee8] sm:$0xff]  ;;  %674 = vst [vmem:[%s8215_s6 + $0x768] sm:$0xff] %v673_v45 }
  0x8d   : > { %676 = vst [vmem:[%s8215_s6 + $0x770] sm:$0xff] %v675_v46  ;;  %678 = vst [vmem:[%s8215_s6 + $0x778] sm:$0xff] %v677_v47  ;;  %v679_v48 = vld [vmem:[%s8207_s5 + $0xf00] sm:$0xff]  ;;  %v681_v49 = vld [vmem:[%s8207_s5 + $0xf08] sm:$0xff] }
  0x8e   : > { %v683_v50 = vld [vmem:[%s8207_s5 + $0xf20] sm:$0xff]  ;;  %680 = vst [vmem:[%s8215_s6 + $0x780] sm:$0xff] %v679_v48  ;;  %682 = vst [vmem:[%s8215_s6 + $0x788] sm:$0xff] %v681_v49  ;;  %v685_v51 = vld [vmem:[%s8207_s5 + $0xf28] sm:$0xff] }
  0x8f   : > { %684 = vst [vmem:[%s8215_s6 + $0x790] sm:$0xff] %v683_v50  ;;  %v687_v52 = vld [vmem:[%s8207_s5 + $0xf40] sm:$0xff]  ;;  %v689_v53 = vld [vmem:[%s8207_s5 + $0xf48] sm:$0xff]  ;;  %686 = vst [vmem:[%s8215_s6 + $0x798] sm:$0xff] %v685_v51 }
  0x90   : > { %688 = vst [vmem:[%s8215_s6 + $0x7a0] sm:$0xff] %v687_v52  ;;  %690 = vst [vmem:[%s8215_s6 + $0x7a8] sm:$0xff] %v689_v53  ;;  %v691_v54 = vld [vmem:[%s8207_s5 + $0xf60] sm:$0xff]  ;;  %v693_v55 = vld [vmem:[%s8207_s5 + $0xf68] sm:$0xff] }
  0x91   : > { %v695_v56 = vld [vmem:[%s8207_s5 + $0xf80] sm:$0xff]  ;;  %692 = vst [vmem:[%s8215_s6 + $0x7b0] sm:$0xff] %v691_v54  ;;  %694 = vst [vmem:[%s8215_s6 + $0x7b8] sm:$0xff] %v693_v55  ;;  %v697_v57 = vld [vmem:[%s8207_s5 + $0xf88] sm:$0xff] }
  0x92   : > { %696 = vst [vmem:[%s8215_s6 + $0x7c0] sm:$0xff] %v695_v56  ;;  %v699_v58 = vld [vmem:[%s8207_s5 + $0xfa0] sm:$0xff]  ;;  %v701_v59 = vld [vmem:[%s8207_s5 + $0xfa8] sm:$0xff]  ;;  %698 = vst [vmem:[%s8215_s6 + $0x7c8] sm:$0xff] %v697_v57 }
  0x93   : > { %700 = vst [vmem:[%s8215_s6 + $0x7d0] sm:$0xff] %v699_v58  ;;  %702 = vst [vmem:[%s8215_s6 + $0x7d8] sm:$0xff] %v701_v59  ;;  %v703_v60 = vld [vmem:[%s8207_s5 + $0xfc0] sm:$0xff]  ;;  %v705_v61 = vld [vmem:[%s8207_s5 + $0xfc8] sm:$0xff] }
  0x94   : > { %v707_v62 = vld [vmem:[%s8207_s5 + $0xfe0] sm:$0xff]  ;;  %704 = vst [vmem:[%s8215_s6 + $0x7e0] sm:$0xff] %v703_v60  ;;  %706 = vst [vmem:[%s8215_s6 + $0x7e8] sm:$0xff] %v705_v61  ;;  %v709_v63 = vld [vmem:[%s8207_s5 + $0xfe8] sm:$0xff] }
  0x95   : > { %708 = vst [vmem:[%s8215_s6 + $0x7f0] sm:$0xff] %v707_v62  ;;  %v711_v0 = vld [vmem:[%s8207_s5 + $0x1000] sm:$0xff]  ;;  %v713_v1 = vld [vmem:[%s8207_s5 + $0x1008] sm:$0xff]  ;;  %710 = vst [vmem:[%s8215_s6 + $0x7f8] sm:$0xff] %v709_v63 }
  0x96   : > { %712 = vst [vmem:[%s8215_s6 + $0x800] sm:$0xff] %v711_v0  ;;  %714 = vst [vmem:[%s8215_s6 + $0x808] sm:$0xff] %v713_v1  ;;  %v715_v2 = vld [vmem:[%s8207_s5 + $0x1020] sm:$0xff]  ;;  %v717_v3 = vld [vmem:[%s8207_s5 + $0x1028] sm:$0xff] }
  0x97   : > { %v719_v4 = vld [vmem:[%s8207_s5 + $0x1040] sm:$0xff]  ;;  %716 = vst [vmem:[%s8215_s6 + $0x810] sm:$0xff] %v715_v2  ;;  %718 = vst [vmem:[%s8215_s6 + $0x818] sm:$0xff] %v717_v3  ;;  %v721_v5 = vld [vmem:[%s8207_s5 + $0x1048] sm:$0xff] }
  0x98   : > { %720 = vst [vmem:[%s8215_s6 + $0x820] sm:$0xff] %v719_v4  ;;  %v723_v6 = vld [vmem:[%s8207_s5 + $0x1060] sm:$0xff]  ;;  %v725_v7 = vld [vmem:[%s8207_s5 + $0x1068] sm:$0xff]  ;;  %722 = vst [vmem:[%s8215_s6 + $0x828] sm:$0xff] %v721_v5 }
  0x99   : > { %724 = vst [vmem:[%s8215_s6 + $0x830] sm:$0xff] %v723_v6  ;;  %726 = vst [vmem:[%s8215_s6 + $0x838] sm:$0xff] %v725_v7  ;;  %v727_v8 = vld [vmem:[%s8207_s5 + $0x1080] sm:$0xff]  ;;  %v729_v9 = vld [vmem:[%s8207_s5 + $0x1088] sm:$0xff] }
  0x9a   : > { %v731_v10 = vld [vmem:[%s8207_s5 + $0x10a0] sm:$0xff]  ;;  %728 = vst [vmem:[%s8215_s6 + $0x840] sm:$0xff] %v727_v8  ;;  %730 = vst [vmem:[%s8215_s6 + $0x848] sm:$0xff] %v729_v9  ;;  %v733_v11 = vld [vmem:[%s8207_s5 + $0x10a8] sm:$0xff] }
  0x9b   : > { %732 = vst [vmem:[%s8215_s6 + $0x850] sm:$0xff] %v731_v10  ;;  %v735_v12 = vld [vmem:[%s8207_s5 + $0x10c0] sm:$0xff]  ;;  %v737_v13 = vld [vmem:[%s8207_s5 + $0x10c8] sm:$0xff]  ;;  %734 = vst [vmem:[%s8215_s6 + $0x858] sm:$0xff] %v733_v11 }
  0x9c   : > { %736 = vst [vmem:[%s8215_s6 + $0x860] sm:$0xff] %v735_v12  ;;  %738 = vst [vmem:[%s8215_s6 + $0x868] sm:$0xff] %v737_v13  ;;  %v739_v14 = vld [vmem:[%s8207_s5 + $0x10e0] sm:$0xff]  ;;  %v741_v15 = vld [vmem:[%s8207_s5 + $0x10e8] sm:$0xff] }
  0x9d   : > { %v743_v16 = vld [vmem:[%s8207_s5 + $0x1100] sm:$0xff]  ;;  %740 = vst [vmem:[%s8215_s6 + $0x870] sm:$0xff] %v739_v14  ;;  %742 = vst [vmem:[%s8215_s6 + $0x878] sm:$0xff] %v741_v15  ;;  %v745_v17 = vld [vmem:[%s8207_s5 + $0x1108] sm:$0xff] }
  0x9e   : > { %744 = vst [vmem:[%s8215_s6 + $0x880] sm:$0xff] %v743_v16  ;;  %v747_v18 = vld [vmem:[%s8207_s5 + $0x1120] sm:$0xff]  ;;  %v749_v19 = vld [vmem:[%s8207_s5 + $0x1128] sm:$0xff]  ;;  %746 = vst [vmem:[%s8215_s6 + $0x888] sm:$0xff] %v745_v17 }
  0x9f   : > { %748 = vst [vmem:[%s8215_s6 + $0x890] sm:$0xff] %v747_v18  ;;  %750 = vst [vmem:[%s8215_s6 + $0x898] sm:$0xff] %v749_v19  ;;  %v751_v20 = vld [vmem:[%s8207_s5 + $0x1140] sm:$0xff]  ;;  %v753_v21 = vld [vmem:[%s8207_s5 + $0x1148] sm:$0xff] }
  0xa0   : > { %v755_v22 = vld [vmem:[%s8207_s5 + $0x1160] sm:$0xff]  ;;  %752 = vst [vmem:[%s8215_s6 + $0x8a0] sm:$0xff] %v751_v20  ;;  %754 = vst [vmem:[%s8215_s6 + $0x8a8] sm:$0xff] %v753_v21  ;;  %v757_v23 = vld [vmem:[%s8207_s5 + $0x1168] sm:$0xff] }
  0xa1   : > { %756 = vst [vmem:[%s8215_s6 + $0x8b0] sm:$0xff] %v755_v22  ;;  %v759_v24 = vld [vmem:[%s8207_s5 + $0x1180] sm:$0xff]  ;;  %v761_v25 = vld [vmem:[%s8207_s5 + $0x1188] sm:$0xff]  ;;  %758 = vst [vmem:[%s8215_s6 + $0x8b8] sm:$0xff] %v757_v23 }
  0xa2   : > { %760 = vst [vmem:[%s8215_s6 + $0x8c0] sm:$0xff] %v759_v24  ;;  %762 = vst [vmem:[%s8215_s6 + $0x8c8] sm:$0xff] %v761_v25  ;;  %v763_v26 = vld [vmem:[%s8207_s5 + $0x11a0] sm:$0xff]  ;;  %v765_v27 = vld [vmem:[%s8207_s5 + $0x11a8] sm:$0xff] }
  0xa3   : > { %v767_v28 = vld [vmem:[%s8207_s5 + $0x11c0] sm:$0xff]  ;;  %764 = vst [vmem:[%s8215_s6 + $0x8d0] sm:$0xff] %v763_v26  ;;  %766 = vst [vmem:[%s8215_s6 + $0x8d8] sm:$0xff] %v765_v27  ;;  %v769_v29 = vld [vmem:[%s8207_s5 + $0x11c8] sm:$0xff] }
  0xa4   : > { %768 = vst [vmem:[%s8215_s6 + $0x8e0] sm:$0xff] %v767_v28  ;;  %v771_v30 = vld [vmem:[%s8207_s5 + $0x11e0] sm:$0xff]  ;;  %v773_v31 = vld [vmem:[%s8207_s5 + $0x11e8] sm:$0xff]  ;;  %770 = vst [vmem:[%s8215_s6 + $0x8e8] sm:$0xff] %v769_v29 }
  0xa5   : > { %772 = vst [vmem:[%s8215_s6 + $0x8f0] sm:$0xff] %v771_v30  ;;  %774 = vst [vmem:[%s8215_s6 + $0x8f8] sm:$0xff] %v773_v31  ;;  %v775_v32 = vld [vmem:[%s8207_s5 + $0x1200] sm:$0xff]  ;;  %v777_v33 = vld [vmem:[%s8207_s5 + $0x1208] sm:$0xff] }
  0xa6   : > { %v779_v34 = vld [vmem:[%s8207_s5 + $0x1220] sm:$0xff]  ;;  %776 = vst [vmem:[%s8215_s6 + $0x900] sm:$0xff] %v775_v32  ;;  %778 = vst [vmem:[%s8215_s6 + $0x908] sm:$0xff] %v777_v33  ;;  %v781_v35 = vld [vmem:[%s8207_s5 + $0x1228] sm:$0xff] }
  0xa7   : > { %780 = vst [vmem:[%s8215_s6 + $0x910] sm:$0xff] %v779_v34  ;;  %v783_v36 = vld [vmem:[%s8207_s5 + $0x1240] sm:$0xff]  ;;  %v785_v37 = vld [vmem:[%s8207_s5 + $0x1248] sm:$0xff]  ;;  %782 = vst [vmem:[%s8215_s6 + $0x918] sm:$0xff] %v781_v35 }
  0xa8   : > { %784 = vst [vmem:[%s8215_s6 + $0x920] sm:$0xff] %v783_v36  ;;  %786 = vst [vmem:[%s8215_s6 + $0x928] sm:$0xff] %v785_v37  ;;  %v787_v38 = vld [vmem:[%s8207_s5 + $0x1260] sm:$0xff]  ;;  %v789_v39 = vld [vmem:[%s8207_s5 + $0x1268] sm:$0xff] }
  0xa9   : > { %v791_v40 = vld [vmem:[%s8207_s5 + $0x1280] sm:$0xff]  ;;  %788 = vst [vmem:[%s8215_s6 + $0x930] sm:$0xff] %v787_v38  ;;  %790 = vst [vmem:[%s8215_s6 + $0x938] sm:$0xff] %v789_v39  ;;  %v793_v41 = vld [vmem:[%s8207_s5 + $0x1288] sm:$0xff] }
  0xaa   : > { %792 = vst [vmem:[%s8215_s6 + $0x940] sm:$0xff] %v791_v40  ;;  %v795_v42 = vld [vmem:[%s8207_s5 + $0x12a0] sm:$0xff]  ;;  %v797_v43 = vld [vmem:[%s8207_s5 + $0x12a8] sm:$0xff]  ;;  %794 = vst [vmem:[%s8215_s6 + $0x948] sm:$0xff] %v793_v41 }
  0xab   : > { %796 = vst [vmem:[%s8215_s6 + $0x950] sm:$0xff] %v795_v42  ;;  %798 = vst [vmem:[%s8215_s6 + $0x958] sm:$0xff] %v797_v43  ;;  %v799_v44 = vld [vmem:[%s8207_s5 + $0x12c0] sm:$0xff]  ;;  %v801_v45 = vld [vmem:[%s8207_s5 + $0x12c8] sm:$0xff] }
  0xac   : > { %v803_v46 = vld [vmem:[%s8207_s5 + $0x12e0] sm:$0xff]  ;;  %800 = vst [vmem:[%s8215_s6 + $0x960] sm:$0xff] %v799_v44  ;;  %802 = vst [vmem:[%s8215_s6 + $0x968] sm:$0xff] %v801_v45  ;;  %v805_v47 = vld [vmem:[%s8207_s5 + $0x12e8] sm:$0xff] }
  0xad   : > { %804 = vst [vmem:[%s8215_s6 + $0x970] sm:$0xff] %v803_v46  ;;  %v807_v48 = vld [vmem:[%s8207_s5 + $0x1300] sm:$0xff]  ;;  %v809_v49 = vld [vmem:[%s8207_s5 + $0x1308] sm:$0xff]  ;;  %806 = vst [vmem:[%s8215_s6 + $0x978] sm:$0xff] %v805_v47 }
  0xae   : > { %808 = vst [vmem:[%s8215_s6 + $0x980] sm:$0xff] %v807_v48  ;;  %810 = vst [vmem:[%s8215_s6 + $0x988] sm:$0xff] %v809_v49  ;;  %v811_v50 = vld [vmem:[%s8207_s5 + $0x1320] sm:$0xff]  ;;  %v813_v51 = vld [vmem:[%s8207_s5 + $0x1328] sm:$0xff] }
  0xaf   : > { %v815_v52 = vld [vmem:[%s8207_s5 + $0x1340] sm:$0xff]  ;;  %812 = vst [vmem:[%s8215_s6 + $0x990] sm:$0xff] %v811_v50  ;;  %814 = vst [vmem:[%s8215_s6 + $0x998] sm:$0xff] %v813_v51  ;;  %v817_v53 = vld [vmem:[%s8207_s5 + $0x1348] sm:$0xff] }
  0xb0   : > { %816 = vst [vmem:[%s8215_s6 + $0x9a0] sm:$0xff] %v815_v52  ;;  %v819_v54 = vld [vmem:[%s8207_s5 + $0x1360] sm:$0xff]  ;;  %v821_v55 = vld [vmem:[%s8207_s5 + $0x1368] sm:$0xff]  ;;  %818 = vst [vmem:[%s8215_s6 + $0x9a8] sm:$0xff] %v817_v53 }
  0xb1   : > { %820 = vst [vmem:[%s8215_s6 + $0x9b0] sm:$0xff] %v819_v54  ;;  %822 = vst [vmem:[%s8215_s6 + $0x9b8] sm:$0xff] %v821_v55  ;;  %v823_v56 = vld [vmem:[%s8207_s5 + $0x1380] sm:$0xff]  ;;  %v825_v57 = vld [vmem:[%s8207_s5 + $0x1388] sm:$0xff] }
  0xb2   : > { %v827_v58 = vld [vmem:[%s8207_s5 + $0x13a0] sm:$0xff]  ;;  %824 = vst [vmem:[%s8215_s6 + $0x9c0] sm:$0xff] %v823_v56  ;;  %826 = vst [vmem:[%s8215_s6 + $0x9c8] sm:$0xff] %v825_v57  ;;  %v829_v59 = vld [vmem:[%s8207_s5 + $0x13a8] sm:$0xff] }
  0xb3   : > { %828 = vst [vmem:[%s8215_s6 + $0x9d0] sm:$0xff] %v827_v58  ;;  %v831_v60 = vld [vmem:[%s8207_s5 + $0x13c0] sm:$0xff]  ;;  %v833_v61 = vld [vmem:[%s8207_s5 + $0x13c8] sm:$0xff]  ;;  %830 = vst [vmem:[%s8215_s6 + $0x9d8] sm:$0xff] %v829_v59 }
  0xb4   : > { %832 = vst [vmem:[%s8215_s6 + $0x9e0] sm:$0xff] %v831_v60  ;;  %834 = vst [vmem:[%s8215_s6 + $0x9e8] sm:$0xff] %v833_v61  ;;  %v835_v62 = vld [vmem:[%s8207_s5 + $0x13e0] sm:$0xff]  ;;  %v837_v63 = vld [vmem:[%s8207_s5 + $0x13e8] sm:$0xff] }
  0xb5   : > { %v839_v0 = vld [vmem:[%s8207_s5 + $0x1400] sm:$0xff]  ;;  %836 = vst [vmem:[%s8215_s6 + $0x9f0] sm:$0xff] %v835_v62  ;;  %838 = vst [vmem:[%s8215_s6 + $0x9f8] sm:$0xff] %v837_v63  ;;  %v841_v1 = vld [vmem:[%s8207_s5 + $0x1408] sm:$0xff] }
  0xb6   : > { %840 = vst [vmem:[%s8215_s6 + $0xa00] sm:$0xff] %v839_v0  ;;  %v843_v2 = vld [vmem:[%s8207_s5 + $0x1420] sm:$0xff]  ;;  %v845_v3 = vld [vmem:[%s8207_s5 + $0x1428] sm:$0xff]  ;;  %842 = vst [vmem:[%s8215_s6 + $0xa08] sm:$0xff] %v841_v1 }
  0xb7   : > { %844 = vst [vmem:[%s8215_s6 + $0xa10] sm:$0xff] %v843_v2  ;;  %846 = vst [vmem:[%s8215_s6 + $0xa18] sm:$0xff] %v845_v3  ;;  %v847_v4 = vld [vmem:[%s8207_s5 + $0x1440] sm:$0xff]  ;;  %v849_v5 = vld [vmem:[%s8207_s5 + $0x1448] sm:$0xff] }
  0xb8   : > { %v851_v6 = vld [vmem:[%s8207_s5 + $0x1460] sm:$0xff]  ;;  %848 = vst [vmem:[%s8215_s6 + $0xa20] sm:$0xff] %v847_v4  ;;  %850 = vst [vmem:[%s8215_s6 + $0xa28] sm:$0xff] %v849_v5  ;;  %v853_v7 = vld [vmem:[%s8207_s5 + $0x1468] sm:$0xff] }
  0xb9   : > { %852 = vst [vmem:[%s8215_s6 + $0xa30] sm:$0xff] %v851_v6  ;;  %v855_v8 = vld [vmem:[%s8207_s5 + $0x1480] sm:$0xff]  ;;  %v857_v9 = vld [vmem:[%s8207_s5 + $0x1488] sm:$0xff]  ;;  %854 = vst [vmem:[%s8215_s6 + $0xa38] sm:$0xff] %v853_v7 }
  0xba   : > { %856 = vst [vmem:[%s8215_s6 + $0xa40] sm:$0xff] %v855_v8  ;;  %858 = vst [vmem:[%s8215_s6 + $0xa48] sm:$0xff] %v857_v9  ;;  %v859_v10 = vld [vmem:[%s8207_s5 + $0x14a0] sm:$0xff]  ;;  %v861_v11 = vld [vmem:[%s8207_s5 + $0x14a8] sm:$0xff] }
  0xbb   : > { %v863_v12 = vld [vmem:[%s8207_s5 + $0x14c0] sm:$0xff]  ;;  %860 = vst [vmem:[%s8215_s6 + $0xa50] sm:$0xff] %v859_v10  ;;  %862 = vst [vmem:[%s8215_s6 + $0xa58] sm:$0xff] %v861_v11  ;;  %v865_v13 = vld [vmem:[%s8207_s5 + $0x14c8] sm:$0xff] }
  0xbc   : > { %864 = vst [vmem:[%s8215_s6 + $0xa60] sm:$0xff] %v863_v12  ;;  %v867_v14 = vld [vmem:[%s8207_s5 + $0x14e0] sm:$0xff]  ;;  %v869_v15 = vld [vmem:[%s8207_s5 + $0x14e8] sm:$0xff]  ;;  %866 = vst [vmem:[%s8215_s6 + $0xa68] sm:$0xff] %v865_v13 }
  0xbd   : > { %868 = vst [vmem:[%s8215_s6 + $0xa70] sm:$0xff] %v867_v14  ;;  %870 = vst [vmem:[%s8215_s6 + $0xa78] sm:$0xff] %v869_v15  ;;  %v871_v16 = vld [vmem:[%s8207_s5 + $0x1500] sm:$0xff]  ;;  %v873_v17 = vld [vmem:[%s8207_s5 + $0x1508] sm:$0xff] }
  0xbe   : > { %v875_v18 = vld [vmem:[%s8207_s5 + $0x1520] sm:$0xff]  ;;  %872 = vst [vmem:[%s8215_s6 + $0xa80] sm:$0xff] %v871_v16  ;;  %874 = vst [vmem:[%s8215_s6 + $0xa88] sm:$0xff] %v873_v17  ;;  %v877_v19 = vld [vmem:[%s8207_s5 + $0x1528] sm:$0xff] }
  0xbf   : > { %876 = vst [vmem:[%s8215_s6 + $0xa90] sm:$0xff] %v875_v18  ;;  %v879_v20 = vld [vmem:[%s8207_s5 + $0x1540] sm:$0xff]  ;;  %v881_v21 = vld [vmem:[%s8207_s5 + $0x1548] sm:$0xff]  ;;  %878 = vst [vmem:[%s8215_s6 + $0xa98] sm:$0xff] %v877_v19 }
  0xc0   : > { %880 = vst [vmem:[%s8215_s6 + $0xaa0] sm:$0xff] %v879_v20  ;;  %882 = vst [vmem:[%s8215_s6 + $0xaa8] sm:$0xff] %v881_v21  ;;  %v883_v22 = vld [vmem:[%s8207_s5 + $0x1560] sm:$0xff]  ;;  %v885_v23 = vld [vmem:[%s8207_s5 + $0x1568] sm:$0xff] }
  0xc1   : > { %v887_v24 = vld [vmem:[%s8207_s5 + $0x1580] sm:$0xff]  ;;  %884 = vst [vmem:[%s8215_s6 + $0xab0] sm:$0xff] %v883_v22  ;;  %886 = vst [vmem:[%s8215_s6 + $0xab8] sm:$0xff] %v885_v23  ;;  %v889_v25 = vld [vmem:[%s8207_s5 + $0x1588] sm:$0xff] }
  0xc2   : > { %888 = vst [vmem:[%s8215_s6 + $0xac0] sm:$0xff] %v887_v24  ;;  %v891_v26 = vld [vmem:[%s8207_s5 + $0x15a0] sm:$0xff]  ;;  %v893_v27 = vld [vmem:[%s8207_s5 + $0x15a8] sm:$0xff]  ;;  %890 = vst [vmem:[%s8215_s6 + $0xac8] sm:$0xff] %v889_v25 }
  0xc3   : > { %892 = vst [vmem:[%s8215_s6 + $0xad0] sm:$0xff] %v891_v26  ;;  %894 = vst [vmem:[%s8215_s6 + $0xad8] sm:$0xff] %v893_v27  ;;  %v895_v28 = vld [vmem:[%s8207_s5 + $0x15c0] sm:$0xff]  ;;  %v897_v29 = vld [vmem:[%s8207_s5 + $0x15c8] sm:$0xff] }
  0xc4   : > { %v899_v30 = vld [vmem:[%s8207_s5 + $0x15e0] sm:$0xff]  ;;  %896 = vst [vmem:[%s8215_s6 + $0xae0] sm:$0xff] %v895_v28  ;;  %898 = vst [vmem:[%s8215_s6 + $0xae8] sm:$0xff] %v897_v29  ;;  %v901_v31 = vld [vmem:[%s8207_s5 + $0x15e8] sm:$0xff] }
  0xc5   : > { %900 = vst [vmem:[%s8215_s6 + $0xaf0] sm:$0xff] %v899_v30  ;;  %v903_v32 = vld [vmem:[%s8207_s5 + $0x1600] sm:$0xff]  ;;  %v905_v33 = vld [vmem:[%s8207_s5 + $0x1608] sm:$0xff]  ;;  %902 = vst [vmem:[%s8215_s6 + $0xaf8] sm:$0xff] %v901_v31 }
  0xc6   : > { %904 = vst [vmem:[%s8215_s6 + $0xb00] sm:$0xff] %v903_v32  ;;  %906 = vst [vmem:[%s8215_s6 + $0xb08] sm:$0xff] %v905_v33  ;;  %v907_v34 = vld [vmem:[%s8207_s5 + $0x1620] sm:$0xff]  ;;  %v909_v35 = vld [vmem:[%s8207_s5 + $0x1628] sm:$0xff] }
  0xc7   : > { %v911_v36 = vld [vmem:[%s8207_s5 + $0x1640] sm:$0xff]  ;;  %908 = vst [vmem:[%s8215_s6 + $0xb10] sm:$0xff] %v907_v34  ;;  %910 = vst [vmem:[%s8215_s6 + $0xb18] sm:$0xff] %v909_v35  ;;  %v913_v37 = vld [vmem:[%s8207_s5 + $0x1648] sm:$0xff] }
  0xc8   : > { %912 = vst [vmem:[%s8215_s6 + $0xb20] sm:$0xff] %v911_v36  ;;  %v915_v38 = vld [vmem:[%s8207_s5 + $0x1660] sm:$0xff]  ;;  %v917_v39 = vld [vmem:[%s8207_s5 + $0x1668] sm:$0xff]  ;;  %914 = vst [vmem:[%s8215_s6 + $0xb28] sm:$0xff] %v913_v37 }
  0xc9   : > { %916 = vst [vmem:[%s8215_s6 + $0xb30] sm:$0xff] %v915_v38  ;;  %918 = vst [vmem:[%s8215_s6 + $0xb38] sm:$0xff] %v917_v39  ;;  %v919_v40 = vld [vmem:[%s8207_s5 + $0x1680] sm:$0xff]  ;;  %v921_v41 = vld [vmem:[%s8207_s5 + $0x1688] sm:$0xff] }
  0xca   : > { %v923_v42 = vld [vmem:[%s8207_s5 + $0x16a0] sm:$0xff]  ;;  %920 = vst [vmem:[%s8215_s6 + $0xb40] sm:$0xff] %v919_v40  ;;  %922 = vst [vmem:[%s8215_s6 + $0xb48] sm:$0xff] %v921_v41  ;;  %v925_v43 = vld [vmem:[%s8207_s5 + $0x16a8] sm:$0xff] }
  0xcb   : > { %924 = vst [vmem:[%s8215_s6 + $0xb50] sm:$0xff] %v923_v42  ;;  %v927_v44 = vld [vmem:[%s8207_s5 + $0x16c0] sm:$0xff]  ;;  %v929_v45 = vld [vmem:[%s8207_s5 + $0x16c8] sm:$0xff]  ;;  %926 = vst [vmem:[%s8215_s6 + $0xb58] sm:$0xff] %v925_v43 }
  0xcc   : > { %928 = vst [vmem:[%s8215_s6 + $0xb60] sm:$0xff] %v927_v44  ;;  %930 = vst [vmem:[%s8215_s6 + $0xb68] sm:$0xff] %v929_v45  ;;  %v931_v46 = vld [vmem:[%s8207_s5 + $0x16e0] sm:$0xff]  ;;  %v933_v47 = vld [vmem:[%s8207_s5 + $0x16e8] sm:$0xff] }
  0xcd   : > { %v935_v48 = vld [vmem:[%s8207_s5 + $0x1700] sm:$0xff]  ;;  %932 = vst [vmem:[%s8215_s6 + $0xb70] sm:$0xff] %v931_v46  ;;  %934 = vst [vmem:[%s8215_s6 + $0xb78] sm:$0xff] %v933_v47  ;;  %v937_v49 = vld [vmem:[%s8207_s5 + $0x1708] sm:$0xff] }
  0xce   : > { %936 = vst [vmem:[%s8215_s6 + $0xb80] sm:$0xff] %v935_v48  ;;  %v939_v50 = vld [vmem:[%s8207_s5 + $0x1720] sm:$0xff]  ;;  %v941_v51 = vld [vmem:[%s8207_s5 + $0x1728] sm:$0xff]  ;;  %938 = vst [vmem:[%s8215_s6 + $0xb88] sm:$0xff] %v937_v49 }
  0xcf   : > { %940 = vst [vmem:[%s8215_s6 + $0xb90] sm:$0xff] %v939_v50  ;;  %942 = vst [vmem:[%s8215_s6 + $0xb98] sm:$0xff] %v941_v51  ;;  %v943_v52 = vld [vmem:[%s8207_s5 + $0x1740] sm:$0xff]  ;;  %v945_v53 = vld [vmem:[%s8207_s5 + $0x1748] sm:$0xff] }
  0xd0   : > { %v947_v54 = vld [vmem:[%s8207_s5 + $0x1760] sm:$0xff]  ;;  %944 = vst [vmem:[%s8215_s6 + $0xba0] sm:$0xff] %v943_v52  ;;  %946 = vst [vmem:[%s8215_s6 + $0xba8] sm:$0xff] %v945_v53  ;;  %v949_v55 = vld [vmem:[%s8207_s5 + $0x1768] sm:$0xff] }
  0xd1   : > { %948 = vst [vmem:[%s8215_s6 + $0xbb0] sm:$0xff] %v947_v54  ;;  %v951_v56 = vld [vmem:[%s8207_s5 + $0x1780] sm:$0xff]  ;;  %v953_v57 = vld [vmem:[%s8207_s5 + $0x1788] sm:$0xff]  ;;  %950 = vst [vmem:[%s8215_s6 + $0xbb8] sm:$0xff] %v949_v55 }
  0xd2   : > { %952 = vst [vmem:[%s8215_s6 + $0xbc0] sm:$0xff] %v951_v56  ;;  %954 = vst [vmem:[%s8215_s6 + $0xbc8] sm:$0xff] %v953_v57  ;;  %v955_v58 = vld [vmem:[%s8207_s5 + $0x17a0] sm:$0xff]  ;;  %v957_v59 = vld [vmem:[%s8207_s5 + $0x17a8] sm:$0xff] }
  0xd3   : > { %v959_v60 = vld [vmem:[%s8207_s5 + $0x17c0] sm:$0xff]  ;;  %956 = vst [vmem:[%s8215_s6 + $0xbd0] sm:$0xff] %v955_v58  ;;  %958 = vst [vmem:[%s8215_s6 + $0xbd8] sm:$0xff] %v957_v59  ;;  %v961_v61 = vld [vmem:[%s8207_s5 + $0x17c8] sm:$0xff] }
  0xd4   : > { %960 = vst [vmem:[%s8215_s6 + $0xbe0] sm:$0xff] %v959_v60  ;;  %v963_v62 = vld [vmem:[%s8207_s5 + $0x17e0] sm:$0xff]  ;;  %v965_v63 = vld [vmem:[%s8207_s5 + $0x17e8] sm:$0xff]  ;;  %962 = vst [vmem:[%s8215_s6 + $0xbe8] sm:$0xff] %v961_v61 }
  0xd5   : > { %964 = vst [vmem:[%s8215_s6 + $0xbf0] sm:$0xff] %v963_v62  ;;  %966 = vst [vmem:[%s8215_s6 + $0xbf8] sm:$0xff] %v965_v63  ;;  %v967_v0 = vld [vmem:[%s8207_s5 + $0x1800] sm:$0xff]  ;;  %v969_v1 = vld [vmem:[%s8207_s5 + $0x1808] sm:$0xff] }
  0xd6   : > { %v971_v2 = vld [vmem:[%s8207_s5 + $0x1820] sm:$0xff]  ;;  %968 = vst [vmem:[%s8215_s6 + $0xc00] sm:$0xff] %v967_v0  ;;  %970 = vst [vmem:[%s8215_s6 + $0xc08] sm:$0xff] %v969_v1  ;;  %v973_v3 = vld [vmem:[%s8207_s5 + $0x1828] sm:$0xff] }
  0xd7   : > { %972 = vst [vmem:[%s8215_s6 + $0xc10] sm:$0xff] %v971_v2  ;;  %v975_v4 = vld [vmem:[%s8207_s5 + $0x1840] sm:$0xff]  ;;  %v977_v5 = vld [vmem:[%s8207_s5 + $0x1848] sm:$0xff]  ;;  %974 = vst [vmem:[%s8215_s6 + $0xc18] sm:$0xff] %v973_v3 }
  0xd8   : > { %976 = vst [vmem:[%s8215_s6 + $0xc20] sm:$0xff] %v975_v4  ;;  %978 = vst [vmem:[%s8215_s6 + $0xc28] sm:$0xff] %v977_v5  ;;  %v979_v6 = vld [vmem:[%s8207_s5 + $0x1860] sm:$0xff]  ;;  %v981_v7 = vld [vmem:[%s8207_s5 + $0x1868] sm:$0xff] }
  0xd9   : > { %v983_v8 = vld [vmem:[%s8207_s5 + $0x1880] sm:$0xff]  ;;  %980 = vst [vmem:[%s8215_s6 + $0xc30] sm:$0xff] %v979_v6  ;;  %982 = vst [vmem:[%s8215_s6 + $0xc38] sm:$0xff] %v981_v7  ;;  %v985_v9 = vld [vmem:[%s8207_s5 + $0x1888] sm:$0xff] }
  0xda   : > { %984 = vst [vmem:[%s8215_s6 + $0xc40] sm:$0xff] %v983_v8  ;;  %v987_v10 = vld [vmem:[%s8207_s5 + $0x18a0] sm:$0xff]  ;;  %v989_v11 = vld [vmem:[%s8207_s5 + $0x18a8] sm:$0xff]  ;;  %986 = vst [vmem:[%s8215_s6 + $0xc48] sm:$0xff] %v985_v9 }
  0xdb   : > { %988 = vst [vmem:[%s8215_s6 + $0xc50] sm:$0xff] %v987_v10  ;;  %990 = vst [vmem:[%s8215_s6 + $0xc58] sm:$0xff] %v989_v11  ;;  %v991_v12 = vld [vmem:[%s8207_s5 + $0x18c0] sm:$0xff]  ;;  %v993_v13 = vld [vmem:[%s8207_s5 + $0x18c8] sm:$0xff] }
  0xdc   : > { %v995_v14 = vld [vmem:[%s8207_s5 + $0x18e0] sm:$0xff]  ;;  %992 = vst [vmem:[%s8215_s6 + $0xc60] sm:$0xff] %v991_v12  ;;  %994 = vst [vmem:[%s8215_s6 + $0xc68] sm:$0xff] %v993_v13  ;;  %v997_v15 = vld [vmem:[%s8207_s5 + $0x18e8] sm:$0xff] }
  0xdd   : > { %996 = vst [vmem:[%s8215_s6 + $0xc70] sm:$0xff] %v995_v14  ;;  %v999_v16 = vld [vmem:[%s8207_s5 + $0x1900] sm:$0xff]  ;;  %v1001_v17 = vld [vmem:[%s8207_s5 + $0x1908] sm:$0xff]  ;;  %998 = vst [vmem:[%s8215_s6 + $0xc78] sm:$0xff] %v997_v15 }
  0xde   : > { %1000 = vst [vmem:[%s8215_s6 + $0xc80] sm:$0xff] %v999_v16  ;;  %1002 = vst [vmem:[%s8215_s6 + $0xc88] sm:$0xff] %v1001_v17  ;;  %v1003_v18 = vld [vmem:[%s8207_s5 + $0x1920] sm:$0xff]  ;;  %v1005_v19 = vld [vmem:[%s8207_s5 + $0x1928] sm:$0xff] }
  0xdf   : > { %v1007_v20 = vld [vmem:[%s8207_s5 + $0x1940] sm:$0xff]  ;;  %1004 = vst [vmem:[%s8215_s6 + $0xc90] sm:$0xff] %v1003_v18  ;;  %1006 = vst [vmem:[%s8215_s6 + $0xc98] sm:$0xff] %v1005_v19  ;;  %v1009_v21 = vld [vmem:[%s8207_s5 + $0x1948] sm:$0xff] }
  0xe0   : > { %1008 = vst [vmem:[%s8215_s6 + $0xca0] sm:$0xff] %v1007_v20  ;;  %v1011_v22 = vld [vmem:[%s8207_s5 + $0x1960] sm:$0xff]  ;;  %v1013_v23 = vld [vmem:[%s8207_s5 + $0x1968] sm:$0xff]  ;;  %1010 = vst [vmem:[%s8215_s6 + $0xca8] sm:$0xff] %v1009_v21 }
  0xe1   : > { %1012 = vst [vmem:[%s8215_s6 + $0xcb0] sm:$0xff] %v1011_v22  ;;  %1014 = vst [vmem:[%s8215_s6 + $0xcb8] sm:$0xff] %v1013_v23  ;;  %v1015_v24 = vld [vmem:[%s8207_s5 + $0x1980] sm:$0xff]  ;;  %v1017_v25 = vld [vmem:[%s8207_s5 + $0x1988] sm:$0xff] }
  0xe2   : > { %v1019_v26 = vld [vmem:[%s8207_s5 + $0x19a0] sm:$0xff]  ;;  %1016 = vst [vmem:[%s8215_s6 + $0xcc0] sm:$0xff] %v1015_v24  ;;  %1018 = vst [vmem:[%s8215_s6 + $0xcc8] sm:$0xff] %v1017_v25  ;;  %v1021_v27 = vld [vmem:[%s8207_s5 + $0x19a8] sm:$0xff] }
  0xe3   : > { %1020 = vst [vmem:[%s8215_s6 + $0xcd0] sm:$0xff] %v1019_v26  ;;  %v1023_v28 = vld [vmem:[%s8207_s5 + $0x19c0] sm:$0xff]  ;;  %v1025_v29 = vld [vmem:[%s8207_s5 + $0x19c8] sm:$0xff]  ;;  %1022 = vst [vmem:[%s8215_s6 + $0xcd8] sm:$0xff] %v1021_v27 }
  0xe4   : > { %1024 = vst [vmem:[%s8215_s6 + $0xce0] sm:$0xff] %v1023_v28  ;;  %1026 = vst [vmem:[%s8215_s6 + $0xce8] sm:$0xff] %v1025_v29  ;;  %v1027_v30 = vld [vmem:[%s8207_s5 + $0x19e0] sm:$0xff]  ;;  %v1029_v31 = vld [vmem:[%s8207_s5 + $0x19e8] sm:$0xff] }
  0xe5   : > { %v1031_v32 = vld [vmem:[%s8207_s5 + $0x1a00] sm:$0xff]  ;;  %1028 = vst [vmem:[%s8215_s6 + $0xcf0] sm:$0xff] %v1027_v30  ;;  %1030 = vst [vmem:[%s8215_s6 + $0xcf8] sm:$0xff] %v1029_v31  ;;  %v1033_v33 = vld [vmem:[%s8207_s5 + $0x1a08] sm:$0xff] }
  0xe6   : > { %1032 = vst [vmem:[%s8215_s6 + $0xd00] sm:$0xff] %v1031_v32  ;;  %v1035_v34 = vld [vmem:[%s8207_s5 + $0x1a20] sm:$0xff]  ;;  %v1037_v35 = vld [vmem:[%s8207_s5 + $0x1a28] sm:$0xff]  ;;  %1034 = vst [vmem:[%s8215_s6 + $0xd08] sm:$0xff] %v1033_v33 }
  0xe7   : > { %1036 = vst [vmem:[%s8215_s6 + $0xd10] sm:$0xff] %v1035_v34  ;;  %1038 = vst [vmem:[%s8215_s6 + $0xd18] sm:$0xff] %v1037_v35  ;;  %v1039_v36 = vld [vmem:[%s8207_s5 + $0x1a40] sm:$0xff]  ;;  %v1041_v37 = vld [vmem:[%s8207_s5 + $0x1a48] sm:$0xff] }
  0xe8   : > { %v1043_v38 = vld [vmem:[%s8207_s5 + $0x1a60] sm:$0xff]  ;;  %1040 = vst [vmem:[%s8215_s6 + $0xd20] sm:$0xff] %v1039_v36  ;;  %1042 = vst [vmem:[%s8215_s6 + $0xd28] sm:$0xff] %v1041_v37  ;;  %v1045_v39 = vld [vmem:[%s8207_s5 + $0x1a68] sm:$0xff] }
  0xe9   : > { %1044 = vst [vmem:[%s8215_s6 + $0xd30] sm:$0xff] %v1043_v38  ;;  %v1047_v40 = vld [vmem:[%s8207_s5 + $0x1a80] sm:$0xff]  ;;  %v1049_v41 = vld [vmem:[%s8207_s5 + $0x1a88] sm:$0xff]  ;;  %1046 = vst [vmem:[%s8215_s6 + $0xd38] sm:$0xff] %v1045_v39 }
  0xea   : > { %1048 = vst [vmem:[%s8215_s6 + $0xd40] sm:$0xff] %v1047_v40  ;;  %1050 = vst [vmem:[%s8215_s6 + $0xd48] sm:$0xff] %v1049_v41  ;;  %v1051_v42 = vld [vmem:[%s8207_s5 + $0x1aa0] sm:$0xff]  ;;  %v1053_v43 = vld [vmem:[%s8207_s5 + $0x1aa8] sm:$0xff] }
  0xeb   : > { %v1055_v44 = vld [vmem:[%s8207_s5 + $0x1ac0] sm:$0xff]  ;;  %1052 = vst [vmem:[%s8215_s6 + $0xd50] sm:$0xff] %v1051_v42  ;;  %1054 = vst [vmem:[%s8215_s6 + $0xd58] sm:$0xff] %v1053_v43  ;;  %v1057_v45 = vld [vmem:[%s8207_s5 + $0x1ac8] sm:$0xff] }
  0xec   : > { %1056 = vst [vmem:[%s8215_s6 + $0xd60] sm:$0xff] %v1055_v44  ;;  %v1059_v46 = vld [vmem:[%s8207_s5 + $0x1ae0] sm:$0xff]  ;;  %v1061_v47 = vld [vmem:[%s8207_s5 + $0x1ae8] sm:$0xff]  ;;  %1058 = vst [vmem:[%s8215_s6 + $0xd68] sm:$0xff] %v1057_v45 }
  0xed   : > { %1060 = vst [vmem:[%s8215_s6 + $0xd70] sm:$0xff] %v1059_v46  ;;  %1062 = vst [vmem:[%s8215_s6 + $0xd78] sm:$0xff] %v1061_v47  ;;  %v1063_v48 = vld [vmem:[%s8207_s5 + $0x1b00] sm:$0xff]  ;;  %v1065_v49 = vld [vmem:[%s8207_s5 + $0x1b08] sm:$0xff] }
  0xee   : > { %v1067_v50 = vld [vmem:[%s8207_s5 + $0x1b20] sm:$0xff]  ;;  %1064 = vst [vmem:[%s8215_s6 + $0xd80] sm:$0xff] %v1063_v48  ;;  %1066 = vst [vmem:[%s8215_s6 + $0xd88] sm:$0xff] %v1065_v49  ;;  %v1069_v51 = vld [vmem:[%s8207_s5 + $0x1b28] sm:$0xff] }
  0xef   : > { %1068 = vst [vmem:[%s8215_s6 + $0xd90] sm:$0xff] %v1067_v50  ;;  %v1071_v52 = vld [vmem:[%s8207_s5 + $0x1b40] sm:$0xff]  ;;  %v1073_v53 = vld [vmem:[%s8207_s5 + $0x1b48] sm:$0xff]  ;;  %1070 = vst [vmem:[%s8215_s6 + $0xd98] sm:$0xff] %v1069_v51 }
  0xf0   : > { %1072 = vst [vmem:[%s8215_s6 + $0xda0] sm:$0xff] %v1071_v52  ;;  %1074 = vst [vmem:[%s8215_s6 + $0xda8] sm:$0xff] %v1073_v53  ;;  %v1075_v54 = vld [vmem:[%s8207_s5 + $0x1b60] sm:$0xff]  ;;  %v1077_v55 = vld [vmem:[%s8207_s5 + $0x1b68] sm:$0xff] }
  0xf1   : > { %v1079_v56 = vld [vmem:[%s8207_s5 + $0x1b80] sm:$0xff]  ;;  %1076 = vst [vmem:[%s8215_s6 + $0xdb0] sm:$0xff] %v1075_v54  ;;  %1078 = vst [vmem:[%s8215_s6 + $0xdb8] sm:$0xff] %v1077_v55  ;;  %v1081_v57 = vld [vmem:[%s8207_s5 + $0x1b88] sm:$0xff] }
  0xf2   : > { %1080 = vst [vmem:[%s8215_s6 + $0xdc0] sm:$0xff] %v1079_v56  ;;  %v1083_v58 = vld [vmem:[%s8207_s5 + $0x1ba0] sm:$0xff]  ;;  %v1085_v59 = vld [vmem:[%s8207_s5 + $0x1ba8] sm:$0xff]  ;;  %1082 = vst [vmem:[%s8215_s6 + $0xdc8] sm:$0xff] %v1081_v57 }
  0xf3   : > { %1084 = vst [vmem:[%s8215_s6 + $0xdd0] sm:$0xff] %v1083_v58  ;;  %1086 = vst [vmem:[%s8215_s6 + $0xdd8] sm:$0xff] %v1085_v59  ;;  %v1087_v60 = vld [vmem:[%s8207_s5 + $0x1bc0] sm:$0xff]  ;;  %v1089_v61 = vld [vmem:[%s8207_s5 + $0x1bc8] sm:$0xff] }
  0xf4   : > { %v1091_v62 = vld [vmem:[%s8207_s5 + $0x1be0] sm:$0xff]  ;;  %1088 = vst [vmem:[%s8215_s6 + $0xde0] sm:$0xff] %v1087_v60  ;;  %1090 = vst [vmem:[%s8215_s6 + $0xde8] sm:$0xff] %v1089_v61  ;;  %v1093_v63 = vld [vmem:[%s8207_s5 + $0x1be8] sm:$0xff] }
  0xf5   : > { %1092 = vst [vmem:[%s8215_s6 + $0xdf0] sm:$0xff] %v1091_v62  ;;  %v1095_v0 = vld [vmem:[%s8207_s5 + $0x1c00] sm:$0xff]  ;;  %v1097_v1 = vld [vmem:[%s8207_s5 + $0x1c08] sm:$0xff]  ;;  %1094 = vst [vmem:[%s8215_s6 + $0xdf8] sm:$0xff] %v1093_v63 }
  0xf6   : > { %1096 = vst [vmem:[%s8215_s6 + $0xe00] sm:$0xff] %v1095_v0  ;;  %1098 = vst [vmem:[%s8215_s6 + $0xe08] sm:$0xff] %v1097_v1  ;;  %v1099_v2 = vld [vmem:[%s8207_s5 + $0x1c20] sm:$0xff]  ;;  %v1101_v3 = vld [vmem:[%s8207_s5 + $0x1c28] sm:$0xff] }
  0xf7   : > { %v1103_v4 = vld [vmem:[%s8207_s5 + $0x1c40] sm:$0xff]  ;;  %1100 = vst [vmem:[%s8215_s6 + $0xe10] sm:$0xff] %v1099_v2  ;;  %1102 = vst [vmem:[%s8215_s6 + $0xe18] sm:$0xff] %v1101_v3  ;;  %v1105_v5 = vld [vmem:[%s8207_s5 + $0x1c48] sm:$0xff] }
  0xf8   : > { %1104 = vst [vmem:[%s8215_s6 + $0xe20] sm:$0xff] %v1103_v4  ;;  %v1107_v6 = vld [vmem:[%s8207_s5 + $0x1c60] sm:$0xff]  ;;  %v1109_v7 = vld [vmem:[%s8207_s5 + $0x1c68] sm:$0xff]  ;;  %1106 = vst [vmem:[%s8215_s6 + $0xe28] sm:$0xff] %v1105_v5 }
  0xf9   : > { %1108 = vst [vmem:[%s8215_s6 + $0xe30] sm:$0xff] %v1107_v6  ;;  %1110 = vst [vmem:[%s8215_s6 + $0xe38] sm:$0xff] %v1109_v7  ;;  %v1111_v8 = vld [vmem:[%s8207_s5 + $0x1c80] sm:$0xff]  ;;  %v1113_v9 = vld [vmem:[%s8207_s5 + $0x1c88] sm:$0xff] }
  0xfa   : > { %v1115_v10 = vld [vmem:[%s8207_s5 + $0x1ca0] sm:$0xff]  ;;  %1112 = vst [vmem:[%s8215_s6 + $0xe40] sm:$0xff] %v1111_v8  ;;  %1114 = vst [vmem:[%s8215_s6 + $0xe48] sm:$0xff] %v1113_v9  ;;  %v1117_v11 = vld [vmem:[%s8207_s5 + $0x1ca8] sm:$0xff] }
  0xfb   : > { %1116 = vst [vmem:[%s8215_s6 + $0xe50] sm:$0xff] %v1115_v10  ;;  %v1119_v12 = vld [vmem:[%s8207_s5 + $0x1cc0] sm:$0xff]  ;;  %v1121_v13 = vld [vmem:[%s8207_s5 + $0x1cc8] sm:$0xff]  ;;  %1118 = vst [vmem:[%s8215_s6 + $0xe58] sm:$0xff] %v1117_v11 }
  0xfc   : > { %1120 = vst [vmem:[%s8215_s6 + $0xe60] sm:$0xff] %v1119_v12  ;;  %1122 = vst [vmem:[%s8215_s6 + $0xe68] sm:$0xff] %v1121_v13  ;;  %v1123_v14 = vld [vmem:[%s8207_s5 + $0x1ce0] sm:$0xff]  ;;  %v1125_v15 = vld [vmem:[%s8207_s5 + $0x1ce8] sm:$0xff] }
  0xfd   : > { %v1127_v16 = vld [vmem:[%s8207_s5 + $0x1d00] sm:$0xff]  ;;  %1124 = vst [vmem:[%s8215_s6 + $0xe70] sm:$0xff] %v1123_v14  ;;  %1126 = vst [vmem:[%s8215_s6 + $0xe78] sm:$0xff] %v1125_v15  ;;  %v1129_v17 = vld [vmem:[%s8207_s5 + $0x1d08] sm:$0xff] }
  0xfe   : > { %1128 = vst [vmem:[%s8215_s6 + $0xe80] sm:$0xff] %v1127_v16  ;;  %v1131_v18 = vld [vmem:[%s8207_s5 + $0x1d20] sm:$0xff]  ;;  %v1133_v19 = vld [vmem:[%s8207_s5 + $0x1d28] sm:$0xff]  ;;  %1130 = vst [vmem:[%s8215_s6 + $0xe88] sm:$0xff] %v1129_v17 }
  0xff   : > { %1132 = vst [vmem:[%s8215_s6 + $0xe90] sm:$0xff] %v1131_v18  ;;  %1134 = vst [vmem:[%s8215_s6 + $0xe98] sm:$0xff] %v1133_v19  ;;  %v1135_v20 = vld [vmem:[%s8207_s5 + $0x1d40] sm:$0xff]  ;;  %v1137_v21 = vld [vmem:[%s8207_s5 + $0x1d48] sm:$0xff] }
 0x100   : > { %v1139_v22 = vld [vmem:[%s8207_s5 + $0x1d60] sm:$0xff]  ;;  %1136 = vst [vmem:[%s8215_s6 + $0xea0] sm:$0xff] %v1135_v20  ;;  %1138 = vst [vmem:[%s8215_s6 + $0xea8] sm:$0xff] %v1137_v21  ;;  %v1141_v23 = vld [vmem:[%s8207_s5 + $0x1d68] sm:$0xff] }
 0x101   : > { %1140 = vst [vmem:[%s8215_s6 + $0xeb0] sm:$0xff] %v1139_v22  ;;  %v1143_v24 = vld [vmem:[%s8207_s5 + $0x1d80] sm:$0xff]  ;;  %v1145_v25 = vld [vmem:[%s8207_s5 + $0x1d88] sm:$0xff]  ;;  %1142 = vst [vmem:[%s8215_s6 + $0xeb8] sm:$0xff] %v1141_v23 }
 0x102   : > { %1144 = vst [vmem:[%s8215_s6 + $0xec0] sm:$0xff] %v1143_v24  ;;  %1146 = vst [vmem:[%s8215_s6 + $0xec8] sm:$0xff] %v1145_v25  ;;  %v1147_v26 = vld [vmem:[%s8207_s5 + $0x1da0] sm:$0xff]  ;;  %v1149_v27 = vld [vmem:[%s8207_s5 + $0x1da8] sm:$0xff] }
 0x103   : > { %v1151_v28 = vld [vmem:[%s8207_s5 + $0x1dc0] sm:$0xff]  ;;  %1148 = vst [vmem:[%s8215_s6 + $0xed0] sm:$0xff] %v1147_v26  ;;  %1150 = vst [vmem:[%s8215_s6 + $0xed8] sm:$0xff] %v1149_v27  ;;  %v1153_v29 = vld [vmem:[%s8207_s5 + $0x1dc8] sm:$0xff] }
 0x104   : > { %1152 = vst [vmem:[%s8215_s6 + $0xee0] sm:$0xff] %v1151_v28  ;;  %v1155_v30 = vld [vmem:[%s8207_s5 + $0x1de0] sm:$0xff]  ;;  %v1157_v31 = vld [vmem:[%s8207_s5 + $0x1de8] sm:$0xff]  ;;  %1154 = vst [vmem:[%s8215_s6 + $0xee8] sm:$0xff] %v1153_v29 }
 0x105   : > { %1156 = vst [vmem:[%s8215_s6 + $0xef0] sm:$0xff] %v1155_v30  ;;  %1158 = vst [vmem:[%s8215_s6 + $0xef8] sm:$0xff] %v1157_v31  ;;  %v1159_v32 = vld [vmem:[%s8207_s5 + $0x1e00] sm:$0xff]  ;;  %v1161_v33 = vld [vmem:[%s8207_s5 + $0x1e08] sm:$0xff] }
 0x106   : > { %v1163_v34 = vld [vmem:[%s8207_s5 + $0x1e20] sm:$0xff]  ;;  %1160 = vst [vmem:[%s8215_s6 + $0xf00] sm:$0xff] %v1159_v32  ;;  %1162 = vst [vmem:[%s8215_s6 + $0xf08] sm:$0xff] %v1161_v33  ;;  %v1165_v35 = vld [vmem:[%s8207_s5 + $0x1e28] sm:$0xff] }
 0x107   : > { %1164 = vst [vmem:[%s8215_s6 + $0xf10] sm:$0xff] %v1163_v34  ;;  %v1167_v36 = vld [vmem:[%s8207_s5 + $0x1e40] sm:$0xff]  ;;  %v1169_v37 = vld [vmem:[%s8207_s5 + $0x1e48] sm:$0xff]  ;;  %1166 = vst [vmem:[%s8215_s6 + $0xf18] sm:$0xff] %v1165_v35 }
 0x108   : > { %1168 = vst [vmem:[%s8215_s6 + $0xf20] sm:$0xff] %v1167_v36  ;;  %1170 = vst [vmem:[%s8215_s6 + $0xf28] sm:$0xff] %v1169_v37  ;;  %v1171_v38 = vld [vmem:[%s8207_s5 + $0x1e60] sm:$0xff]  ;;  %v1173_v39 = vld [vmem:[%s8207_s5 + $0x1e68] sm:$0xff] }
 0x109   : > { %v1175_v40 = vld [vmem:[%s8207_s5 + $0x1e80] sm:$0xff]  ;;  %1172 = vst [vmem:[%s8215_s6 + $0xf30] sm:$0xff] %v1171_v38  ;;  %1174 = vst [vmem:[%s8215_s6 + $0xf38] sm:$0xff] %v1173_v39  ;;  %v1177_v41 = vld [vmem:[%s8207_s5 + $0x1e88] sm:$0xff] }
 0x10a   : > { %1176 = vst [vmem:[%s8215_s6 + $0xf40] sm:$0xff] %v1175_v40  ;;  %v1179_v42 = vld [vmem:[%s8207_s5 + $0x1ea0] sm:$0xff]  ;;  %v1181_v43 = vld [vmem:[%s8207_s5 + $0x1ea8] sm:$0xff]  ;;  %1178 = vst [vmem:[%s8215_s6 + $0xf48] sm:$0xff] %v1177_v41 }
 0x10b   : > { %1180 = vst [vmem:[%s8215_s6 + $0xf50] sm:$0xff] %v1179_v42  ;;  %1182 = vst [vmem:[%s8215_s6 + $0xf58] sm:$0xff] %v1181_v43  ;;  %v1183_v44 = vld [vmem:[%s8207_s5 + $0x1ec0] sm:$0xff]  ;;  %v1185_v45 = vld [vmem:[%s8207_s5 + $0x1ec8] sm:$0xff] }
 0x10c   : > { %v1187_v46 = vld [vmem:[%s8207_s5 + $0x1ee0] sm:$0xff]  ;;  %1184 = vst [vmem:[%s8215_s6 + $0xf60] sm:$0xff] %v1183_v44  ;;  %1186 = vst [vmem:[%s8215_s6 + $0xf68] sm:$0xff] %v1185_v45  ;;  %v1189_v47 = vld [vmem:[%s8207_s5 + $0x1ee8] sm:$0xff] }
 0x10d   : > { %1188 = vst [vmem:[%s8215_s6 + $0xf70] sm:$0xff] %v1187_v46  ;;  %v1191_v48 = vld [vmem:[%s8207_s5 + $0x1f00] sm:$0xff]  ;;  %v1193_v49 = vld [vmem:[%s8207_s5 + $0x1f08] sm:$0xff]  ;;  %1190 = vst [vmem:[%s8215_s6 + $0xf78] sm:$0xff] %v1189_v47 }
 0x10e   : > { %1192 = vst [vmem:[%s8215_s6 + $0xf80] sm:$0xff] %v1191_v48  ;;  %1194 = vst [vmem:[%s8215_s6 + $0xf88] sm:$0xff] %v1193_v49  ;;  %v1195_v50 = vld [vmem:[%s8207_s5 + $0x1f20] sm:$0xff]  ;;  %v1197_v51 = vld [vmem:[%s8207_s5 + $0x1f28] sm:$0xff] }
 0x10f   : > { %v1199_v52 = vld [vmem:[%s8207_s5 + $0x1f40] sm:$0xff]  ;;  %1196 = vst [vmem:[%s8215_s6 + $0xf90] sm:$0xff] %v1195_v50  ;;  %1198 = vst [vmem:[%s8215_s6 + $0xf98] sm:$0xff] %v1197_v51  ;;  %v1201_v53 = vld [vmem:[%s8207_s5 + $0x1f48] sm:$0xff] }
 0x110   : > { %1200 = vst [vmem:[%s8215_s6 + $0xfa0] sm:$0xff] %v1199_v52  ;;  %v1203_v54 = vld [vmem:[%s8207_s5 + $0x1f60] sm:$0xff]  ;;  %v1205_v55 = vld [vmem:[%s8207_s5 + $0x1f68] sm:$0xff]  ;;  %1202 = vst [vmem:[%s8215_s6 + $0xfa8] sm:$0xff] %v1201_v53 }
 0x111   : > { %1204 = vst [vmem:[%s8215_s6 + $0xfb0] sm:$0xff] %v1203_v54  ;;  %1206 = vst [vmem:[%s8215_s6 + $0xfb8] sm:$0xff] %v1205_v55  ;;  %v1207_v56 = vld [vmem:[%s8207_s5 + $0x1f80] sm:$0xff]  ;;  %v1209_v57 = vld [vmem:[%s8207_s5 + $0x1f88] sm:$0xff] }
 0x112   : > { %v1211_v58 = vld [vmem:[%s8207_s5 + $0x1fa0] sm:$0xff]  ;;  %1208 = vst [vmem:[%s8215_s6 + $0xfc0] sm:$0xff] %v1207_v56  ;;  %1210 = vst [vmem:[%s8215_s6 + $0xfc8] sm:$0xff] %v1209_v57  ;;  %v1213_v59 = vld [vmem:[%s8207_s5 + $0x1fa8] sm:$0xff] }
 0x113   : > { %1212 = vst [vmem:[%s8215_s6 + $0xfd0] sm:$0xff] %v1211_v58  ;;  %v1215_v60 = vld [vmem:[%s8207_s5 + $0x1fc0] sm:$0xff]  ;;  %v1217_v61 = vld [vmem:[%s8207_s5 + $0x1fc8] sm:$0xff]  ;;  %1214 = vst [vmem:[%s8215_s6 + $0xfd8] sm:$0xff] %v1213_v59 }
 0x114   : > { %1216 = vst [vmem:[%s8215_s6 + $0xfe0] sm:$0xff] %v1215_v60  ;;  %1218 = vst [vmem:[%s8215_s6 + $0xfe8] sm:$0xff] %v1217_v61  ;;  %v1219_v62 = vld [vmem:[%s8207_s5 + $0x1fe0] sm:$0xff]  ;;  %v1221_v63 = vld [vmem:[%s8207_s5 + $0x1fe8] sm:$0xff] }
 0x115   : > { %v1223_v0 = vld [vmem:[%s8207_s5 + $0x2000] sm:$0xff]  ;;  %1220 = vst [vmem:[%s8215_s6 + $0xff0] sm:$0xff] %v1219_v62  ;;  %1222 = vst [vmem:[%s8215_s6 + $0xff8] sm:$0xff] %v1221_v63  ;;  %v1225_v1 = vld [vmem:[%s8207_s5 + $0x2008] sm:$0xff] }
 0x116   : > { %1224 = vst [vmem:[%s8215_s6 + $0x1000] sm:$0xff] %v1223_v0  ;;  %v1227_v2 = vld [vmem:[%s8207_s5 + $0x2020] sm:$0xff]  ;;  %v1229_v3 = vld [vmem:[%s8207_s5 + $0x2028] sm:$0xff]  ;;  %1226 = vst [vmem:[%s8215_s6 + $0x1008] sm:$0xff] %v1225_v1 }
 0x117   : > { %1228 = vst [vmem:[%s8215_s6 + $0x1010] sm:$0xff] %v1227_v2  ;;  %1230 = vst [vmem:[%s8215_s6 + $0x1018] sm:$0xff] %v1229_v3  ;;  %v1231_v4 = vld [vmem:[%s8207_s5 + $0x2040] sm:$0xff]  ;;  %v1233_v5 = vld [vmem:[%s8207_s5 + $0x2048] sm:$0xff] }
 0x118   : > { %v1235_v6 = vld [vmem:[%s8207_s5 + $0x2060] sm:$0xff]  ;;  %1232 = vst [vmem:[%s8215_s6 + $0x1020] sm:$0xff] %v1231_v4  ;;  %1234 = vst [vmem:[%s8215_s6 + $0x1028] sm:$0xff] %v1233_v5  ;;  %v1237_v7 = vld [vmem:[%s8207_s5 + $0x2068] sm:$0xff] }
 0x119   : > { %1236 = vst [vmem:[%s8215_s6 + $0x1030] sm:$0xff] %v1235_v6  ;;  %v1239_v8 = vld [vmem:[%s8207_s5 + $0x2080] sm:$0xff]  ;;  %v1241_v9 = vld [vmem:[%s8207_s5 + $0x2088] sm:$0xff]  ;;  %1238 = vst [vmem:[%s8215_s6 + $0x1038] sm:$0xff] %v1237_v7 }
 0x11a   : > { %1240 = vst [vmem:[%s8215_s6 + $0x1040] sm:$0xff] %v1239_v8  ;;  %1242 = vst [vmem:[%s8215_s6 + $0x1048] sm:$0xff] %v1241_v9  ;;  %v1243_v10 = vld [vmem:[%s8207_s5 + $0x20a0] sm:$0xff]  ;;  %v1245_v11 = vld [vmem:[%s8207_s5 + $0x20a8] sm:$0xff] }
 0x11b   : > { %v1247_v12 = vld [vmem:[%s8207_s5 + $0x20c0] sm:$0xff]  ;;  %1244 = vst [vmem:[%s8215_s6 + $0x1050] sm:$0xff] %v1243_v10  ;;  %1246 = vst [vmem:[%s8215_s6 + $0x1058] sm:$0xff] %v1245_v11  ;;  %v1249_v13 = vld [vmem:[%s8207_s5 + $0x20c8] sm:$0xff] }
 0x11c   : > { %1248 = vst [vmem:[%s8215_s6 + $0x1060] sm:$0xff] %v1247_v12  ;;  %v1251_v14 = vld [vmem:[%s8207_s5 + $0x20e0] sm:$0xff]  ;;  %v1253_v15 = vld [vmem:[%s8207_s5 + $0x20e8] sm:$0xff]  ;;  %1250 = vst [vmem:[%s8215_s6 + $0x1068] sm:$0xff] %v1249_v13 }
 0x11d   : > { %1252 = vst [vmem:[%s8215_s6 + $0x1070] sm:$0xff] %v1251_v14  ;;  %1254 = vst [vmem:[%s8215_s6 + $0x1078] sm:$0xff] %v1253_v15  ;;  %v1255_v16 = vld [vmem:[%s8207_s5 + $0x2100] sm:$0xff]  ;;  %v1257_v17 = vld [vmem:[%s8207_s5 + $0x2108] sm:$0xff] }
 0x11e   : > { %v1259_v18 = vld [vmem:[%s8207_s5 + $0x2120] sm:$0xff]  ;;  %1256 = vst [vmem:[%s8215_s6 + $0x1080] sm:$0xff] %v1255_v16  ;;  %1258 = vst [vmem:[%s8215_s6 + $0x1088] sm:$0xff] %v1257_v17  ;;  %v1261_v19 = vld [vmem:[%s8207_s5 + $0x2128] sm:$0xff] }
 0x11f   : > { %1260 = vst [vmem:[%s8215_s6 + $0x1090] sm:$0xff] %v1259_v18  ;;  %v1263_v20 = vld [vmem:[%s8207_s5 + $0x2140] sm:$0xff]  ;;  %v1265_v21 = vld [vmem:[%s8207_s5 + $0x2148] sm:$0xff]  ;;  %1262 = vst [vmem:[%s8215_s6 + $0x1098] sm:$0xff] %v1261_v19 }
 0x120   : > { %1264 = vst [vmem:[%s8215_s6 + $0x10a0] sm:$0xff] %v1263_v20  ;;  %1266 = vst [vmem:[%s8215_s6 + $0x10a8] sm:$0xff] %v1265_v21  ;;  %v1267_v22 = vld [vmem:[%s8207_s5 + $0x2160] sm:$0xff]  ;;  %v1269_v23 = vld [vmem:[%s8207_s5 + $0x2168] sm:$0xff] }
 0x121   : > { %v1271_v24 = vld [vmem:[%s8207_s5 + $0x2180] sm:$0xff]  ;;  %1268 = vst [vmem:[%s8215_s6 + $0x10b0] sm:$0xff] %v1267_v22  ;;  %1270 = vst [vmem:[%s8215_s6 + $0x10b8] sm:$0xff] %v1269_v23  ;;  %v1273_v25 = vld [vmem:[%s8207_s5 + $0x2188] sm:$0xff] }
 0x122   : > { %1272 = vst [vmem:[%s8215_s6 + $0x10c0] sm:$0xff] %v1271_v24  ;;  %v1275_v26 = vld [vmem:[%s8207_s5 + $0x21a0] sm:$0xff]  ;;  %v1277_v27 = vld [vmem:[%s8207_s5 + $0x21a8] sm:$0xff]  ;;  %1274 = vst [vmem:[%s8215_s6 + $0x10c8] sm:$0xff] %v1273_v25 }
 0x123   : > { %1276 = vst [vmem:[%s8215_s6 + $0x10d0] sm:$0xff] %v1275_v26  ;;  %1278 = vst [vmem:[%s8215_s6 + $0x10d8] sm:$0xff] %v1277_v27  ;;  %v1279_v28 = vld [vmem:[%s8207_s5 + $0x21c0] sm:$0xff]  ;;  %v1281_v29 = vld [vmem:[%s8207_s5 + $0x21c8] sm:$0xff] }
 0x124   : > { %v1283_v30 = vld [vmem:[%s8207_s5 + $0x21e0] sm:$0xff]  ;;  %1280 = vst [vmem:[%s8215_s6 + $0x10e0] sm:$0xff] %v1279_v28  ;;  %1282 = vst [vmem:[%s8215_s6 + $0x10e8] sm:$0xff] %v1281_v29  ;;  %v1285_v31 = vld [vmem:[%s8207_s5 + $0x21e8] sm:$0xff] }
 0x125   : > { %1284 = vst [vmem:[%s8215_s6 + $0x10f0] sm:$0xff] %v1283_v30  ;;  %v1287_v32 = vld [vmem:[%s8207_s5 + $0x2200] sm:$0xff]  ;;  %v1289_v33 = vld [vmem:[%s8207_s5 + $0x2208] sm:$0xff]  ;;  %1286 = vst [vmem:[%s8215_s6 + $0x10f8] sm:$0xff] %v1285_v31 }
 0x126   : > { %1288 = vst [vmem:[%s8215_s6 + $0x1100] sm:$0xff] %v1287_v32  ;;  %1290 = vst [vmem:[%s8215_s6 + $0x1108] sm:$0xff] %v1289_v33  ;;  %v1291_v34 = vld [vmem:[%s8207_s5 + $0x2220] sm:$0xff]  ;;  %v1293_v35 = vld [vmem:[%s8207_s5 + $0x2228] sm:$0xff] }
 0x127   : > { %v1295_v36 = vld [vmem:[%s8207_s5 + $0x2240] sm:$0xff]  ;;  %1292 = vst [vmem:[%s8215_s6 + $0x1110] sm:$0xff] %v1291_v34  ;;  %1294 = vst [vmem:[%s8215_s6 + $0x1118] sm:$0xff] %v1293_v35  ;;  %v1297_v37 = vld [vmem:[%s8207_s5 + $0x2248] sm:$0xff] }
 0x128   : > { %1296 = vst [vmem:[%s8215_s6 + $0x1120] sm:$0xff] %v1295_v36  ;;  %v1299_v38 = vld [vmem:[%s8207_s5 + $0x2260] sm:$0xff]  ;;  %v1301_v39 = vld [vmem:[%s8207_s5 + $0x2268] sm:$0xff]  ;;  %1298 = vst [vmem:[%s8215_s6 + $0x1128] sm:$0xff] %v1297_v37 }
 0x129   : > { %1300 = vst [vmem:[%s8215_s6 + $0x1130] sm:$0xff] %v1299_v38  ;;  %1302 = vst [vmem:[%s8215_s6 + $0x1138] sm:$0xff] %v1301_v39  ;;  %v1303_v40 = vld [vmem:[%s8207_s5 + $0x2280] sm:$0xff]  ;;  %v1305_v41 = vld [vmem:[%s8207_s5 + $0x2288] sm:$0xff] }
 0x12a   : > { %v1307_v42 = vld [vmem:[%s8207_s5 + $0x22a0] sm:$0xff]  ;;  %1304 = vst [vmem:[%s8215_s6 + $0x1140] sm:$0xff] %v1303_v40  ;;  %1306 = vst [vmem:[%s8215_s6 + $0x1148] sm:$0xff] %v1305_v41  ;;  %v1309_v43 = vld [vmem:[%s8207_s5 + $0x22a8] sm:$0xff] }
 0x12b   : > { %1308 = vst [vmem:[%s8215_s6 + $0x1150] sm:$0xff] %v1307_v42  ;;  %v1311_v44 = vld [vmem:[%s8207_s5 + $0x22c0] sm:$0xff]  ;;  %v1313_v45 = vld [vmem:[%s8207_s5 + $0x22c8] sm:$0xff]  ;;  %1310 = vst [vmem:[%s8215_s6 + $0x1158] sm:$0xff] %v1309_v43 }
 0x12c   : > { %1312 = vst [vmem:[%s8215_s6 + $0x1160] sm:$0xff] %v1311_v44  ;;  %1314 = vst [vmem:[%s8215_s6 + $0x1168] sm:$0xff] %v1313_v45  ;;  %v1315_v46 = vld [vmem:[%s8207_s5 + $0x22e0] sm:$0xff]  ;;  %v1317_v47 = vld [vmem:[%s8207_s5 + $0x22e8] sm:$0xff] }
 0x12d   : > { %v1319_v48 = vld [vmem:[%s8207_s5 + $0x2300] sm:$0xff]  ;;  %1316 = vst [vmem:[%s8215_s6 + $0x1170] sm:$0xff] %v1315_v46  ;;  %1318 = vst [vmem:[%s8215_s6 + $0x1178] sm:$0xff] %v1317_v47  ;;  %v1321_v49 = vld [vmem:[%s8207_s5 + $0x2308] sm:$0xff] }
 0x12e   : > { %1320 = vst [vmem:[%s8215_s6 + $0x1180] sm:$0xff] %v1319_v48  ;;  %v1323_v50 = vld [vmem:[%s8207_s5 + $0x2320] sm:$0xff]  ;;  %v1325_v51 = vld [vmem:[%s8207_s5 + $0x2328] sm:$0xff]  ;;  %1322 = vst [vmem:[%s8215_s6 + $0x1188] sm:$0xff] %v1321_v49 }
 0x12f   : > { %1324 = vst [vmem:[%s8215_s6 + $0x1190] sm:$0xff] %v1323_v50  ;;  %1326 = vst [vmem:[%s8215_s6 + $0x1198] sm:$0xff] %v1325_v51  ;;  %v1327_v52 = vld [vmem:[%s8207_s5 + $0x2340] sm:$0xff]  ;;  %v1329_v53 = vld [vmem:[%s8207_s5 + $0x2348] sm:$0xff] }
 0x130   : > { %v1331_v54 = vld [vmem:[%s8207_s5 + $0x2360] sm:$0xff]  ;;  %1328 = vst [vmem:[%s8215_s6 + $0x11a0] sm:$0xff] %v1327_v52  ;;  %1330 = vst [vmem:[%s8215_s6 + $0x11a8] sm:$0xff] %v1329_v53  ;;  %v1333_v55 = vld [vmem:[%s8207_s5 + $0x2368] sm:$0xff] }
 0x131   : > { %1332 = vst [vmem:[%s8215_s6 + $0x11b0] sm:$0xff] %v1331_v54  ;;  %v1335_v56 = vld [vmem:[%s8207_s5 + $0x2380] sm:$0xff]  ;;  %v1337_v57 = vld [vmem:[%s8207_s5 + $0x2388] sm:$0xff]  ;;  %1334 = vst [vmem:[%s8215_s6 + $0x11b8] sm:$0xff] %v1333_v55 }
 0x132   : > { %1336 = vst [vmem:[%s8215_s6 + $0x11c0] sm:$0xff] %v1335_v56  ;;  %1338 = vst [vmem:[%s8215_s6 + $0x11c8] sm:$0xff] %v1337_v57  ;;  %v1339_v58 = vld [vmem:[%s8207_s5 + $0x23a0] sm:$0xff]  ;;  %v1341_v59 = vld [vmem:[%s8207_s5 + $0x23a8] sm:$0xff] }
 0x133   : > { %v1343_v60 = vld [vmem:[%s8207_s5 + $0x23c0] sm:$0xff]  ;;  %1340 = vst [vmem:[%s8215_s6 + $0x11d0] sm:$0xff] %v1339_v58  ;;  %1342 = vst [vmem:[%s8215_s6 + $0x11d8] sm:$0xff] %v1341_v59  ;;  %v1345_v61 = vld [vmem:[%s8207_s5 + $0x23c8] sm:$0xff] }
 0x134   : > { %1344 = vst [vmem:[%s8215_s6 + $0x11e0] sm:$0xff] %v1343_v60  ;;  %v1347_v62 = vld [vmem:[%s8207_s5 + $0x23e0] sm:$0xff]  ;;  %v1349_v63 = vld [vmem:[%s8207_s5 + $0x23e8] sm:$0xff]  ;;  %1346 = vst [vmem:[%s8215_s6 + $0x11e8] sm:$0xff] %v1345_v61 }
 0x135   : > { %1348 = vst [vmem:[%s8215_s6 + $0x11f0] sm:$0xff] %v1347_v62  ;;  %1350 = vst [vmem:[%s8215_s6 + $0x11f8] sm:$0xff] %v1349_v63 }
 0x136 PF: > { %p6043_p8 = scmp.ge.s32.totalorder %s8130_s19, 1  ;;  %p1355_p9 = scmp.lt.s32.totalorder %s8130_s19, 3 }
 0x138   : > { %p1356_p10 = pnand %p6043_p8, %p1355_p9 }
 0x139   : > { %s1362_s7 = sand.u32 (!%p1356_p10), 1, %s8114_s15   ;;  %v9369_v0 = vld [vmem:[%s10138_s0] sm:$0xff] (!%p1356_p10)  ;;  %vm5691_vm0 = vcmask (!%p1356_p10), 588800  }
 0x13a   : > { %1359 = sbr.rel (%p1356_p10) target bundleno = 1342 (0x53e), region = 55  ;;  %v9375_v1 = vcombine.high (!%p1356_p10), %v9369_v0, %v9369_v0  ;;  %s6044_s6 = sshll.u32 (!%p1356_p10), %s1362_s7, 6 }
 0x13b   : > { %s7181_s10 = smul.u32 (!%p1356_p10), 4608, %s1362_s7  ;;  %s10099_s15 = scalar_lea.vmem (!%p1356_p10), [#allocation4], %s6044_s6 }
 0x13c   : > { %1823 = vmatprep.mubr.bf16.mxu0 (!%p1356_p10), %v9375_v1  ;;  %1864 = vmatprep.mubr.bf16.mxu1 (!%p1356_p10), %v9375_v1 }
 0x13d   : > { %s9379_s11 = scalar_lea.vmem (!%p1356_p10), [#allocation3], %s7181_s10 }
 0x13e   : > { %v7226_v2 = vld [vmem:[%s9379_s11 + $0x4] ss:$16 sps:$4 sm:$0xff] (!%p1356_p10)   ;;  %v7228_v3 = vld [vmem:[%s9379_s11 + $0xc] ss:$16 sps:$4 sm:$0xff] (!%p1356_p10)   ;;  %v7230_v4 = vld [vmem:[%s9379_s11] ss:$16 sps:$4 sm:$0xff] (!%p1356_p10)  }
 0x13f   : > { %1791 = vmatprep.subr.bf16.mxu0 (!%p1356_p10), %v7226_v2  ;;  %v7231_v5 = vld [vmem:[%s9379_s11 + $0x8] ss:$16 sps:$4 sm:$0xff] (!%p1356_p10)   ;;  %1832 = vmatprep.subr.bf16.mxu1 (!%p1356_p10), %v7228_v3  ;;  %v7232_v6 = vld [vmem:[%s9379_s11 + $0x24] ss:$16 sps:$4 sm:$0xff] (!%p1356_p10)   ;;  %v7234_v7 = vld [vmem:[%s9379_s11 + $0x2c] ss:$16 sps:$4 sm:$0xff] (!%p1356_p10)  }
 0x140   : > { %1792 = vmatpush1.bf16.msra.mxu0 (!%p1356_p10), %v7230_v4  ;;  %1833 = vmatpush1.bf16.msra.mxu1 (!%p1356_p10), %v7231_v5  ;;  %v7236_v8 = vld [vmem:[%s9379_s11 + $0x20] ss:$16 sps:$4 sm:$0xff] (!%p1356_p10)   ;;  %v7237_v9 = vld [vmem:[%s9379_s11 + $0x28] ss:$16 sps:$4 sm:$0xff] (!%p1356_p10)   ;;  %v7238_v10 = vld [vmem:[%s9379_s11 + $0x44] ss:$16 sps:$4 sm:$0xff] (!%p1356_p10)  }
 0x141   : > { %1793 = vmatprep.subr.bf16.mxu0 %v7232_v6  ;;  %1834 = vmatprep.subr.bf16.mxu1 %v7234_v7  ;;  %v7240_v11 = vld [vmem:[%s9379_s11 + $0x4c] ss:$16 sps:$4 sm:$0xff]   ;;  %v7242_v12 = vld [vmem:[%s9379_s11 + $0x40] ss:$16 sps:$4 sm:$0xff]   ;;  %v7243_v13 = vld [vmem:[%s9379_s11 + $0x48] ss:$16 sps:$4 sm:$0xff]   ;;  %v9449_v6 = vcombine.low %v9369_v0, %v9369_v0 }
 0x142   : > { %v7244_v14 = vld [vmem:[%s9379_s11 + $0x64] ss:$16 sps:$4 sm:$0xff]   ;;  %v7246_v15 = vld [vmem:[%s9379_s11 + $0x6c] ss:$16 sps:$4 sm:$0xff]   ;;  %v7248_v16 = vld [vmem:[%s9379_s11 + $0x60] ss:$16 sps:$4 sm:$0xff]  }
 0x143   : > { %v7249_v17 = vld [vmem:[%s9379_s11 + $0x68] ss:$16 sps:$4 sm:$0xff]   ;;  %v7250_v18 = vld [vmem:[%s9379_s11 + $0x84] ss:$16 sps:$4 sm:$0xff]   ;;  %v7252_v19 = vld [vmem:[%s9379_s11 + $0x8c] ss:$16 sps:$4 sm:$0xff]  }
 0x144   : > { %1794 = vmatpush1.bf16.msra.mxu0 %v7236_v8  ;;  %1835 = vmatpush1.bf16.msra.mxu1 %v7237_v9  ;;  %v7254_v20 = vld [vmem:[%s9379_s11 + $0x80] ss:$16 sps:$4 sm:$0xff]   ;;  %v7255_v21 = vld [vmem:[%s9379_s11 + $0x88] ss:$16 sps:$4 sm:$0xff]   ;;  %v7256_v22 = vld [vmem:[%s9379_s11 + $0xa4] ss:$16 sps:$4 sm:$0xff]  }
 0x145   : > { %1795 = vmatprep.subr.bf16.mxu0 %v7238_v10  ;;  %1836 = vmatprep.subr.bf16.mxu1 %v7240_v11  ;;  %v7258_v23 = vld [vmem:[%s9379_s11 + $0xac] ss:$16 sps:$4 sm:$0xff]   ;;  %v7260_v24 = vld [vmem:[%s9379_s11 + $0xa0] ss:$16 sps:$4 sm:$0xff]   ;;  %v7261_v25 = vld [vmem:[%s9379_s11 + $0xa8] ss:$16 sps:$4 sm:$0xff]  }
 0x146   : > { %v7262_v26 = vld [vmem:[%s9379_s11 + $0xc4] ss:$16 sps:$4 sm:$0xff]   ;;  %v7264_v27 = vld [vmem:[%s9379_s11 + $0xcc] ss:$16 sps:$4 sm:$0xff]   ;;  %v7266_v28 = vld [vmem:[%s9379_s11 + $0xc0] ss:$16 sps:$4 sm:$0xff]  }
 0x147   : > { %v7267_v29 = vld [vmem:[%s9379_s11 + $0xc8] ss:$16 sps:$4 sm:$0xff]   ;;  %v7268_v30 = vld [vmem:[%s9379_s11 + $0xe4] ss:$16 sps:$4 sm:$0xff]   ;;  %v7270_v31 = vld [vmem:[%s9379_s11 + $0xec] ss:$16 sps:$4 sm:$0xff]  }
 0x148   : > { %1796 = vmatpush1.bf16.msra.mxu0 %v7242_v12  ;;  %1837 = vmatpush1.bf16.msra.mxu1 %v7243_v13  ;;  %v7272_v32 = vld [vmem:[%s9379_s11 + $0xe0] ss:$16 sps:$4 sm:$0xff]   ;;  %v7273_v33 = vld [vmem:[%s9379_s11 + $0xe8] ss:$16 sps:$4 sm:$0xff]   ;;  %v7274_v34 = vld [vmem:[%s9379_s11 + $0x104] ss:$16 sps:$4 sm:$0xff]  }
 0x149   : > { %1797 = vmatprep.subr.bf16.mxu0 %v7244_v14  ;;  %1838 = vmatprep.subr.bf16.mxu1 %v7246_v15  ;;  %v7276_v35 = vld [vmem:[%s9379_s11 + $0x10c] ss:$16 sps:$4 sm:$0xff]   ;;  %v7278_v36 = vld [vmem:[%s9379_s11 + $0x100] ss:$16 sps:$4 sm:$0xff]   ;;  %v7279_v37 = vld [vmem:[%s9379_s11 + $0x108] ss:$16 sps:$4 sm:$0xff]  }
 0x14a   : > { %v7280_v38 = vld [vmem:[%s9379_s11 + $0x124] ss:$16 sps:$4 sm:$0xff]   ;;  %v7282_v39 = vld [vmem:[%s9379_s11 + $0x12c] ss:$16 sps:$4 sm:$0xff]   ;;  %v7284_v40 = vld [vmem:[%s9379_s11 + $0x120] ss:$16 sps:$4 sm:$0xff]  }
 0x14b   : > { %v7285_v41 = vld [vmem:[%s9379_s11 + $0x128] ss:$16 sps:$4 sm:$0xff]   ;;  %v7286_v42 = vld [vmem:[%s9379_s11 + $0x144] ss:$16 sps:$4 sm:$0xff]   ;;  %v7288_v43 = vld [vmem:[%s9379_s11 + $0x14c] ss:$16 sps:$4 sm:$0xff]  }
 0x14c   : > { %1798 = vmatpush1.bf16.msra.mxu0 %v7248_v16  ;;  %1839 = vmatpush1.bf16.msra.mxu1 %v7249_v17  ;;  %v7290_v44 = vld [vmem:[%s9379_s11 + $0x140] ss:$16 sps:$4 sm:$0xff]   ;;  %v7291_v45 = vld [vmem:[%s9379_s11 + $0x148] ss:$16 sps:$4 sm:$0xff]   ;;  %v7292_v46 = vld [vmem:[%s9379_s11 + $0x164] ss:$16 sps:$4 sm:$0xff]  }
 0x14d   : > { %1799 = vmatprep.subr.bf16.mxu0 %v7250_v18  ;;  %1840 = vmatprep.subr.bf16.mxu1 %v7252_v19  ;;  %v7294_v47 = vld [vmem:[%s9379_s11 + $0x16c] ss:$16 sps:$4 sm:$0xff]   ;;  %v7296_v48 = vld [vmem:[%s9379_s11 + $0x160] ss:$16 sps:$4 sm:$0xff]   ;;  %v7297_v49 = vld [vmem:[%s9379_s11 + $0x168] ss:$16 sps:$4 sm:$0xff]  }
 0x14e   : > { %v7298_v50 = vld [vmem:[%s9379_s11 + $0x184] ss:$16 sps:$4 sm:$0xff]   ;;  %v7300_v51 = vld [vmem:[%s9379_s11 + $0x18c] ss:$16 sps:$4 sm:$0xff]   ;;  %v7302_v52 = vld [vmem:[%s9379_s11 + $0x180] ss:$16 sps:$4 sm:$0xff]  }
 0x14f   : > { %v7303_v53 = vld [vmem:[%s9379_s11 + $0x188] ss:$16 sps:$4 sm:$0xff]   ;;  %v7304_v54 = vld [vmem:[%s9379_s11 + $0x1a4] ss:$16 sps:$4 sm:$0xff]   ;;  %v7306_v55 = vld [vmem:[%s9379_s11 + $0x1ac] ss:$16 sps:$4 sm:$0xff]  }
 0x150   : > { %1800 = vmatpush1.bf16.msra.mxu0 %v7254_v20  ;;  %1841 = vmatpush1.bf16.msra.mxu1 %v7255_v21  ;;  %v7308_v56 = vld [vmem:[%s9379_s11 + $0x1a0] ss:$16 sps:$4 sm:$0xff]   ;;  %v7309_v57 = vld [vmem:[%s9379_s11 + $0x1a8] ss:$16 sps:$4 sm:$0xff]   ;;  %v7310_v58 = vld [vmem:[%s9379_s11 + $0x1c4] ss:$16 sps:$4 sm:$0xff]  }
 0x151   : > { %1801 = vmatprep.subr.bf16.mxu0 %v7256_v22  ;;  %1842 = vmatprep.subr.bf16.mxu1 %v7258_v23  ;;  %v7312_v59 = vld [vmem:[%s9379_s11 + $0x1cc] ss:$16 sps:$4 sm:$0xff]   ;;  %v7314_v60 = vld [vmem:[%s9379_s11 + $0x1c0] ss:$16 sps:$4 sm:$0xff]   ;;  %v7315_v61 = vld [vmem:[%s9379_s11 + $0x1c8] ss:$16 sps:$4 sm:$0xff]  }
 0x152   : > { %v7316_v62 = vld [vmem:[%s9379_s11 + $0x1e4] ss:$16 sps:$4 sm:$0xff]   ;;  %v7318_v63 = vld [vmem:[%s9379_s11 + $0x1ec] ss:$16 sps:$4 sm:$0xff]   ;;  %v7320_v2 = vld [vmem:[%s9379_s11 + $0x1e0] ss:$16 sps:$4 sm:$0xff]  }
 0x153   : > { %v7321_v3 = vld [vmem:[%s9379_s11 + $0x1e8] ss:$16 sps:$4 sm:$0xff]   ;;  %v7326_v4 = vld [vmem:[%s9379_s11 + $0x204] ss:$16 sps:$4 sm:$0xff]   ;;  %v7329_v5 = vld [vmem:[%s9379_s11 + $0x20c] ss:$16 sps:$4 sm:$0xff]  }
 0x154   : > { %1802 = vmatpush1.bf16.msra.mxu0 %v7260_v24  ;;  %1843 = vmatpush1.bf16.msra.mxu1 %v7261_v25  ;;  %v7324_v7 = vld [vmem:[%s9379_s11 + $0x200] ss:$16 sps:$4 sm:$0xff]   ;;  %v7327_v8 = vld [vmem:[%s9379_s11 + $0x208] ss:$16 sps:$4 sm:$0xff]   ;;  %v7332_v9 = vld [vmem:[%s9379_s11 + $0x224] ss:$16 sps:$4 sm:$0xff]  }
 0x155   : > { %1803 = vmatprep.subr.bf16.mxu0 %v7262_v26  ;;  %1844 = vmatprep.subr.bf16.mxu1 %v7264_v27  ;;  %v7335_v10 = vld [vmem:[%s9379_s11 + $0x22c] ss:$16 sps:$4 sm:$0xff]   ;;  %v7330_v11 = vld [vmem:[%s9379_s11 + $0x220] ss:$16 sps:$4 sm:$0xff]   ;;  %v7333_v12 = vld [vmem:[%s9379_s11 + $0x228] ss:$16 sps:$4 sm:$0xff]  }
 0x156   : > { %v7338_v0 = vld [vmem:[%s9379_s11 + $0x244] ss:$16 sps:$4 sm:$0xff]   ;;  %v7341_v13 = vld [vmem:[%s9379_s11 + $0x24c] ss:$16 sps:$4 sm:$0xff]   ;;  %v7336_v14 = vld [vmem:[%s9379_s11 + $0x240] ss:$16 sps:$4 sm:$0xff]  }
 0x157   : > { %v7339_v15 = vld [vmem:[%s9379_s11 + $0x248] ss:$16 sps:$4 sm:$0xff]   ;;  %v7344_v16 = vld [vmem:[%s9379_s11 + $0x264] ss:$16 sps:$4 sm:$0xff]   ;;  %v7347_v17 = vld [vmem:[%s9379_s11 + $0x26c] ss:$16 sps:$4 sm:$0xff]  }
 0x158   : > { %1804 = vmatpush1.bf16.msra.mxu0 %v7266_v28  ;;  %1845 = vmatpush1.bf16.msra.mxu1 %v7267_v29  ;;  %v7342_v18 = vld [vmem:[%s9379_s11 + $0x260] ss:$16 sps:$4 sm:$0xff]   ;;  %v7345_v19 = vld [vmem:[%s9379_s11 + $0x268] ss:$16 sps:$4 sm:$0xff]   ;;  %v7350_v20 = vld [vmem:[%s9379_s11 + $0x284] ss:$16 sps:$4 sm:$0xff]  }
 0x159   : > { %1805 = vmatprep.subr.bf16.mxu0 %v7268_v30  ;;  %1846 = vmatprep.subr.bf16.mxu1 %v7270_v31  ;;  %v7353_v21 = vld [vmem:[%s9379_s11 + $0x28c] ss:$16 sps:$4 sm:$0xff]   ;;  %v7348_v22 = vld [vmem:[%s9379_s11 + $0x280] ss:$16 sps:$4 sm:$0xff]   ;;  %v7351_v23 = vld [vmem:[%s9379_s11 + $0x288] ss:$16 sps:$4 sm:$0xff]  }
 0x15a   : > { %v7356_v24 = vld [vmem:[%s9379_s11 + $0x2a4] ss:$16 sps:$4 sm:$0xff]   ;;  %v7359_v25 = vld [vmem:[%s9379_s11 + $0x2ac] ss:$16 sps:$4 sm:$0xff]   ;;  %v7354_v26 = vld [vmem:[%s9379_s11 + $0x2a0] ss:$16 sps:$4 sm:$0xff]  }
 0x15b   : > { %v7357_v27 = vld [vmem:[%s9379_s11 + $0x2a8] ss:$16 sps:$4 sm:$0xff]   ;;  %v7362_v28 = vld [vmem:[%s9379_s11 + $0x2c4] ss:$16 sps:$4 sm:$0xff]   ;;  %v7365_v29 = vld [vmem:[%s9379_s11 + $0x2cc] ss:$16 sps:$4 sm:$0xff]  }
 0x15c   : > { %1806 = vmatpush1.bf16.msra.mxu0 %v7272_v32  ;;  %1847 = vmatpush1.bf16.msra.mxu1 %v7273_v33  ;;  %v7360_v30 = vld [vmem:[%s9379_s11 + $0x2c0] ss:$16 sps:$4 sm:$0xff]   ;;  %v7363_v31 = vld [vmem:[%s9379_s11 + $0x2c8] ss:$16 sps:$4 sm:$0xff]   ;;  %v7368_v32 = vld [vmem:[%s9379_s11 + $0x2e4] ss:$16 sps:$4 sm:$0xff]  }
 0x15d   : > { %1807 = vmatprep.subr.bf16.mxu0 %v7274_v34  ;;  %1848 = vmatprep.subr.bf16.mxu1 %v7276_v35  ;;  %v7371_v33 = vld [vmem:[%s9379_s11 + $0x2ec] ss:$16 sps:$4 sm:$0xff]   ;;  %v7366_v34 = vld [vmem:[%s9379_s11 + $0x2e0] ss:$16 sps:$4 sm:$0xff]   ;;  %v7369_v35 = vld [vmem:[%s9379_s11 + $0x2e8] ss:$16 sps:$4 sm:$0xff]  }
 0x15e   : > { %s7147_s7 = sshll.u32 (%p8194_p6), %s8122_s17, 5 }
 0x15f   : > { %s5921_s10 = scalar_lea.vmem (%p8194_p6), %s10142_s4, %s7147_s7 }
 0x160   : > { %1808 = vmatpush1.bf16.msra.mxu0 %v7278_v36  ;;  %1849 = vmatpush1.bf16.msra.mxu1 %v7279_v37  ;;  %v7374_v36 = vld [vmem:[%s9379_s11 + $0x304] ss:$16 sps:$4 sm:$0xff]   ;;  %v7377_v37 = vld [vmem:[%s9379_s11 + $0x30c] ss:$16 sps:$4 sm:$0xff]  }
 0x161   : > { %1809 = vmatprep.subr.bf16.mxu0 %v7280_v38  ;;  %1850 = vmatprep.subr.bf16.mxu1 %v7282_v39  ;;  %v7372_v38 = vld [vmem:[%s9379_s11 + $0x300] ss:$16 sps:$4 sm:$0xff]   ;;  %v7375_v39 = vld [vmem:[%s9379_s11 + $0x308] ss:$16 sps:$4 sm:$0xff]  }
 0x164   : > { %1810 = vmatpush1.bf16.msra.mxu0 %v7284_v40  ;;  %1851 = vmatpush1.bf16.msra.mxu1 %v7285_v41  ;;  %v7380_v40 = vld [vmem:[%s9379_s11 + $0x324] ss:$16 sps:$4 sm:$0xff]   ;;  %v7383_v41 = vld [vmem:[%s9379_s11 + $0x32c] ss:$16 sps:$4 sm:$0xff]  }
 0x165   : > { %1811 = vmatprep.subr.bf16.mxu0 %v7286_v42  ;;  %1852 = vmatprep.subr.bf16.mxu1 %v7288_v43  ;;  %v7378_v42 = vld [vmem:[%s9379_s11 + $0x320] ss:$16 sps:$4 sm:$0xff]   ;;  %v7381_v43 = vld [vmem:[%s9379_s11 + $0x328] ss:$16 sps:$4 sm:$0xff]  }
 0x168   : > { %1812 = vmatpush1.bf16.msra.mxu0 %v7290_v44  ;;  %1853 = vmatpush1.bf16.msra.mxu1 %v7291_v45  ;;  %v7386_v44 = vld [vmem:[%s9379_s11 + $0x344] ss:$16 sps:$4 sm:$0xff]   ;;  %v7389_v45 = vld [vmem:[%s9379_s11 + $0x34c] ss:$16 sps:$4 sm:$0xff]  }
 0x169   : > { %1813 = vmatprep.subr.bf16.mxu0 %v7292_v46  ;;  %1854 = vmatprep.subr.bf16.mxu1 %v7294_v47  ;;  %v7384_v46 = vld [vmem:[%s9379_s11 + $0x340] ss:$16 sps:$4 sm:$0xff]   ;;  %v7387_v47 = vld [vmem:[%s9379_s11 + $0x348] ss:$16 sps:$4 sm:$0xff]  }
 0x16c   : > { %1814 = vmatpush1.bf16.msra.mxu0 %v7296_v48  ;;  %1855 = vmatpush1.bf16.msra.mxu1 %v7297_v49  ;;  %v7392_v48 = vld [vmem:[%s9379_s11 + $0x364] ss:$16 sps:$4 sm:$0xff]   ;;  %v7395_v49 = vld [vmem:[%s9379_s11 + $0x36c] ss:$16 sps:$4 sm:$0xff]  }
 0x16d   : > { %1815 = vmatprep.subr.bf16.mxu0 %v7298_v50  ;;  %1856 = vmatprep.subr.bf16.mxu1 %v7300_v51  ;;  %v7390_v50 = vld [vmem:[%s9379_s11 + $0x360] ss:$16 sps:$4 sm:$0xff]   ;;  %v7393_v51 = vld [vmem:[%s9379_s11 + $0x368] ss:$16 sps:$4 sm:$0xff]  }
 0x170   : > { %1816 = vmatpush1.bf16.msra.mxu0 %v7302_v52  ;;  %1857 = vmatpush1.bf16.msra.mxu1 %v7303_v53  ;;  %v7398_v52 = vld [vmem:[%s9379_s11 + $0x384] ss:$16 sps:$4 sm:$0xff]   ;;  %v7401_v53 = vld [vmem:[%s9379_s11 + $0x38c] ss:$16 sps:$4 sm:$0xff]  }
 0x171   : > { %1817 = vmatprep.subr.bf16.mxu0 %v7304_v54  ;;  %1858 = vmatprep.subr.bf16.mxu1 %v7306_v55  ;;  %v7396_v54 = vld [vmem:[%s9379_s11 + $0x380] ss:$16 sps:$4 sm:$0xff]   ;;  %v7399_v55 = vld [vmem:[%s9379_s11 + $0x388] ss:$16 sps:$4 sm:$0xff]  }
 0x174   : > { %1818 = vmatpush1.bf16.msra.mxu0 %v7308_v56  ;;  %1859 = vmatpush1.bf16.msra.mxu1 %v7309_v57  ;;  %v7404_v56 = vld [vmem:[%s9379_s11 + $0x3a4] ss:$16 sps:$4 sm:$0xff]   ;;  %v7407_v57 = vld [vmem:[%s9379_s11 + $0x3ac] ss:$16 sps:$4 sm:$0xff]  }
 0x175   : > { %1819 = vmatprep.subr.bf16.mxu0 %v7310_v58  ;;  %1860 = vmatprep.subr.bf16.mxu1 %v7312_v59  ;;  %v7402_v58 = vld [vmem:[%s9379_s11 + $0x3a0] ss:$16 sps:$4 sm:$0xff]   ;;  %v7405_v59 = vld [vmem:[%s9379_s11 + $0x3a8] ss:$16 sps:$4 sm:$0xff]  }
 0x178   : > { %1820 = vmatpush1.bf16.msra.mxu0 %v7314_v60  ;;  %1861 = vmatpush1.bf16.msra.mxu1 %v7315_v61  ;;  %v7410_v60 = vld [vmem:[%s9379_s11 + $0x3c4] ss:$16 sps:$4 sm:$0xff]   ;;  %v7413_v61 = vld [vmem:[%s9379_s11 + $0x3cc] ss:$16 sps:$4 sm:$0xff]  }
 0x179   : > { %1821 = vmatprep.subr.bf16.mxu0 %v7316_v62  ;;  %1862 = vmatprep.subr.bf16.mxu1 %v7318_v63  ;;  %v7408_v62 = vld [vmem:[%s9379_s11 + $0x3c0] ss:$16 sps:$4 sm:$0xff]   ;;  %v7411_v63 = vld [vmem:[%s9379_s11 + $0x3c8] ss:$16 sps:$4 sm:$0xff]  }
 0x17c   : > { %1822 = vmatpush1.bf16.msra.mxu0 %v7320_v2  ;;  %1863 = vmatpush1.bf16.msra.mxu1 %v7321_v3  ;;  %v7416_v2 = vld [vmem:[%s9379_s11 + $0x3e4] ss:$16 sps:$4 sm:$0xff]   ;;  %v7419_v3 = vld [vmem:[%s9379_s11 + $0x3ec] ss:$16 sps:$4 sm:$0xff]  }
 0x17d   : > { %2262 = vmatprep.subr.bf16.mxu0 %v7326_v4  ;;  %2303 = vmatprep.subr.bf16.mxu1 %v7329_v5  ;;  %v7414_v4 = vld [vmem:[%s9379_s11 + $0x3e0] ss:$16 sps:$4 sm:$0xff]   ;;  %v7417_v5 = vld [vmem:[%s9379_s11 + $0x3e8] ss:$16 sps:$4 sm:$0xff]  }
 0x17f   : > { %1824 = vmatmul.mubr.bf16.vlgmr.msra.gmra.mrb[0].mxu0 %v9449_v6  ;;  %1865 = vmatmul.mubr.bf16.vlgmr.msra.gmra.mrb[0].mxu1 %v9449_v6 }
 0x180   : > { %2263 = vmatpush1.bf16.msra.mxu0 %v7324_v7  ;;  %2304 = vmatpush1.bf16.msra.mxu1 %v7327_v8  ;;  %v7422_v7 = vld [vmem:[%s9379_s11 + $0x404] ss:$16 sps:$4 sm:$0xff]   ;;  %v7425_v8 = vld [vmem:[%s9379_s11 + $0x40c] ss:$16 sps:$4 sm:$0xff]  }
 0x181   : > { %2264 = vmatprep.subr.bf16.mxu0 %v7332_v9  ;;  %2305 = vmatprep.subr.bf16.mxu1 %v7335_v10  ;;  %v7420_v9 = vld [vmem:[%s9379_s11 + $0x400] ss:$16 sps:$4 sm:$0xff]   ;;  %v7423_v10 = vld [vmem:[%s9379_s11 + $0x408] ss:$16 sps:$4 sm:$0xff]  }
 0x182   : > { %2294 = vmatprep.mubr.bf16.mxu0 %v9375_v1  ;;  %2335 = vmatprep.mubr.bf16.mxu1 %v9375_v1 }
 0x184   : > { %2265 = vmatpush1.bf16.msra.mxu0 %v7330_v11  ;;  %2306 = vmatpush1.bf16.msra.mxu1 %v7333_v12  ;;  %v7428_v11 = vld [vmem:[%s9379_s11 + $0x424] ss:$16 sps:$4 sm:$0xff]   ;;  %v7431_v12 = vld [vmem:[%s9379_s11 + $0x42c] ss:$16 sps:$4 sm:$0xff]  }
 0x185   : > { %2266 = vmatprep.subr.bf16.mxu0 %v7338_v0  ;;  %2307 = vmatprep.subr.bf16.mxu1 %v7341_v13  ;;  %v7426_v0 = vld [vmem:[%s9379_s11 + $0x420] ss:$16 sps:$4 sm:$0xff]   ;;  %v7429_v13 = vld [vmem:[%s9379_s11 + $0x428] ss:$16 sps:$4 sm:$0xff]  }
 0x188   : > { %2267 = vmatpush1.bf16.msra.mxu0 %v7336_v14  ;;  %2308 = vmatpush1.bf16.msra.mxu1 %v7339_v15  ;;  %v7434_v14 = vld [vmem:[%s9379_s11 + $0x444] ss:$16 sps:$4 sm:$0xff]   ;;  %v7437_v15 = vld [vmem:[%s9379_s11 + $0x44c] ss:$16 sps:$4 sm:$0xff]  }
 0x189   : > { %2268 = vmatprep.subr.bf16.mxu0 %v7344_v16  ;;  %2309 = vmatprep.subr.bf16.mxu1 %v7347_v17  ;;  %v7432_v16 = vld [vmem:[%s9379_s11 + $0x440] ss:$16 sps:$4 sm:$0xff]   ;;  %v7435_v17 = vld [vmem:[%s9379_s11 + $0x448] ss:$16 sps:$4 sm:$0xff]  }
 0x18c   : > { %2269 = vmatpush1.bf16.msra.mxu0 %v7342_v18  ;;  %2310 = vmatpush1.bf16.msra.mxu1 %v7345_v19  ;;  %v7440_v18 = vld [vmem:[%s9379_s11 + $0x464] ss:$16 sps:$4 sm:$0xff]   ;;  %v7443_v19 = vld [vmem:[%s9379_s11 + $0x46c] ss:$16 sps:$4 sm:$0xff]  }
 0x18d   : > { %2270 = vmatprep.subr.bf16.mxu0 %v7350_v20  ;;  %2311 = vmatprep.subr.bf16.mxu1 %v7353_v21  ;;  %v7438_v20 = vld [vmem:[%s9379_s11 + $0x460] ss:$16 sps:$4 sm:$0xff]   ;;  %v7441_v21 = vld [vmem:[%s9379_s11 + $0x468] ss:$16 sps:$4 sm:$0xff]  }
 0x190   : > { %2271 = vmatpush1.bf16.msra.mxu0 %v7348_v22  ;;  %2312 = vmatpush1.bf16.msra.mxu1 %v7351_v23  ;;  %v7446_v22 = vld [vmem:[%s9379_s11 + $0x484] ss:$16 sps:$4 sm:$0xff]   ;;  %v7449_v23 = vld [vmem:[%s9379_s11 + $0x48c] ss:$16 sps:$4 sm:$0xff]  }
 0x191   : > { %2272 = vmatprep.subr.bf16.mxu0 %v7356_v24  ;;  %2313 = vmatprep.subr.bf16.mxu1 %v7359_v25  ;;  %v7444_v24 = vld [vmem:[%s9379_s11 + $0x480] ss:$16 sps:$4 sm:$0xff]   ;;  %v7447_v25 = vld [vmem:[%s9379_s11 + $0x488] ss:$16 sps:$4 sm:$0xff]  }
 0x194   : > { %2273 = vmatpush1.bf16.msra.mxu0 %v7354_v26  ;;  %2314 = vmatpush1.bf16.msra.mxu1 %v7357_v27  ;;  %v7452_v26 = vld [vmem:[%s9379_s11 + $0x4a4] ss:$16 sps:$4 sm:$0xff]   ;;  %v7455_v27 = vld [vmem:[%s9379_s11 + $0x4ac] ss:$16 sps:$4 sm:$0xff]  }
 0x195   : > { %2274 = vmatprep.subr.bf16.mxu0 %v7362_v28  ;;  %2315 = vmatprep.subr.bf16.mxu1 %v7365_v29  ;;  %v7450_v28 = vld [vmem:[%s9379_s11 + $0x4a0] ss:$16 sps:$4 sm:$0xff]   ;;  %v7453_v29 = vld [vmem:[%s9379_s11 + $0x4a8] ss:$16 sps:$4 sm:$0xff]  }
 0x198   : > { %2275 = vmatpush1.bf16.msra.mxu0 %v7360_v30  ;;  %2316 = vmatpush1.bf16.msra.mxu1 %v7363_v31  ;;  %v7458_v30 = vld [vmem:[%s9379_s11 + $0x4c4] ss:$16 sps:$4 sm:$0xff]   ;;  %v7461_v31 = vld [vmem:[%s9379_s11 + $0x4cc] ss:$16 sps:$4 sm:$0xff]  }
 0x199   : > { %2276 = vmatprep.subr.bf16.mxu0 %v7368_v32  ;;  %2317 = vmatprep.subr.bf16.mxu1 %v7371_v33  ;;  %v7456_v32 = vld [vmem:[%s9379_s11 + $0x4c0] ss:$16 sps:$4 sm:$0xff]   ;;  %v7459_v33 = vld [vmem:[%s9379_s11 + $0x4c8] ss:$16 sps:$4 sm:$0xff]  }
 0x19c   : > { %2277 = vmatpush1.bf16.msra.mxu0 %v7366_v34  ;;  %2318 = vmatpush1.bf16.msra.mxu1 %v7369_v35  ;;  %v7464_v34 = vld [vmem:[%s9379_s11 + $0x4e4] ss:$16 sps:$4 sm:$0xff]   ;;  %v7467_v35 = vld [vmem:[%s9379_s11 + $0x4ec] ss:$16 sps:$4 sm:$0xff]  }
 0x19d   : > { %2278 = vmatprep.subr.bf16.mxu0 %v7374_v36  ;;  %2319 = vmatprep.subr.bf16.mxu1 %v7377_v37  ;;  %v7462_v36 = vld [vmem:[%s9379_s11 + $0x4e0] ss:$16 sps:$4 sm:$0xff]   ;;  %v7465_v37 = vld [vmem:[%s9379_s11 + $0x4e8] ss:$16 sps:$4 sm:$0xff]  }
 0x1a0   : > { %2279 = vmatpush1.bf16.msra.mxu0 %v7372_v38  ;;  %2320 = vmatpush1.bf16.msra.mxu1 %v7375_v39  ;;  %v7470_v38 = vld [vmem:[%s9379_s11 + $0x504] ss:$16 sps:$4 sm:$0xff]   ;;  %v7473_v39 = vld [vmem:[%s9379_s11 + $0x50c] ss:$16 sps:$4 sm:$0xff]  }
 0x1a1   : > { %2280 = vmatprep.subr.bf16.mxu0 %v7380_v40  ;;  %2321 = vmatprep.subr.bf16.mxu1 %v7383_v41  ;;  %v7468_v40 = vld [vmem:[%s9379_s11 + $0x500] ss:$16 sps:$4 sm:$0xff]   ;;  %v7471_v41 = vld [vmem:[%s9379_s11 + $0x508] ss:$16 sps:$4 sm:$0xff]  }
 0x1a4   : > { %2281 = vmatpush1.bf16.msra.mxu0 %v7378_v42  ;;  %2322 = vmatpush1.bf16.msra.mxu1 %v7381_v43  ;;  %v7476_v42 = vld [vmem:[%s9379_s11 + $0x524] ss:$16 sps:$4 sm:$0xff]   ;;  %v7479_v43 = vld [vmem:[%s9379_s11 + $0x52c] ss:$16 sps:$4 sm:$0xff]  }
 0x1a5   : > { %2282 = vmatprep.subr.bf16.mxu0 %v7386_v44  ;;  %2323 = vmatprep.subr.bf16.mxu1 %v7389_v45  ;;  %v7474_v44 = vld [vmem:[%s9379_s11 + $0x520] ss:$16 sps:$4 sm:$0xff]   ;;  %v7477_v45 = vld [vmem:[%s9379_s11 + $0x528] ss:$16 sps:$4 sm:$0xff]  }
 0x1a8   : > { %2283 = vmatpush1.bf16.msra.mxu0 %v7384_v46  ;;  %2324 = vmatpush1.bf16.msra.mxu1 %v7387_v47  ;;  %v7482_v46 = vld [vmem:[%s9379_s11 + $0x544] ss:$16 sps:$4 sm:$0xff]   ;;  %v7485_v47 = vld [vmem:[%s9379_s11 + $0x54c] ss:$16 sps:$4 sm:$0xff]  }
 0x1a9   : > { %2284 = vmatprep.subr.bf16.mxu0 %v7392_v48  ;;  %2325 = vmatprep.subr.bf16.mxu1 %v7395_v49  ;;  %v7480_v48 = vld [vmem:[%s9379_s11 + $0x540] ss:$16 sps:$4 sm:$0xff]   ;;  %v7483_v49 = vld [vmem:[%s9379_s11 + $0x548] ss:$16 sps:$4 sm:$0xff]  }
 0x1ac   : > { %2285 = vmatpush1.bf16.msra.mxu0 %v7390_v50  ;;  %2326 = vmatpush1.bf16.msra.mxu1 %v7393_v51  ;;  %v7488_v50 = vld [vmem:[%s9379_s11 + $0x564] ss:$16 sps:$4 sm:$0xff]   ;;  %v7491_v51 = vld [vmem:[%s9379_s11 + $0x56c] ss:$16 sps:$4 sm:$0xff]  }
 0x1ad   : > { %2286 = vmatprep.subr.bf16.mxu0 %v7398_v52  ;;  %2327 = vmatprep.subr.bf16.mxu1 %v7401_v53  ;;  %v7486_v52 = vld [vmem:[%s9379_s11 + $0x560] ss:$16 sps:$4 sm:$0xff]   ;;  %v7489_v53 = vld [vmem:[%s9379_s11 + $0x568] ss:$16 sps:$4 sm:$0xff]  }
 0x1b0   : > { %2287 = vmatpush1.bf16.msra.mxu0 %v7396_v54  ;;  %2328 = vmatpush1.bf16.msra.mxu1 %v7399_v55  ;;  %v7494_v54 = vld [vmem:[%s9379_s11 + $0x584] ss:$16 sps:$4 sm:$0xff]   ;;  %v7497_v55 = vld [vmem:[%s9379_s11 + $0x58c] ss:$16 sps:$4 sm:$0xff]  }
 0x1b1   : > { %2288 = vmatprep.subr.bf16.mxu0 %v7404_v56  ;;  %2329 = vmatprep.subr.bf16.mxu1 %v7407_v57  ;;  %v7492_v56 = vld [vmem:[%s9379_s11 + $0x580] ss:$16 sps:$4 sm:$0xff]   ;;  %v7495_v57 = vld [vmem:[%s9379_s11 + $0x588] ss:$16 sps:$4 sm:$0xff]  }
 0x1b4   : > { %2289 = vmatpush1.bf16.msra.mxu0 %v7402_v58  ;;  %2330 = vmatpush1.bf16.msra.mxu1 %v7405_v59  ;;  %v7500_v58 = vld [vmem:[%s9379_s11 + $0x5a4] ss:$16 sps:$4 sm:$0xff]   ;;  %v7503_v59 = vld [vmem:[%s9379_s11 + $0x5ac] ss:$16 sps:$4 sm:$0xff]  }
 0x1b5   : > { %2290 = vmatprep.subr.bf16.mxu0 %v7410_v60  ;;  %2331 = vmatprep.subr.bf16.mxu1 %v7413_v61  ;;  %v7498_v60 = vld [vmem:[%s9379_s11 + $0x5a0] ss:$16 sps:$4 sm:$0xff]   ;;  %v7501_v61 = vld [vmem:[%s9379_s11 + $0x5a8] ss:$16 sps:$4 sm:$0xff]  }
 0x1b8   : > { %2291 = vmatpush1.bf16.msra.mxu0 %v7408_v62  ;;  %2332 = vmatpush1.bf16.msra.mxu1 %v7411_v63  ;;  %v7506_v62 = vld [vmem:[%s9379_s11 + $0x5c4] ss:$16 sps:$4 sm:$0xff]   ;;  %v7509_v63 = vld [vmem:[%s9379_s11 + $0x5cc] ss:$16 sps:$4 sm:$0xff]  }
 0x1b9   : > { %2292 = vmatprep.subr.bf16.mxu0 %v7416_v2  ;;  %2333 = vmatprep.subr.bf16.mxu1 %v7419_v3  ;;  %v7504_v2 = vld [vmem:[%s9379_s11 + $0x5c0] ss:$16 sps:$4 sm:$0xff]   ;;  %v7507_v3 = vld [vmem:[%s9379_s11 + $0x5c8] ss:$16 sps:$4 sm:$0xff]  }
 0x1bc   : > { %2293 = vmatpush1.bf16.msra.mxu0 %v7414_v4  ;;  %2334 = vmatpush1.bf16.msra.mxu1 %v7417_v5  ;;  %v7512_v4 = vld [vmem:[%s9379_s11 + $0x5e4] ss:$16 sps:$4 sm:$0xff]   ;;  %v7515_v5 = vld [vmem:[%s9379_s11 + $0x5ec] ss:$16 sps:$4 sm:$0xff]  }
 0x1bd   : > { %2734 = vmatprep.subr.bf16.mxu0 %v7422_v7  ;;  %2775 = vmatprep.subr.bf16.mxu1 %v7425_v8  ;;  %v7510_v7 = vld [vmem:[%s9379_s11 + $0x5e0] ss:$16 sps:$4 sm:$0xff]   ;;  %v7513_v8 = vld [vmem:[%s9379_s11 + $0x5e8] ss:$16 sps:$4 sm:$0xff]  }
 0x1bf   : > { %2295 = vmatmul.mubr.bf16.vlgmr.msra.gmra.mrb[4].mxu0 %v9449_v6  ;;  %2336 = vmatmul.mubr.bf16.vlgmr.msra.gmra.mrb[4].mxu1 %v9449_v6 }
 0x1c0   : > { %2735 = vmatpush1.bf16.msra.mxu0 %v7420_v9  ;;  %2776 = vmatpush1.bf16.msra.mxu1 %v7423_v10  ;;  %v7518_v9 = vld [vmem:[%s9379_s11 + $0x604] ss:$16 sps:$4 sm:$0xff]   ;;  %v7521_v10 = vld [vmem:[%s9379_s11 + $0x60c] ss:$16 sps:$4 sm:$0xff]  }
 0x1c1   : > { %2736 = vmatprep.subr.bf16.mxu0 %v7428_v11  ;;  %2777 = vmatprep.subr.bf16.mxu1 %v7431_v12  ;;  %v7516_v11 = vld [vmem:[%s9379_s11 + $0x600] ss:$16 sps:$4 sm:$0xff]   ;;  %v7519_v12 = vld [vmem:[%s9379_s11 + $0x608] ss:$16 sps:$4 sm:$0xff]  }
 0x1c2   : > { %2766 = vmatprep.mubr.bf16.mxu0 %v9375_v1  ;;  %2807 = vmatprep.mubr.bf16.mxu1 %v9375_v1 }
 0x1c4   : > { %2737 = vmatpush1.bf16.msra.mxu0 %v7426_v0  ;;  %2778 = vmatpush1.bf16.msra.mxu1 %v7429_v13  ;;  %v7524_v0 = vld [vmem:[%s9379_s11 + $0x624] ss:$16 sps:$4 sm:$0xff]   ;;  %v7527_v13 = vld [vmem:[%s9379_s11 + $0x62c] ss:$16 sps:$4 sm:$0xff]  }
 0x1c5   : > { %2738 = vmatprep.subr.bf16.mxu0 %v7434_v14  ;;  %2779 = vmatprep.subr.bf16.mxu1 %v7437_v15  ;;  %v7522_v14 = vld [vmem:[%s9379_s11 + $0x620] ss:$16 sps:$4 sm:$0xff]   ;;  %v7525_v15 = vld [vmem:[%s9379_s11 + $0x628] ss:$16 sps:$4 sm:$0xff]  }
 0x1c8   : > { %2739 = vmatpush1.bf16.msra.mxu0 %v7432_v16  ;;  %2780 = vmatpush1.bf16.msra.mxu1 %v7435_v17  ;;  %v7530_v16 = vld [vmem:[%s9379_s11 + $0x644] ss:$16 sps:$4 sm:$0xff]   ;;  %v7533_v17 = vld [vmem:[%s9379_s11 + $0x64c] ss:$16 sps:$4 sm:$0xff]  }
 0x1c9   : > { %2740 = vmatprep.subr.bf16.mxu0 %v7440_v18  ;;  %2781 = vmatprep.subr.bf16.mxu1 %v7443_v19  ;;  %v7528_v18 = vld [vmem:[%s9379_s11 + $0x640] ss:$16 sps:$4 sm:$0xff]   ;;  %v7531_v19 = vld [vmem:[%s9379_s11 + $0x648] ss:$16 sps:$4 sm:$0xff]  }
 0x1cc   : > { %2741 = vmatpush1.bf16.msra.mxu0 %v7438_v20  ;;  %2782 = vmatpush1.bf16.msra.mxu1 %v7441_v21  ;;  %v7536_v20 = vld [vmem:[%s9379_s11 + $0x664] ss:$16 sps:$4 sm:$0xff]   ;;  %v7539_v21 = vld [vmem:[%s9379_s11 + $0x66c] ss:$16 sps:$4 sm:$0xff]  }
 0x1cd   : > { %2742 = vmatprep.subr.bf16.mxu0 %v7446_v22  ;;  %2783 = vmatprep.subr.bf16.mxu1 %v7449_v23  ;;  %v7534_v22 = vld [vmem:[%s9379_s11 + $0x660] ss:$16 sps:$4 sm:$0xff]   ;;  %v7537_v23 = vld [vmem:[%s9379_s11 + $0x668] ss:$16 sps:$4 sm:$0xff]  }
 0x1d0   : > { %2743 = vmatpush1.bf16.msra.mxu0 %v7444_v24  ;;  %2784 = vmatpush1.bf16.msra.mxu1 %v7447_v25  ;;  %v7542_v24 = vld [vmem:[%s9379_s11 + $0x684] ss:$16 sps:$4 sm:$0xff]   ;;  %v7545_v25 = vld [vmem:[%s9379_s11 + $0x68c] ss:$16 sps:$4 sm:$0xff]  }
 0x1d1   : > { %2744 = vmatprep.subr.bf16.mxu0 %v7452_v26  ;;  %2785 = vmatprep.subr.bf16.mxu1 %v7455_v27  ;;  %v7540_v26 = vld [vmem:[%s9379_s11 + $0x680] ss:$16 sps:$4 sm:$0xff]   ;;  %v7543_v27 = vld [vmem:[%s9379_s11 + $0x688] ss:$16 sps:$4 sm:$0xff]  }
 0x1d4   : > { %2745 = vmatpush1.bf16.msra.mxu0 %v7450_v28  ;;  %2786 = vmatpush1.bf16.msra.mxu1 %v7453_v29  ;;  %v7548_v28 = vld [vmem:[%s9379_s11 + $0x6a4] ss:$16 sps:$4 sm:$0xff]   ;;  %v7551_v29 = vld [vmem:[%s9379_s11 + $0x6ac] ss:$16 sps:$4 sm:$0xff]  }
 0x1d5   : > { %2746 = vmatprep.subr.bf16.mxu0 %v7458_v30  ;;  %2787 = vmatprep.subr.bf16.mxu1 %v7461_v31  ;;  %v7546_v30 = vld [vmem:[%s9379_s11 + $0x6a0] ss:$16 sps:$4 sm:$0xff]   ;;  %v7549_v31 = vld [vmem:[%s9379_s11 + $0x6a8] ss:$16 sps:$4 sm:$0xff]  }
 0x1d8   : > { %2747 = vmatpush1.bf16.msra.mxu0 %v7456_v32  ;;  %2788 = vmatpush1.bf16.msra.mxu1 %v7459_v33  ;;  %v7554_v32 = vld [vmem:[%s9379_s11 + $0x6c4] ss:$16 sps:$4 sm:$0xff]   ;;  %v7557_v33 = vld [vmem:[%s9379_s11 + $0x6cc] ss:$16 sps:$4 sm:$0xff]  }
 0x1d9   : > { %2748 = vmatprep.subr.bf16.mxu0 %v7464_v34  ;;  %2789 = vmatprep.subr.bf16.mxu1 %v7467_v35  ;;  %v7552_v34 = vld [vmem:[%s9379_s11 + $0x6c0] ss:$16 sps:$4 sm:$0xff]   ;;  %v7555_v35 = vld [vmem:[%s9379_s11 + $0x6c8] ss:$16 sps:$4 sm:$0xff]  }
 0x1dc   : > { %2749 = vmatpush1.bf16.msra.mxu0 %v7462_v36  ;;  %2790 = vmatpush1.bf16.msra.mxu1 %v7465_v37  ;;  %v7560_v36 = vld [vmem:[%s9379_s11 + $0x6e4] ss:$16 sps:$4 sm:$0xff]   ;;  %v7563_v37 = vld [vmem:[%s9379_s11 + $0x6ec] ss:$16 sps:$4 sm:$0xff]  }
 0x1dd   : > { %2750 = vmatprep.subr.bf16.mxu0 %v7470_v38  ;;  %2791 = vmatprep.subr.bf16.mxu1 %v7473_v39  ;;  %v7558_v38 = vld [vmem:[%s9379_s11 + $0x6e0] ss:$16 sps:$4 sm:$0xff]   ;;  %v7561_v39 = vld [vmem:[%s9379_s11 + $0x6e8] ss:$16 sps:$4 sm:$0xff]  }
 0x1e0   : > { %2751 = vmatpush1.bf16.msra.mxu0 %v7468_v40  ;;  %2792 = vmatpush1.bf16.msra.mxu1 %v7471_v41  ;;  %v7566_v40 = vld [vmem:[%s9379_s11 + $0x704] ss:$16 sps:$4 sm:$0xff]   ;;  %v7569_v41 = vld [vmem:[%s9379_s11 + $0x70c] ss:$16 sps:$4 sm:$0xff]  }
 0x1e1   : > { %2752 = vmatprep.subr.bf16.mxu0 %v7476_v42  ;;  %2793 = vmatprep.subr.bf16.mxu1 %v7479_v43  ;;  %v7564_v42 = vld [vmem:[%s9379_s11 + $0x700] ss:$16 sps:$4 sm:$0xff]   ;;  %v7567_v43 = vld [vmem:[%s9379_s11 + $0x708] ss:$16 sps:$4 sm:$0xff]  }
 0x1e4   : > { %2753 = vmatpush1.bf16.msra.mxu0 %v7474_v44  ;;  %2794 = vmatpush1.bf16.msra.mxu1 %v7477_v45  ;;  %v7572_v44 = vld [vmem:[%s9379_s11 + $0x724] ss:$16 sps:$4 sm:$0xff]   ;;  %v7575_v45 = vld [vmem:[%s9379_s11 + $0x72c] ss:$16 sps:$4 sm:$0xff]  }
 0x1e5   : > { %2754 = vmatprep.subr.bf16.mxu0 %v7482_v46  ;;  %2795 = vmatprep.subr.bf16.mxu1 %v7485_v47  ;;  %v7570_v46 = vld [vmem:[%s9379_s11 + $0x720] ss:$16 sps:$4 sm:$0xff]   ;;  %v7573_v47 = vld [vmem:[%s9379_s11 + $0x728] ss:$16 sps:$4 sm:$0xff]  }
 0x1e8   : > { %2755 = vmatpush1.bf16.msra.mxu0 %v7480_v48  ;;  %2796 = vmatpush1.bf16.msra.mxu1 %v7483_v49  ;;  %v7578_v48 = vld [vmem:[%s9379_s11 + $0x744] ss:$16 sps:$4 sm:$0xff]   ;;  %v7581_v49 = vld [vmem:[%s9379_s11 + $0x74c] ss:$16 sps:$4 sm:$0xff]  }
 0x1e9   : > { %2756 = vmatprep.subr.bf16.mxu0 %v7488_v50  ;;  %2797 = vmatprep.subr.bf16.mxu1 %v7491_v51  ;;  %v7576_v50 = vld [vmem:[%s9379_s11 + $0x740] ss:$16 sps:$4 sm:$0xff]   ;;  %v7579_v51 = vld [vmem:[%s9379_s11 + $0x748] ss:$16 sps:$4 sm:$0xff]  }
 0x1ec   : > { %2757 = vmatpush1.bf16.msra.mxu0 %v7486_v52  ;;  %2798 = vmatpush1.bf16.msra.mxu1 %v7489_v53  ;;  %v7584_v52 = vld [vmem:[%s9379_s11 + $0x764] ss:$16 sps:$4 sm:$0xff]   ;;  %v7587_v53 = vld [vmem:[%s9379_s11 + $0x76c] ss:$16 sps:$4 sm:$0xff]  }
 0x1ed   : > { %2758 = vmatprep.subr.bf16.mxu0 %v7494_v54  ;;  %2799 = vmatprep.subr.bf16.mxu1 %v7497_v55  ;;  %v7582_v54 = vld [vmem:[%s9379_s11 + $0x760] ss:$16 sps:$4 sm:$0xff]   ;;  %v7585_v55 = vld [vmem:[%s9379_s11 + $0x768] ss:$16 sps:$4 sm:$0xff]  }
 0x1f0   : > { %2759 = vmatpush1.bf16.msra.mxu0 %v7492_v56  ;;  %2800 = vmatpush1.bf16.msra.mxu1 %v7495_v57  ;;  %v7590_v56 = vld [vmem:[%s9379_s11 + $0x784] ss:$16 sps:$4 sm:$0xff]   ;;  %v7593_v57 = vld [vmem:[%s9379_s11 + $0x78c] ss:$16 sps:$4 sm:$0xff]  }
 0x1f1   : > { %2760 = vmatprep.subr.bf16.mxu0 %v7500_v58  ;;  %2801 = vmatprep.subr.bf16.mxu1 %v7503_v59  ;;  %v7588_v58 = vld [vmem:[%s9379_s11 + $0x780] ss:$16 sps:$4 sm:$0xff]   ;;  %v7591_v59 = vld [vmem:[%s9379_s11 + $0x788] ss:$16 sps:$4 sm:$0xff]  }
 0x1f4   : > { %2761 = vmatpush1.bf16.msra.mxu0 %v7498_v60  ;;  %2802 = vmatpush1.bf16.msra.mxu1 %v7501_v61  ;;  %v7596_v60 = vld [vmem:[%s9379_s11 + $0x7a4] ss:$16 sps:$4 sm:$0xff]   ;;  %v7599_v61 = vld [vmem:[%s9379_s11 + $0x7ac] ss:$16 sps:$4 sm:$0xff]  }
 0x1f5   : > { %2762 = vmatprep.subr.bf16.mxu0 %v7506_v62  ;;  %2803 = vmatprep.subr.bf16.mxu1 %v7509_v63  ;;  %v7594_v62 = vld [vmem:[%s9379_s11 + $0x7a0] ss:$16 sps:$4 sm:$0xff]   ;;  %v7597_v63 = vld [vmem:[%s9379_s11 + $0x7a8] ss:$16 sps:$4 sm:$0xff]  }
 0x1f8   : > { %2763 = vmatpush1.bf16.msra.mxu0 %v7504_v2  ;;  %2804 = vmatpush1.bf16.msra.mxu1 %v7507_v3  ;;  %v7602_v2 = vld [vmem:[%s9379_s11 + $0x7c4] ss:$16 sps:$4 sm:$0xff]   ;;  %v7605_v3 = vld [vmem:[%s9379_s11 + $0x7cc] ss:$16 sps:$4 sm:$0xff]  }
 0x1f9   : > { %2764 = vmatprep.subr.bf16.mxu0 %v7512_v4  ;;  %2805 = vmatprep.subr.bf16.mxu1 %v7515_v5  ;;  %v7600_v4 = vld [vmem:[%s9379_s11 + $0x7c0] ss:$16 sps:$4 sm:$0xff]   ;;  %v7603_v5 = vld [vmem:[%s9379_s11 + $0x7c8] ss:$16 sps:$4 sm:$0xff]  }
 0x1fc   : > { %2765 = vmatpush1.bf16.msra.mxu0 %v7510_v7  ;;  %2806 = vmatpush1.bf16.msra.mxu1 %v7513_v8  ;;  %v7608_v7 = vld [vmem:[%s9379_s11 + $0x7e4] ss:$16 sps:$4 sm:$0xff]   ;;  %v7611_v8 = vld [vmem:[%s9379_s11 + $0x7ec] ss:$16 sps:$4 sm:$0xff]  }
 0x1fd   : > { %3206 = vmatprep.subr.bf16.mxu0 %v7518_v9  ;;  %3247 = vmatprep.subr.bf16.mxu1 %v7521_v10  ;;  %v7606_v9 = vld [vmem:[%s9379_s11 + $0x7e0] ss:$16 sps:$4 sm:$0xff]   ;;  %v7609_v10 = vld [vmem:[%s9379_s11 + $0x7e8] ss:$16 sps:$4 sm:$0xff]  }
 0x1ff   : > { %2767 = vmatmul.mubr.bf16.vlgmr.msra.gmra.mrb[8].mxu0 %v9449_v6  ;;  %2808 = vmatmul.mubr.bf16.vlgmr.msra.gmra.mrb[8].mxu1 %v9449_v6 }
 0x200   : > { %3207 = vmatpush1.bf16.msra.mxu0 %v7516_v11  ;;  %3248 = vmatpush1.bf16.msra.mxu1 %v7519_v12  ;;  %v7614_v11 = vld [vmem:[%s9379_s11 + $0x804] ss:$16 sps:$4 sm:$0xff]   ;;  %v7617_v12 = vld [vmem:[%s9379_s11 + $0x80c] ss:$16 sps:$4 sm:$0xff]  }
 0x201   : > { %3208 = vmatprep.subr.bf16.mxu0 %v7524_v0  ;;  %3249 = vmatprep.subr.bf16.mxu1 %v7527_v13  ;;  %v7612_v0 = vld [vmem:[%s9379_s11 + $0x800] ss:$16 sps:$4 sm:$0xff]   ;;  %v7615_v13 = vld [vmem:[%s9379_s11 + $0x808] ss:$16 sps:$4 sm:$0xff]  }
 0x202   : > { %3238 = vmatprep.mubr.bf16.mxu0 %v9375_v1  ;;  %3279 = vmatprep.mubr.bf16.mxu1 %v9375_v1 }
 0x204   : > { %3209 = vmatpush1.bf16.msra.mxu0 %v7522_v14  ;;  %3250 = vmatpush1.bf16.msra.mxu1 %v7525_v15  ;;  %v7620_v14 = vld [vmem:[%s9379_s11 + $0x824] ss:$16 sps:$4 sm:$0xff]   ;;  %v7623_v15 = vld [vmem:[%s9379_s11 + $0x82c] ss:$16 sps:$4 sm:$0xff]  }
 0x205   : > { %3210 = vmatprep.subr.bf16.mxu0 %v7530_v16  ;;  %3251 = vmatprep.subr.bf16.mxu1 %v7533_v17  ;;  %v7618_v16 = vld [vmem:[%s9379_s11 + $0x820] ss:$16 sps:$4 sm:$0xff]   ;;  %v7621_v17 = vld [vmem:[%s9379_s11 + $0x828] ss:$16 sps:$4 sm:$0xff]  }
 0x208   : > { %3211 = vmatpush1.bf16.msra.mxu0 %v7528_v18  ;;  %3252 = vmatpush1.bf16.msra.mxu1 %v7531_v19  ;;  %v7626_v18 = vld [vmem:[%s9379_s11 + $0x844] ss:$16 sps:$4 sm:$0xff]   ;;  %v7629_v19 = vld [vmem:[%s9379_s11 + $0x84c] ss:$16 sps:$4 sm:$0xff]  }
 0x209   : > { %3212 = vmatprep.subr.bf16.mxu0 %v7536_v20  ;;  %3253 = vmatprep.subr.bf16.mxu1 %v7539_v21  ;;  %v7624_v20 = vld [vmem:[%s9379_s11 + $0x840] ss:$16 sps:$4 sm:$0xff]   ;;  %v7627_v21 = vld [vmem:[%s9379_s11 + $0x848] ss:$16 sps:$4 sm:$0xff]  }
 0x20c   : > { %3213 = vmatpush1.bf16.msra.mxu0 %v7534_v22  ;;  %3254 = vmatpush1.bf16.msra.mxu1 %v7537_v23  ;;  %v7632_v22 = vld [vmem:[%s9379_s11 + $0x864] ss:$16 sps:$4 sm:$0xff]   ;;  %v7635_v23 = vld [vmem:[%s9379_s11 + $0x86c] ss:$16 sps:$4 sm:$0xff]  }
 0x20d   : > { %3214 = vmatprep.subr.bf16.mxu0 %v7542_v24  ;;  %3255 = vmatprep.subr.bf16.mxu1 %v7545_v25  ;;  %v7630_v24 = vld [vmem:[%s9379_s11 + $0x860] ss:$16 sps:$4 sm:$0xff]   ;;  %v7633_v25 = vld [vmem:[%s9379_s11 + $0x868] ss:$16 sps:$4 sm:$0xff]  }
 0x210   : > { %3215 = vmatpush1.bf16.msra.mxu0 %v7540_v26  ;;  %3256 = vmatpush1.bf16.msra.mxu1 %v7543_v27  ;;  %v7638_v26 = vld [vmem:[%s9379_s11 + $0x884] ss:$16 sps:$4 sm:$0xff]   ;;  %v7641_v27 = vld [vmem:[%s9379_s11 + $0x88c] ss:$16 sps:$4 sm:$0xff]  }
 0x211   : > { %3216 = vmatprep.subr.bf16.mxu0 %v7548_v28  ;;  %3257 = vmatprep.subr.bf16.mxu1 %v7551_v29  ;;  %v7636_v28 = vld [vmem:[%s9379_s11 + $0x880] ss:$16 sps:$4 sm:$0xff]   ;;  %v7639_v29 = vld [vmem:[%s9379_s11 + $0x888] ss:$16 sps:$4 sm:$0xff]  }
 0x214   : > { %3217 = vmatpush1.bf16.msra.mxu0 %v7546_v30  ;;  %3258 = vmatpush1.bf16.msra.mxu1 %v7549_v31  ;;  %v7644_v30 = vld [vmem:[%s9379_s11 + $0x8a4] ss:$16 sps:$4 sm:$0xff]   ;;  %v7647_v31 = vld [vmem:[%s9379_s11 + $0x8ac] ss:$16 sps:$4 sm:$0xff]  }
 0x215   : > { %3218 = vmatprep.subr.bf16.mxu0 %v7554_v32  ;;  %3259 = vmatprep.subr.bf16.mxu1 %v7557_v33  ;;  %v7642_v32 = vld [vmem:[%s9379_s11 + $0x8a0] ss:$16 sps:$4 sm:$0xff]   ;;  %v7645_v33 = vld [vmem:[%s9379_s11 + $0x8a8] ss:$16 sps:$4 sm:$0xff]  }
 0x218   : > { %3219 = vmatpush1.bf16.msra.mxu0 %v7552_v34  ;;  %3260 = vmatpush1.bf16.msra.mxu1 %v7555_v35  ;;  %v7650_v34 = vld [vmem:[%s9379_s11 + $0x8c4] ss:$16 sps:$4 sm:$0xff]   ;;  %v7653_v35 = vld [vmem:[%s9379_s11 + $0x8cc] ss:$16 sps:$4 sm:$0xff]  }
 0x219   : > { %3220 = vmatprep.subr.bf16.mxu0 %v7560_v36  ;;  %3261 = vmatprep.subr.bf16.mxu1 %v7563_v37 }
 0x21c   : > { %3221 = vmatpush1.bf16.msra.mxu0 %v7558_v38  ;;  %3262 = vmatpush1.bf16.msra.mxu1 %v7561_v39  ;;  %v7648_v38 = vld [vmem:[%s9379_s11 + $0x8c0] ss:$16 sps:$4 sm:$0xff]   ;;  %v7651_v39 = vld [vmem:[%s9379_s11 + $0x8c8] ss:$16 sps:$4 sm:$0xff]  }
 0x21d   : > { %3222 = vmatprep.subr.bf16.mxu0 %v7566_v40  ;;  %3263 = vmatprep.subr.bf16.mxu1 %v7569_v41 }
 0x220   : > { %3223 = vmatpush1.bf16.msra.mxu0 %v7564_v42  ;;  %3264 = vmatpush1.bf16.msra.mxu1 %v7567_v43 }
 0x221   : > { %3224 = vmatprep.subr.bf16.mxu0 %v7572_v44  ;;  %3265 = vmatprep.subr.bf16.mxu1 %v7575_v45 }
 0x224   : > { %3225 = vmatpush1.bf16.msra.mxu0 %v7570_v46  ;;  %3266 = vmatpush1.bf16.msra.mxu1 %v7573_v47  ;;  %v7656_v46 = vld [vmem:[%s9379_s11 + $0x8e4] ss:$16 sps:$4 sm:$0xff]   ;;  %v7659_v47 = vld [vmem:[%s9379_s11 + $0x8ec] ss:$16 sps:$4 sm:$0xff]  }
 0x225   : > { %3226 = vmatprep.subr.bf16.mxu0 %v7578_v48  ;;  %3267 = vmatprep.subr.bf16.mxu1 %v7581_v49  ;;  %v7654_v48 = vld [vmem:[%s9379_s11 + $0x8e0] ss:$16 sps:$4 sm:$0xff]   ;;  %v7657_v49 = vld [vmem:[%s9379_s11 + $0x8e8] ss:$16 sps:$4 sm:$0xff]  }
 0x228   : > { %3227 = vmatpush1.bf16.msra.mxu0 %v7576_v50  ;;  %3268 = vmatpush1.bf16.msra.mxu1 %v7579_v51  ;;  %v7662_v50 = vld [vmem:[%s9379_s11 + $0x904] ss:$16 sps:$4 sm:$0xff]   ;;  %v7665_v51 = vld [vmem:[%s9379_s11 + $0x90c] ss:$16 sps:$4 sm:$0xff]  }
 0x229   : > { %3228 = vmatprep.subr.bf16.mxu0 %v7584_v52  ;;  %3269 = vmatprep.subr.bf16.mxu1 %v7587_v53  ;;  %v7660_v52 = vld [vmem:[%s9379_s11 + $0x900] ss:$16 sps:$4 sm:$0xff]   ;;  %v7663_v53 = vld [vmem:[%s9379_s11 + $0x908] ss:$16 sps:$4 sm:$0xff]  }
 0x22c   : > { %3229 = vmatpush1.bf16.msra.mxu0 %v7582_v54  ;;  %3270 = vmatpush1.bf16.msra.mxu1 %v7585_v55  ;;  %v7668_v54 = vld [vmem:[%s9379_s11 + $0x924] ss:$16 sps:$4 sm:$0xff]   ;;  %v7671_v55 = vld [vmem:[%s9379_s11 + $0x92c] ss:$16 sps:$4 sm:$0xff]  }
 0x22d   : > { %3230 = vmatprep.subr.bf16.mxu0 %v7590_v56  ;;  %3271 = vmatprep.subr.bf16.mxu1 %v7593_v57  ;;  %v7666_v56 = vld [vmem:[%s9379_s11 + $0x920] ss:$16 sps:$4 sm:$0xff]   ;;  %v7669_v57 = vld [vmem:[%s9379_s11 + $0x928] ss:$16 sps:$4 sm:$0xff]  }
 0x230   : > { %3231 = vmatpush1.bf16.msra.mxu0 %v7588_v58  ;;  %3272 = vmatpush1.bf16.msra.mxu1 %v7591_v59  ;;  %v7674_v58 = vld [vmem:[%s9379_s11 + $0x944] ss:$16 sps:$4 sm:$0xff]   ;;  %v7677_v59 = vld [vmem:[%s9379_s11 + $0x94c] ss:$16 sps:$4 sm:$0xff]  }
 0x231   : > { %3232 = vmatprep.subr.bf16.mxu0 %v7596_v60  ;;  %3273 = vmatprep.subr.bf16.mxu1 %v7599_v61  ;;  %v7672_v60 = vld [vmem:[%s9379_s11 + $0x940] ss:$16 sps:$4 sm:$0xff]   ;;  %v7675_v61 = vld [vmem:[%s9379_s11 + $0x948] ss:$16 sps:$4 sm:$0xff]  }
 0x234   : > { %3233 = vmatpush1.bf16.msra.mxu0 %v7594_v62  ;;  %3274 = vmatpush1.bf16.msra.mxu1 %v7597_v63  ;;  %v7680_v62 = vld [vmem:[%s9379_s11 + $0x964] ss:$16 sps:$4 sm:$0xff]   ;;  %v7683_v63 = vld [vmem:[%s9379_s11 + $0x96c] ss:$16 sps:$4 sm:$0xff]  }
 0x235   : > { %3234 = vmatprep.subr.bf16.mxu0 %v7602_v2  ;;  %3275 = vmatprep.subr.bf16.mxu1 %v7605_v3  ;;  %v7678_v2 = vld [vmem:[%s9379_s11 + $0x960] ss:$16 sps:$4 sm:$0xff]   ;;  %v7681_v3 = vld [vmem:[%s9379_s11 + $0x968] ss:$16 sps:$4 sm:$0xff]  }
 0x238   : > { %3235 = vmatpush1.bf16.msra.mxu0 %v7600_v4  ;;  %3276 = vmatpush1.bf16.msra.mxu1 %v7603_v5  ;;  %v7686_v4 = vld [vmem:[%s9379_s11 + $0x984] ss:$16 sps:$4 sm:$0xff]   ;;  %v7689_v5 = vld [vmem:[%s9379_s11 + $0x98c] ss:$16 sps:$4 sm:$0xff]  }
 0x239   : > { %3236 = vmatprep.subr.bf16.mxu0 %v7608_v7  ;;  %3277 = vmatprep.subr.bf16.mxu1 %v7611_v8  ;;  %v7684_v7 = vld [vmem:[%s9379_s11 + $0x980] ss:$16 sps:$4 sm:$0xff]   ;;  %v7687_v8 = vld [vmem:[%s9379_s11 + $0x988] ss:$16 sps:$4 sm:$0xff]  }
 0x23c   : > { %3237 = vmatpush1.bf16.msra.mxu0 %v7606_v9  ;;  %3278 = vmatpush1.bf16.msra.mxu1 %v7609_v10  ;;  %v7692_v9 = vld [vmem:[%s9379_s11 + $0x9a4] ss:$16 sps:$4 sm:$0xff]   ;;  %v7695_v10 = vld [vmem:[%s9379_s11 + $0x9ac] ss:$16 sps:$4 sm:$0xff]  }
 0x23d   : > { %3678 = vmatprep.subr.bf16.mxu0 %v7614_v11  ;;  %3719 = vmatprep.subr.bf16.mxu1 %v7617_v12  ;;  %v7690_v11 = vld [vmem:[%s9379_s11 + $0x9a0] ss:$16 sps:$4 sm:$0xff]   ;;  %v7693_v12 = vld [vmem:[%s9379_s11 + $0x9a8] ss:$16 sps:$4 sm:$0xff]  }
 0x23f   : > { %3239 = vmatmul.mubr.bf16.vlgmr.msra.gmra.mrb[12].mxu0 %v9449_v6  ;;  %3280 = vmatmul.mubr.bf16.vlgmr.msra.gmra.mrb[12].mxu1 %v9449_v6 }
 0x240   : > { %3679 = vmatpush1.bf16.msra.mxu0 %v7612_v0  ;;  %3720 = vmatpush1.bf16.msra.mxu1 %v7615_v13  ;;  %v7698_v0 = vld [vmem:[%s9379_s11 + $0x9c4] ss:$16 sps:$4 sm:$0xff]   ;;  %v7701_v13 = vld [vmem:[%s9379_s11 + $0x9cc] ss:$16 sps:$4 sm:$0xff]  }
 0x241   : > { %3680 = vmatprep.subr.bf16.mxu0 %v7620_v14  ;;  %3721 = vmatprep.subr.bf16.mxu1 %v7623_v15  ;;  %v7696_v14 = vld [vmem:[%s9379_s11 + $0x9c0] ss:$16 sps:$4 sm:$0xff]   ;;  %v7699_v15 = vld [vmem:[%s9379_s11 + $0x9c8] ss:$16 sps:$4 sm:$0xff]  }
 0x242   : > { %3710 = vmatprep.mubr.bf16.mxu0 %v9375_v1  ;;  %3751 = vmatprep.mubr.bf16.mxu1 %v9375_v1 }
 0x244   : > { %3681 = vmatpush1.bf16.msra.mxu0 %v7618_v16  ;;  %3722 = vmatpush1.bf16.msra.mxu1 %v7621_v17  ;;  %v7704_v16 = vld [vmem:[%s9379_s11 + $0x9e4] ss:$16 sps:$4 sm:$0xff]   ;;  %v7707_v17 = vld [vmem:[%s9379_s11 + $0x9ec] ss:$16 sps:$4 sm:$0xff]  }
 0x245   : > { %3682 = vmatprep.subr.bf16.mxu0 %v7626_v18  ;;  %3723 = vmatprep.subr.bf16.mxu1 %v7629_v19  ;;  %v7702_v18 = vld [vmem:[%s9379_s11 + $0x9e0] ss:$16 sps:$4 sm:$0xff]   ;;  %v7705_v19 = vld [vmem:[%s9379_s11 + $0x9e8] ss:$16 sps:$4 sm:$0xff]  }
 0x248   : > { %3683 = vmatpush1.bf16.msra.mxu0 %v7624_v20  ;;  %3724 = vmatpush1.bf16.msra.mxu1 %v7627_v21  ;;  %v7710_v20 = vld [vmem:[%s9379_s11 + $0xa04] ss:$16 sps:$4 sm:$0xff]   ;;  %v7713_v21 = vld [vmem:[%s9379_s11 + $0xa0c] ss:$16 sps:$4 sm:$0xff]  }
 0x249   : > { %3684 = vmatprep.subr.bf16.mxu0 %v7632_v22  ;;  %3725 = vmatprep.subr.bf16.mxu1 %v7635_v23  ;;  %v7708_v22 = vld [vmem:[%s9379_s11 + $0xa00] ss:$16 sps:$4 sm:$0xff]   ;;  %v7711_v23 = vld [vmem:[%s9379_s11 + $0xa08] ss:$16 sps:$4 sm:$0xff]  }
 0x24c   : > { %3685 = vmatpush1.bf16.msra.mxu0 %v7630_v24  ;;  %3726 = vmatpush1.bf16.msra.mxu1 %v7633_v25  ;;  %v7716_v24 = vld [vmem:[%s9379_s11 + $0xa24] ss:$16 sps:$4 sm:$0xff]   ;;  %v7719_v25 = vld [vmem:[%s9379_s11 + $0xa2c] ss:$16 sps:$4 sm:$0xff]  }
 0x24d   : > { %3686 = vmatprep.subr.bf16.mxu0 %v7638_v26  ;;  %3727 = vmatprep.subr.bf16.mxu1 %v7641_v27  ;;  %v7714_v26 = vld [vmem:[%s9379_s11 + $0xa20] ss:$16 sps:$4 sm:$0xff]   ;;  %v7717_v27 = vld [vmem:[%s9379_s11 + $0xa28] ss:$16 sps:$4 sm:$0xff]  }
 0x250   : > { %3687 = vmatpush1.bf16.msra.mxu0 %v7636_v28  ;;  %3728 = vmatpush1.bf16.msra.mxu1 %v7639_v29  ;;  %v7722_v28 = vld [vmem:[%s9379_s11 + $0xa44] ss:$16 sps:$4 sm:$0xff]   ;;  %v7725_v29 = vld [vmem:[%s9379_s11 + $0xa4c] ss:$16 sps:$4 sm:$0xff]  }
 0x251   : > { %3688 = vmatprep.subr.bf16.mxu0 %v7644_v30  ;;  %3729 = vmatprep.subr.bf16.mxu1 %v7647_v31  ;;  %v7720_v30 = vld [vmem:[%s9379_s11 + $0xa40] ss:$16 sps:$4 sm:$0xff]   ;;  %v7723_v31 = vld [vmem:[%s9379_s11 + $0xa48] ss:$16 sps:$4 sm:$0xff]  }
 0x252   : > { %v9683_v36 = vpop.f32.mrb[0].mxu0  ;;  %v9685_v37 = vpop.f32.mrb[0].mxu1 }
 0x253   : > { %v9689_v40 = vpop.f32.mrb[1].mxu0  ;;  %v9691_v41 = vpop.f32.mrb[1].mxu1 }
 0x254   : > { %v1829_v42 = vpop.f32.mrb[2].mxu0  ;;  %v1870_v43 = vpop.f32.mrb[2].mxu1  ;;  %3689 = vmatpush1.bf16.msra.mxu0 %v7642_v32  ;;  %3730 = vmatpush1.bf16.msra.mxu1 %v7645_v33  ;;  %v7728_v32 = vld [vmem:[%s9379_s11 + $0xa64] ss:$16 sps:$4 sm:$0xff]   ;;  %v7731_v33 = vld [vmem:[%s9379_s11 + $0xa6c] ss:$16 sps:$4 sm:$0xff]  }
 0x255   : > { %v1830_v44 = vpop.f32.mrb[3].mxu0  ;;  %v1871_v45 = vpop.f32.mrb[3].mxu1  ;;  %3690 = vmatprep.subr.bf16.mxu0 %v7650_v34  ;;  %3731 = vmatprep.subr.bf16.mxu1 %v7653_v35  ;;  %v7726_v34 = vld [vmem:[%s9379_s11 + $0xa60] ss:$16 sps:$4 sm:$0xff]   ;;  %v7729_v35 = vld [vmem:[%s9379_s11 + $0xa68] ss:$16 sps:$4 sm:$0xff]  }
 0x256   : > { %v7732_v42 = vld [vmem:[%s9379_s11 + $0xa80] ss:$16 sps:$4 sm:$0xff]   ;;  %v7735_v43 = vld [vmem:[%s9379_s11 + $0xa88] ss:$16 sps:$4 sm:$0xff]   ;;  %v7740_v44 = vld [vmem:[%s9379_s11 + $0xaa4] ss:$16 sps:$4 sm:$0xff]  }
 0x257   : > { %v7743_v45 = vld [vmem:[%s9379_s11 + $0xaac] ss:$16 sps:$4 sm:$0xff]  }
 0x258   : > { %3691 = vmatpush1.bf16.msra.mxu0 %v7648_v38  ;;  %3732 = vmatpush1.bf16.msra.mxu1 %v7651_v39  ;;  %v7734_v38 = vld [vmem:[%s9379_s11 + $0xa84] ss:$16 sps:$4 sm:$0xff]   ;;  %v7737_v39 = vld [vmem:[%s9379_s11 + $0xa8c] ss:$16 sps:$4 sm:$0xff]  }
 0x259   : > { %3692 = vmatprep.subr.bf16.mxu0 %v7656_v46  ;;  %3733 = vmatprep.subr.bf16.mxu1 %v7659_v47  ;;  %v7738_v46 = vld [vmem:[%s9379_s11 + $0xaa0] ss:$16 sps:$4 sm:$0xff]   ;;  %v7741_v47 = vld [vmem:[%s9379_s11 + $0xaa8] ss:$16 sps:$4 sm:$0xff]  }
 0x25c   : > { %3693 = vmatpush1.bf16.msra.mxu0 %v7654_v48  ;;  %3734 = vmatpush1.bf16.msra.mxu1 %v7657_v49  ;;  %v7746_v48 = vld [vmem:[%s9379_s11 + $0xac4] ss:$16 sps:$4 sm:$0xff]   ;;  %v7749_v49 = vld [vmem:[%s9379_s11 + $0xacc] ss:$16 sps:$4 sm:$0xff]  }
 0x25d   : > { %3694 = vmatprep.subr.bf16.mxu0 %v7662_v50  ;;  %3735 = vmatprep.subr.bf16.mxu1 %v7665_v51 }
 0x260   : > { %3695 = vmatpush1.bf16.msra.mxu0 %v7660_v52  ;;  %3736 = vmatpush1.bf16.msra.mxu1 %v7663_v53  ;;  %v7744_v52 = vld [vmem:[%s9379_s11 + $0xac0] ss:$16 sps:$4 sm:$0xff]   ;;  %v7747_v53 = vld [vmem:[%s9379_s11 + $0xac8] ss:$16 sps:$4 sm:$0xff]  }
 0x261   : > { %3696 = vmatprep.subr.bf16.mxu0 %v7668_v54  ;;  %3737 = vmatprep.subr.bf16.mxu1 %v7671_v55 }
 0x264   : > { %3697 = vmatpush1.bf16.msra.mxu0 %v7666_v56  ;;  %3738 = vmatpush1.bf16.msra.mxu1 %v7669_v57 }
 0x265   : > { %3698 = vmatprep.subr.bf16.mxu0 %v7674_v58  ;;  %3739 = vmatprep.subr.bf16.mxu1 %v7677_v59 }
 0x268   : > { %3699 = vmatpush1.bf16.msra.mxu0 %v7672_v60  ;;  %3740 = vmatpush1.bf16.msra.mxu1 %v7675_v61 }
 0x269   : > { %3700 = vmatprep.subr.bf16.mxu0 %v7680_v62  ;;  %3741 = vmatprep.subr.bf16.mxu1 %v7683_v63 }
 0x26c   : > { %3701 = vmatpush1.bf16.msra.mxu0 %v7678_v2  ;;  %3742 = vmatpush1.bf16.msra.mxu1 %v7681_v3  ;;  %v7752_v2 = vld [vmem:[%s9379_s11 + $0xae4] ss:$16 sps:$4 sm:$0xff]   ;;  %v7755_v3 = vld [vmem:[%s9379_s11 + $0xaec] ss:$16 sps:$4 sm:$0xff]  }
 0x26d   : > { %3702 = vmatprep.subr.bf16.mxu0 %v7686_v4  ;;  %3743 = vmatprep.subr.bf16.mxu1 %v7689_v5  ;;  %v7750_v4 = vld [vmem:[%s9379_s11 + $0xae0] ss:$16 sps:$4 sm:$0xff]   ;;  %v7753_v5 = vld [vmem:[%s9379_s11 + $0xae8] ss:$16 sps:$4 sm:$0xff]  }
 0x270   : > { %3703 = vmatpush1.bf16.msra.mxu0 %v7684_v7  ;;  %3744 = vmatpush1.bf16.msra.mxu1 %v7687_v8  ;;  %v7758_v7 = vld [vmem:[%s9379_s11 + $0xb04] ss:$16 sps:$4 sm:$0xff]   ;;  %v7761_v8 = vld [vmem:[%s9379_s11 + $0xb0c] ss:$16 sps:$4 sm:$0xff]  }
 0x271   : > { %3704 = vmatprep.subr.bf16.mxu0 %v7692_v9  ;;  %3745 = vmatprep.subr.bf16.mxu1 %v7695_v10  ;;  %v7756_v9 = vld [vmem:[%s9379_s11 + $0xb00] ss:$16 sps:$4 sm:$0xff]   ;;  %v7759_v10 = vld [vmem:[%s9379_s11 + $0xb08] ss:$16 sps:$4 sm:$0xff]  }
 0x274   : > { %3705 = vmatpush1.bf16.msra.mxu0 %v7690_v11  ;;  %3746 = vmatpush1.bf16.msra.mxu1 %v7693_v12  ;;  %v7764_v11 = vld [vmem:[%s9379_s11 + $0xb24] ss:$16 sps:$4 sm:$0xff]   ;;  %v7767_v12 = vld [vmem:[%s9379_s11 + $0xb2c] ss:$16 sps:$4 sm:$0xff]  }
 0x275   : > { %3706 = vmatprep.subr.bf16.mxu0 %v7698_v0  ;;  %3747 = vmatprep.subr.bf16.mxu1 %v7701_v13  ;;  %v7762_v0 = vld [vmem:[%s9379_s11 + $0xb20] ss:$16 sps:$4 sm:$0xff]   ;;  %v7765_v13 = vld [vmem:[%s9379_s11 + $0xb28] ss:$16 sps:$4 sm:$0xff]  }
 0x278   : > { %3707 = vmatpush1.bf16.msra.mxu0 %v7696_v14  ;;  %3748 = vmatpush1.bf16.msra.mxu1 %v7699_v15  ;;  %v7770_v14 = vld [vmem:[%s9379_s11 + $0xb44] ss:$16 sps:$4 sm:$0xff]   ;;  %v7773_v15 = vld [vmem:[%s9379_s11 + $0xb4c] ss:$16 sps:$4 sm:$0xff]  }
 0x279   : > { %3708 = vmatprep.subr.bf16.mxu0 %v7704_v16  ;;  %3749 = vmatprep.subr.bf16.mxu1 %v7707_v17  ;;  %v7768_v16 = vld [vmem:[%s9379_s11 + $0xb40] ss:$16 sps:$4 sm:$0xff]   ;;  %v7771_v17 = vld [vmem:[%s9379_s11 + $0xb48] ss:$16 sps:$4 sm:$0xff]  }
 0x27c   : > { %3709 = vmatpush1.bf16.msra.mxu0 %v7702_v18  ;;  %3750 = vmatpush1.bf16.msra.mxu1 %v7705_v19  ;;  %v7776_v18 = vld [vmem:[%s9379_s11 + $0xb64] ss:$16 sps:$4 sm:$0xff]   ;;  %v7779_v19 = vld [vmem:[%s9379_s11 + $0xb6c] ss:$16 sps:$4 sm:$0xff]  }
 0x27d   : > { %4150 = vmatprep.subr.bf16.mxu0 %v7710_v20  ;;  %4191 = vmatprep.subr.bf16.mxu1 %v7713_v21  ;;  %v7774_v20 = vld [vmem:[%s9379_s11 + $0xb60] ss:$16 sps:$4 sm:$0xff]   ;;  %v7777_v21 = vld [vmem:[%s9379_s11 + $0xb68] ss:$16 sps:$4 sm:$0xff]  }
 0x27f   : > { %3711 = vmatmul.mubr.bf16.vlgmr.msra.gmra.mrb[16].mxu0 %v9449_v6  ;;  %3752 = vmatmul.mubr.bf16.vlgmr.msra.gmra.mrb[16].mxu1 %v9449_v6 }
 0x280   : > { %4151 = vmatpush1.bf16.msra.mxu0 %v7708_v22  ;;  %4192 = vmatpush1.bf16.msra.mxu1 %v7711_v23  ;;  %v7782_v22 = vld [vmem:[%s9379_s11 + $0xb84] ss:$16 sps:$4 sm:$0xff]   ;;  %v7785_v23 = vld [vmem:[%s9379_s11 + $0xb8c] ss:$16 sps:$4 sm:$0xff]  }
 0x281   : > { %4152 = vmatprep.subr.bf16.mxu0 %v7716_v24  ;;  %4193 = vmatprep.subr.bf16.mxu1 %v7719_v25  ;;  %v7780_v24 = vld [vmem:[%s9379_s11 + $0xb80] ss:$16 sps:$4 sm:$0xff]   ;;  %v7783_v25 = vld [vmem:[%s9379_s11 + $0xb88] ss:$16 sps:$4 sm:$0xff]  }
 0x282   : > { %4182 = vmatprep.mubr.bf16.mxu0 %v9375_v1  ;;  %4223 = vmatprep.mubr.bf16.mxu1 %v9375_v1 }
 0x284   : > { %4153 = vmatpush1.bf16.msra.mxu0 %v7714_v26  ;;  %4194 = vmatpush1.bf16.msra.mxu1 %v7717_v27  ;;  %v7788_v26 = vld [vmem:[%s9379_s11 + $0xba4] ss:$16 sps:$4 sm:$0xff]   ;;  %v7791_v27 = vld [vmem:[%s9379_s11 + $0xbac] ss:$16 sps:$4 sm:$0xff]  }
 0x285   : > { %4154 = vmatprep.subr.bf16.mxu0 %v7722_v28  ;;  %4195 = vmatprep.subr.bf16.mxu1 %v7725_v29  ;;  %v7786_v28 = vld [vmem:[%s9379_s11 + $0xba0] ss:$16 sps:$4 sm:$0xff]   ;;  %v7789_v29 = vld [vmem:[%s9379_s11 + $0xba8] ss:$16 sps:$4 sm:$0xff]  }
 0x288   : > { %4155 = vmatpush1.bf16.msra.mxu0 %v7720_v30  ;;  %4196 = vmatpush1.bf16.msra.mxu1 %v7723_v31  ;;  %v7794_v30 = vld [vmem:[%s9379_s11 + $0xbc4] ss:$16 sps:$4 sm:$0xff]   ;;  %v7797_v31 = vld [vmem:[%s9379_s11 + $0xbcc] ss:$16 sps:$4 sm:$0xff]  }
 0x289   : > { %4156 = vmatprep.subr.bf16.mxu0 %v7728_v32  ;;  %4197 = vmatprep.subr.bf16.mxu1 %v7731_v33  ;;  %v7792_v32 = vld [vmem:[%s9379_s11 + $0xbc0] ss:$16 sps:$4 sm:$0xff]   ;;  %v7795_v33 = vld [vmem:[%s9379_s11 + $0xbc8] ss:$16 sps:$4 sm:$0xff]  }
 0x28c   : > { %4157 = vmatpush1.bf16.msra.mxu0 %v7726_v34  ;;  %4198 = vmatpush1.bf16.msra.mxu1 %v7729_v35  ;;  %v7800_v34 = vld [vmem:[%s9379_s11 + $0xbe4] ss:$16 sps:$4 sm:$0xff]   ;;  %v7803_v35 = vld [vmem:[%s9379_s11 + $0xbec] ss:$16 sps:$4 sm:$0xff]  }
 0x28d   : > { %4158 = vmatprep.subr.bf16.mxu0 %v7734_v38  ;;  %4199 = vmatprep.subr.bf16.mxu1 %v7737_v39  ;;  %v7798_v38 = vld [vmem:[%s9379_s11 + $0xbe0] ss:$16 sps:$4 sm:$0xff]   ;;  %v7801_v39 = vld [vmem:[%s9379_s11 + $0xbe8] ss:$16 sps:$4 sm:$0xff]  }
 0x290   : > { %4159 = vmatpush1.bf16.msra.mxu0 %v7732_v42  ;;  %4200 = vmatpush1.bf16.msra.mxu1 %v7735_v43  ;;  %v7806_v42 = vld [vmem:[%s9379_s11 + $0xc04] ss:$16 sps:$4 sm:$0xff]   ;;  %v7809_v43 = vld [vmem:[%s9379_s11 + $0xc0c] ss:$16 sps:$4 sm:$0xff]  }
 0x291   : > { %4160 = vmatprep.subr.bf16.mxu0 %v7740_v44  ;;  %4201 = vmatprep.subr.bf16.mxu1 %v7743_v45  ;;  %v7804_v44 = vld [vmem:[%s9379_s11 + $0xc00] ss:$16 sps:$4 sm:$0xff]   ;;  %v7807_v45 = vld [vmem:[%s9379_s11 + $0xc08] ss:$16 sps:$4 sm:$0xff]  }
 0x292   : > { %v9759_v50 = vpop.f32.mrb[4].mxu0  ;;  %v9761_v51 = vpop.f32.mrb[4].mxu1 }
 0x293   : > { %v7150_v54 = vpack.c.bf16 %v9759_v50, %v9683_v36  ;;  %v7166_v55 = vpack.c.bf16 %v9761_v51, %v9685_v37  ;;  %v9769_v56 = vpop.f32.mrb[5].mxu0  ;;  %v9771_v57 = vpop.f32.mrb[5].mxu1 }
 0x294   : > { %v7148_v58 = vpack.c.bf16 %v9769_v56, %v9689_v40  ;;  %v7164_v59 = vpack.c.bf16 %v9771_v57, %v9691_v41  ;;  %v2300_v60 = vpop.f32.mrb[6].mxu0  ;;  %v2341_v61 = vpop.f32.mrb[6].mxu1  ;;  %4161 = vmatpush1.bf16.msra.mxu0 %v7738_v46  ;;  %4202 = vmatpush1.bf16.msra.mxu1 %v7741_v47  ;;  %v7812_v46 = vld [vmem:[%s9379_s11 + $0xc24] ss:$16 sps:$4 sm:$0xff]   ;;  %v7815_v47 = vld [vmem:[%s9379_s11 + $0xc2c] ss:$16 sps:$4 sm:$0xff]  }
 0x295   : > { %v2301_v62 = vpop.f32.mrb[7].mxu0  ;;  %v2342_v63 = vpop.f32.mrb[7].mxu1  ;;  %4162 = vmatprep.subr.bf16.mxu0 %v7746_v48  ;;  %4203 = vmatprep.subr.bf16.mxu1 %v7749_v49  ;;  %v7810_v48 = vld [vmem:[%s9379_s11 + $0xc20] ss:$16 sps:$4 sm:$0xff]   ;;  %v7813_v49 = vld [vmem:[%s9379_s11 + $0xc28] ss:$16 sps:$4 sm:$0xff]  }
 0x296   : > { %v7816_v60 = vld [vmem:[%s9379_s11 + $0xc40] ss:$16 sps:$4 sm:$0xff]   ;;  %v7819_v61 = vld [vmem:[%s9379_s11 + $0xc48] ss:$16 sps:$4 sm:$0xff]   ;;  %v7824_v62 = vld [vmem:[%s9379_s11 + $0xc64] ss:$16 sps:$4 sm:$0xff]  }
 0x297   : > { %v7827_v63 = vld [vmem:[%s9379_s11 + $0xc6c] ss:$16 sps:$4 sm:$0xff]  }
 0x298   : > { %4163 = vmatpush1.bf16.msra.mxu0 %v7744_v52  ;;  %4204 = vmatpush1.bf16.msra.mxu1 %v7747_v53  ;;  %v7818_v52 = vld [vmem:[%s9379_s11 + $0xc44] ss:$16 sps:$4 sm:$0xff]   ;;  %v7821_v53 = vld [vmem:[%s9379_s11 + $0xc4c] ss:$16 sps:$4 sm:$0xff]  }
 0x299   : > { %4164 = vmatprep.subr.bf16.mxu0 %v7752_v2  ;;  %4205 = vmatprep.subr.bf16.mxu1 %v7755_v3  ;;  %v7822_v2 = vld [vmem:[%s9379_s11 + $0xc60] ss:$16 sps:$4 sm:$0xff]   ;;  %v7825_v3 = vld [vmem:[%s9379_s11 + $0xc68] ss:$16 sps:$4 sm:$0xff]  }
 0x29c   : > { %4165 = vmatpush1.bf16.msra.mxu0 %v7750_v4  ;;  %4206 = vmatpush1.bf16.msra.mxu1 %v7753_v5  ;;  %v7830_v4 = vld [vmem:[%s9379_s11 + $0xc84] ss:$16 sps:$4 sm:$0xff]   ;;  %v7833_v5 = vld [vmem:[%s9379_s11 + $0xc8c] ss:$16 sps:$4 sm:$0xff]  }
 0x29d   : > { %4166 = vmatprep.subr.bf16.mxu0 %v7758_v7  ;;  %4207 = vmatprep.subr.bf16.mxu1 %v7761_v8  ;;  %v7828_v7 = vld [vmem:[%s9379_s11 + $0xc80] ss:$16 sps:$4 sm:$0xff]   ;;  %v7831_v8 = vld [vmem:[%s9379_s11 + $0xc88] ss:$16 sps:$4 sm:$0xff]  }
 0x2a0   : > { %4167 = vmatpush1.bf16.msra.mxu0 %v7756_v9  ;;  %4208 = vmatpush1.bf16.msra.mxu1 %v7759_v10  ;;  %v7836_v9 = vld [vmem:[%s9379_s11 + $0xca4] ss:$16 sps:$4 sm:$0xff]   ;;  %v7839_v10 = vld [vmem:[%s9379_s11 + $0xcac] ss:$16 sps:$4 sm:$0xff]  }
 0x2a1   : > { %4168 = vmatprep.subr.bf16.mxu0 %v7764_v11  ;;  %4209 = vmatprep.subr.bf16.mxu1 %v7767_v12  ;;  %v7834_v11 = vld [vmem:[%s9379_s11 + $0xca0] ss:$16 sps:$4 sm:$0xff]   ;;  %v7837_v12 = vld [vmem:[%s9379_s11 + $0xca8] ss:$16 sps:$4 sm:$0xff]  }
 0x2a4   : > { %4169 = vmatpush1.bf16.msra.mxu0 %v7762_v0  ;;  %4210 = vmatpush1.bf16.msra.mxu1 %v7765_v13  ;;  %v7842_v0 = vld [vmem:[%s9379_s11 + $0xcc4] ss:$16 sps:$4 sm:$0xff]   ;;  %v7845_v13 = vld [vmem:[%s9379_s11 + $0xccc] ss:$16 sps:$4 sm:$0xff]  }
 0x2a5   : > { %4170 = vmatprep.subr.bf16.mxu0 %v7770_v14  ;;  %4211 = vmatprep.subr.bf16.mxu1 %v7773_v15 }
 0x2a8   : > { %4171 = vmatpush1.bf16.msra.mxu0 %v7768_v16  ;;  %4212 = vmatpush1.bf16.msra.mxu1 %v7771_v17 }
 0x2a9   : > { %4172 = vmatprep.subr.bf16.mxu0 %v7776_v18  ;;  %4213 = vmatprep.subr.bf16.mxu1 %v7779_v19 }
 0x2ac   : > { %4173 = vmatpush1.bf16.msra.mxu0 %v7774_v20  ;;  %4214 = vmatpush1.bf16.msra.mxu1 %v7777_v21  ;;  %v7840_v20 = vld [vmem:[%s9379_s11 + $0xcc0] ss:$16 sps:$4 sm:$0xff]   ;;  %v7843_v21 = vld [vmem:[%s9379_s11 + $0xcc8] ss:$16 sps:$4 sm:$0xff]  }
 0x2ad   : > { %4174 = vmatprep.subr.bf16.mxu0 %v7782_v22  ;;  %4215 = vmatprep.subr.bf16.mxu1 %v7785_v23 }
 0x2b0   : > { %4175 = vmatpush1.bf16.msra.mxu0 %v7780_v24  ;;  %4216 = vmatpush1.bf16.msra.mxu1 %v7783_v25  ;;  %v7848_v24 = vld [vmem:[%s9379_s11 + $0xce4] ss:$16 sps:$4 sm:$0xff]   ;;  %v7851_v25 = vld [vmem:[%s9379_s11 + $0xcec] ss:$16 sps:$4 sm:$0xff]  }
 0x2b1   : > { %4176 = vmatprep.subr.bf16.mxu0 %v7788_v26  ;;  %4217 = vmatprep.subr.bf16.mxu1 %v7791_v27  ;;  %v7846_v26 = vld [vmem:[%s9379_s11 + $0xce0] ss:$16 sps:$4 sm:$0xff]   ;;  %v7849_v27 = vld [vmem:[%s9379_s11 + $0xce8] ss:$16 sps:$4 sm:$0xff]  }
 0x2b4   : > { %4177 = vmatpush1.bf16.msra.mxu0 %v7786_v28  ;;  %4218 = vmatpush1.bf16.msra.mxu1 %v7789_v29  ;;  %v7854_v28 = vld [vmem:[%s9379_s11 + $0xd04] ss:$16 sps:$4 sm:$0xff]   ;;  %v7857_v29 = vld [vmem:[%s9379_s11 + $0xd0c] ss:$16 sps:$4 sm:$0xff]  }
 0x2b5   : > { %4178 = vmatprep.subr.bf16.mxu0 %v7794_v30  ;;  %4219 = vmatprep.subr.bf16.mxu1 %v7797_v31  ;;  %v7852_v30 = vld [vmem:[%s9379_s11 + $0xd00] ss:$16 sps:$4 sm:$0xff]   ;;  %v7855_v31 = vld [vmem:[%s9379_s11 + $0xd08] ss:$16 sps:$4 sm:$0xff]  }
 0x2b8   : > { %4179 = vmatpush1.bf16.msra.mxu0 %v7792_v32  ;;  %4220 = vmatpush1.bf16.msra.mxu1 %v7795_v33  ;;  %v7860_v32 = vld [vmem:[%s9379_s11 + $0xd24] ss:$16 sps:$4 sm:$0xff]   ;;  %v7863_v33 = vld [vmem:[%s9379_s11 + $0xd2c] ss:$16 sps:$4 sm:$0xff]  }
 0x2b9   : > { %4180 = vmatprep.subr.bf16.mxu0 %v7800_v34  ;;  %4221 = vmatprep.subr.bf16.mxu1 %v7803_v35  ;;  %v7858_v34 = vld [vmem:[%s9379_s11 + $0xd20] ss:$16 sps:$4 sm:$0xff]   ;;  %v7861_v35 = vld [vmem:[%s9379_s11 + $0xd28] ss:$16 sps:$4 sm:$0xff]  }
 0x2bc   : > { %4181 = vmatpush1.bf16.msra.mxu0 %v7798_v38  ;;  %4222 = vmatpush1.bf16.msra.mxu1 %v7801_v39  ;;  %v7866_v38 = vld [vmem:[%s9379_s11 + $0xd44] ss:$16 sps:$4 sm:$0xff]   ;;  %v7869_v39 = vld [vmem:[%s9379_s11 + $0xd4c] ss:$16 sps:$4 sm:$0xff]  }
 0x2bd   : > { %4622 = vmatprep.subr.bf16.mxu0 %v7806_v42  ;;  %4663 = vmatprep.subr.bf16.mxu1 %v7809_v43  ;;  %v7864_v42 = vld [vmem:[%s9379_s11 + $0xd40] ss:$16 sps:$4 sm:$0xff]   ;;  %v7867_v43 = vld [vmem:[%s9379_s11 + $0xd48] ss:$16 sps:$4 sm:$0xff]  }
 0x2bf   : > { %4183 = vmatmul.mubr.bf16.vlgmr.msra.gmra.mrb[20].mxu0 %v9449_v6  ;;  %4224 = vmatmul.mubr.bf16.vlgmr.msra.gmra.mrb[20].mxu1 %v9449_v6 }
 0x2c0   : > { %4623 = vmatpush1.bf16.msra.mxu0 %v7804_v44  ;;  %4664 = vmatpush1.bf16.msra.mxu1 %v7807_v45  ;;  %v7872_v44 = vld [vmem:[%s9379_s11 + $0xd64] ss:$16 sps:$4 sm:$0xff]   ;;  %v7875_v45 = vld [vmem:[%s9379_s11 + $0xd6c] ss:$16 sps:$4 sm:$0xff]  }
 0x2c1   : > { %4624 = vmatprep.subr.bf16.mxu0 %v7812_v46  ;;  %4665 = vmatprep.subr.bf16.mxu1 %v7815_v47  ;;  %v7870_v46 = vld [vmem:[%s9379_s11 + $0xd60] ss:$16 sps:$4 sm:$0xff]   ;;  %v7873_v47 = vld [vmem:[%s9379_s11 + $0xd68] ss:$16 sps:$4 sm:$0xff]  }
 0x2c2   : > { %4654 = vmatprep.mubr.bf16.mxu0 %v9375_v1  ;;  %4695 = vmatprep.mubr.bf16.mxu1 %v9375_v1 }
 0x2c4   : > { %4625 = vmatpush1.bf16.msra.mxu0 %v7810_v48  ;;  %4666 = vmatpush1.bf16.msra.mxu1 %v7813_v49  ;;  %v7878_v48 = vld [vmem:[%s9379_s11 + $0xd84] ss:$16 sps:$4 sm:$0xff]   ;;  %v7881_v49 = vld [vmem:[%s9379_s11 + $0xd8c] ss:$16 sps:$4 sm:$0xff]  }
 0x2c5   : > { %4626 = vmatprep.subr.bf16.mxu0 %v7818_v52  ;;  %4667 = vmatprep.subr.bf16.mxu1 %v7821_v53  ;;  %v7876_v52 = vld [vmem:[%s9379_s11 + $0xd80] ss:$16 sps:$4 sm:$0xff]   ;;  %v7879_v53 = vld [vmem:[%s9379_s11 + $0xd88] ss:$16 sps:$4 sm:$0xff]  }
 0x2c8   : > { %4627 = vmatpush1.bf16.msra.mxu0 %v7816_v60  ;;  %4668 = vmatpush1.bf16.msra.mxu1 %v7819_v61  ;;  %v7884_v60 = vld [vmem:[%s9379_s11 + $0xda4] ss:$16 sps:$4 sm:$0xff]   ;;  %v7887_v61 = vld [vmem:[%s9379_s11 + $0xdac] ss:$16 sps:$4 sm:$0xff]  }
 0x2c9   : > { %4628 = vmatprep.subr.bf16.mxu0 %v7824_v62  ;;  %4669 = vmatprep.subr.bf16.mxu1 %v7827_v63  ;;  %v7882_v62 = vld [vmem:[%s9379_s11 + $0xda0] ss:$16 sps:$4 sm:$0xff]   ;;  %v7885_v63 = vld [vmem:[%s9379_s11 + $0xda8] ss:$16 sps:$4 sm:$0xff]  }
 0x2cc   : > { %4629 = vmatpush1.bf16.msra.mxu0 %v7822_v2  ;;  %4670 = vmatpush1.bf16.msra.mxu1 %v7825_v3  ;;  %v7890_v2 = vld [vmem:[%s9379_s11 + $0xdc4] ss:$16 sps:$4 sm:$0xff]   ;;  %v7893_v3 = vld [vmem:[%s9379_s11 + $0xdcc] ss:$16 sps:$4 sm:$0xff]  }
 0x2cd   : > { %4630 = vmatprep.subr.bf16.mxu0 %v7830_v4  ;;  %4671 = vmatprep.subr.bf16.mxu1 %v7833_v5  ;;  %v7888_v4 = vld [vmem:[%s9379_s11 + $0xdc0] ss:$16 sps:$4 sm:$0xff]   ;;  %v7891_v5 = vld [vmem:[%s9379_s11 + $0xdc8] ss:$16 sps:$4 sm:$0xff]  }
 0x2d0   : > { %4631 = vmatpush1.bf16.msra.mxu0 %v7828_v7  ;;  %4672 = vmatpush1.bf16.msra.mxu1 %v7831_v8  ;;  %v7896_v7 = vld [vmem:[%s9379_s11 + $0xde4] ss:$16 sps:$4 sm:$0xff]   ;;  %v7899_v8 = vld [vmem:[%s9379_s11 + $0xdec] ss:$16 sps:$4 sm:$0xff]  }
 0x2d1   : > { %4632 = vmatprep.subr.bf16.mxu0 %v7836_v9  ;;  %4673 = vmatprep.subr.bf16.mxu1 %v7839_v10  ;;  %v7894_v9 = vld [vmem:[%s9379_s11 + $0xde0] ss:$16 sps:$4 sm:$0xff]   ;;  %v7897_v10 = vld [vmem:[%s9379_s11 + $0xde8] ss:$16 sps:$4 sm:$0xff]  }
 0x2d2   : > { %v9843_v14 = vpop.f32.mrb[8].mxu0  ;;  %v9845_v15 = vpop.f32.mrb[8].mxu1 }
 0x2d3   : > { %v9847_v16 = vpop.f32.mrb[9].mxu0  ;;  %v9849_v17 = vpop.f32.mrb[9].mxu1 }
 0x2d4   : > { %v2772_v18 = vpop.f32.mrb[10].mxu0  ;;  %v2813_v19 = vpop.f32.mrb[10].mxu1  ;;  %4633 = vmatpush1.bf16.msra.mxu0 %v7834_v11  ;;  %4674 = vmatpush1.bf16.msra.mxu1 %v7837_v12  ;;  %v7902_v11 = vld [vmem:[%s9379_s11 + $0xe04] ss:$16 sps:$4 sm:$0xff]   ;;  %v7905_v12 = vld [vmem:[%s9379_s11 + $0xe0c] ss:$16 sps:$4 sm:$0xff]  }
 0x2d5   : > { %v2773_v22 = vpop.f32.mrb[11].mxu0  ;;  %v2814_v23 = vpop.f32.mrb[11].mxu1  ;;  %4634 = vmatprep.subr.bf16.mxu0 %v7842_v0  ;;  %4675 = vmatprep.subr.bf16.mxu1 %v7845_v13  ;;  %v7900_v0 = vld [vmem:[%s9379_s11 + $0xe00] ss:$16 sps:$4 sm:$0xff]   ;;  %v7903_v13 = vld [vmem:[%s9379_s11 + $0xe08] ss:$16 sps:$4 sm:$0xff]  }
 0x2d6   : > { %v7908_v18 = vld [vmem:[%s9379_s11 + $0xe24] ss:$16 sps:$4 sm:$0xff]   ;;  %v7911_v19 = vld [vmem:[%s9379_s11 + $0xe2c] ss:$16 sps:$4 sm:$0xff]  }
 0x2d7   : > { %v7914_v22 = vld [vmem:[%s9379_s11 + $0xe44] ss:$16 sps:$4 sm:$0xff]   ;;  %v7917_v23 = vld [vmem:[%s9379_s11 + $0xe4c] ss:$16 sps:$4 sm:$0xff]  }
 0x2d8   : > { %4635 = vmatpush1.bf16.msra.mxu0 %v7840_v20  ;;  %4676 = vmatpush1.bf16.msra.mxu1 %v7843_v21  ;;  %v7906_v20 = vld [vmem:[%s9379_s11 + $0xe20] ss:$16 sps:$4 sm:$0xff]   ;;  %v7909_v21 = vld [vmem:[%s9379_s11 + $0xe28] ss:$16 sps:$4 sm:$0xff]  }
 0x2d9   : > { %4636 = vmatprep.subr.bf16.mxu0 %v7848_v24  ;;  %4677 = vmatprep.subr.bf16.mxu1 %v7851_v25  ;;  %v7912_v24 = vld [vmem:[%s9379_s11 + $0xe40] ss:$16 sps:$4 sm:$0xff]   ;;  %v7915_v25 = vld [vmem:[%s9379_s11 + $0xe48] ss:$16 sps:$4 sm:$0xff]  }
 0x2dc   : > { %4637 = vmatpush1.bf16.msra.mxu0 %v7846_v26  ;;  %4678 = vmatpush1.bf16.msra.mxu1 %v7849_v27  ;;  %v7920_v26 = vld [vmem:[%s9379_s11 + $0xe64] ss:$16 sps:$4 sm:$0xff]   ;;  %v7923_v27 = vld [vmem:[%s9379_s11 + $0xe6c] ss:$16 sps:$4 sm:$0xff]  }
 0x2dd   : > { %4638 = vmatprep.subr.bf16.mxu0 %v7854_v28  ;;  %4679 = vmatprep.subr.bf16.mxu1 %v7857_v29  ;;  %v7918_v28 = vld [vmem:[%s9379_s11 + $0xe60] ss:$16 sps:$4 sm:$0xff]   ;;  %v7921_v29 = vld [vmem:[%s9379_s11 + $0xe68] ss:$16 sps:$4 sm:$0xff]  }
 0x2e0   : > { %4639 = vmatpush1.bf16.msra.mxu0 %v7852_v30  ;;  %4680 = vmatpush1.bf16.msra.mxu1 %v7855_v31  ;;  %v7926_v30 = vld [vmem:[%s9379_s11 + $0xe84] ss:$16 sps:$4 sm:$0xff]   ;;  %v7929_v31 = vld [vmem:[%s9379_s11 + $0xe8c] ss:$16 sps:$4 sm:$0xff]  }
 0x2e1   : > { %4640 = vmatprep.subr.bf16.mxu0 %v7860_v32  ;;  %4681 = vmatprep.subr.bf16.mxu1 %v7863_v33  ;;  %v7924_v32 = vld [vmem:[%s9379_s11 + $0xe80] ss:$16 sps:$4 sm:$0xff]   ;;  %v7927_v33 = vld [vmem:[%s9379_s11 + $0xe88] ss:$16 sps:$4 sm:$0xff]  }
 0x2e4   : > { %4641 = vmatpush1.bf16.msra.mxu0 %v7858_v34  ;;  %4682 = vmatpush1.bf16.msra.mxu1 %v7861_v35  ;;  %v7932_v34 = vld [vmem:[%s9379_s11 + $0xea4] ss:$16 sps:$4 sm:$0xff]   ;;  %v7935_v35 = vld [vmem:[%s9379_s11 + $0xeac] ss:$16 sps:$4 sm:$0xff]  }
 0x2e5   : > { %4642 = vmatprep.subr.bf16.mxu0 %v7866_v38  ;;  %4683 = vmatprep.subr.bf16.mxu1 %v7869_v39  ;;  %v7930_v38 = vld [vmem:[%s9379_s11 + $0xea0] ss:$16 sps:$4 sm:$0xff]   ;;  %v7933_v39 = vld [vmem:[%s9379_s11 + $0xea8] ss:$16 sps:$4 sm:$0xff]  }
 0x2e8   : > { %4643 = vmatpush1.bf16.msra.mxu0 %v7864_v42  ;;  %4684 = vmatpush1.bf16.msra.mxu1 %v7867_v43  ;;  %v7938_v42 = vld [vmem:[%s9379_s11 + $0xec4] ss:$16 sps:$4 sm:$0xff]   ;;  %v7941_v43 = vld [vmem:[%s9379_s11 + $0xecc] ss:$16 sps:$4 sm:$0xff]  }
 0x2e9   : > { %4644 = vmatprep.subr.bf16.mxu0 %v7872_v44  ;;  %4685 = vmatprep.subr.bf16.mxu1 %v7875_v45 }
 0x2ec   : > { %4645 = vmatpush1.bf16.msra.mxu0 %v7870_v46  ;;  %4686 = vmatpush1.bf16.msra.mxu1 %v7873_v47 }
 0x2ed   : > { %4646 = vmatprep.subr.bf16.mxu0 %v7878_v48  ;;  %4687 = vmatprep.subr.bf16.mxu1 %v7881_v49 }
 0x2f0   : > { %4647 = vmatpush1.bf16.msra.mxu0 %v7876_v52  ;;  %4688 = vmatpush1.bf16.msra.mxu1 %v7879_v53 }
 0x2f1   : > { %4648 = vmatprep.subr.bf16.mxu0 %v7884_v60  ;;  %4689 = vmatprep.subr.bf16.mxu1 %v7887_v61 }
 0x2f4   : > { %4649 = vmatpush1.bf16.msra.mxu0 %v7882_v62  ;;  %4690 = vmatpush1.bf16.msra.mxu1 %v7885_v63  ;;  %v7936_v62 = vld [vmem:[%s9379_s11 + $0xec0] ss:$16 sps:$4 sm:$0xff]   ;;  %v7939_v63 = vld [vmem:[%s9379_s11 + $0xec8] ss:$16 sps:$4 sm:$0xff]  }
 0x2f5   : > { %4650 = vmatprep.subr.bf16.mxu0 %v7890_v2  ;;  %4691 = vmatprep.subr.bf16.mxu1 %v7893_v3 }
 0x2f8   : > { %4651 = vmatpush1.bf16.msra.mxu0 %v7888_v4  ;;  %4692 = vmatpush1.bf16.msra.mxu1 %v7891_v5  ;;  %v7944_v4 = vld [vmem:[%s9379_s11 + $0xee4] ss:$16 sps:$4 sm:$0xff]   ;;  %v7947_v5 = vld [vmem:[%s9379_s11 + $0xeec] ss:$16 sps:$4 sm:$0xff]  }
 0x2f9   : > { %4652 = vmatprep.subr.bf16.mxu0 %v7896_v7  ;;  %4693 = vmatprep.subr.bf16.mxu1 %v7899_v8  ;;  %v7942_v7 = vld [vmem:[%s9379_s11 + $0xee0] ss:$16 sps:$4 sm:$0xff]   ;;  %v7945_v8 = vld [vmem:[%s9379_s11 + $0xee8] ss:$16 sps:$4 sm:$0xff]  }
 0x2fc   : > { %4653 = vmatpush1.bf16.msra.mxu0 %v7894_v9  ;;  %4694 = vmatpush1.bf16.msra.mxu1 %v7897_v10  ;;  %v7950_v9 = vld [vmem:[%s9379_s11 + $0xf04] ss:$16 sps:$4 sm:$0xff]   ;;  %v7953_v10 = vld [vmem:[%s9379_s11 + $0xf0c] ss:$16 sps:$4 sm:$0xff]  }
 0x2fd   : > { %5094 = vmatprep.subr.bf16.mxu0 %v7902_v11  ;;  %5135 = vmatprep.subr.bf16.mxu1 %v7905_v12  ;;  %v7948_v11 = vld [vmem:[%s9379_s11 + $0xf00] ss:$16 sps:$4 sm:$0xff]   ;;  %v7951_v12 = vld [vmem:[%s9379_s11 + $0xf08] ss:$16 sps:$4 sm:$0xff]  }
 0x2ff   : > { %4655 = vmatmul.mubr.bf16.vlgmr.msra.gmra.mrb[24].mxu0 %v9449_v6  ;;  %4696 = vmatmul.mubr.bf16.vlgmr.msra.gmra.mrb[24].mxu1 %v9449_v6 }
 0x300   : > { %5095 = vmatpush1.bf16.msra.mxu0 %v7900_v0  ;;  %5136 = vmatpush1.bf16.msra.mxu1 %v7903_v13  ;;  %v7956_v0 = vld [vmem:[%s9379_s11 + $0xf24] ss:$16 sps:$4 sm:$0xff]   ;;  %v7959_v13 = vld [vmem:[%s9379_s11 + $0xf2c] ss:$16 sps:$4 sm:$0xff]  }
 0x301   : > { %5096 = vmatprep.subr.bf16.mxu0 %v7908_v18  ;;  %5137 = vmatprep.subr.bf16.mxu1 %v7911_v19  ;;  %v7954_v18 = vld [vmem:[%s9379_s11 + $0xf20] ss:$16 sps:$4 sm:$0xff]   ;;  %v7957_v19 = vld [vmem:[%s9379_s11 + $0xf28] ss:$16 sps:$4 sm:$0xff]  }
 0x302   : > { %5126 = vmatprep.mubr.bf16.mxu0 %v9375_v1  ;;  %5167 = vmatprep.mubr.bf16.mxu1 %v9375_v1 }
 0x304   : > { %5097 = vmatpush1.bf16.msra.mxu0 %v7906_v20  ;;  %5138 = vmatpush1.bf16.msra.mxu1 %v7909_v21  ;;  %v7962_v20 = vld [vmem:[%s9379_s11 + $0xf44] ss:$16 sps:$4 sm:$0xff]   ;;  %v7965_v21 = vld [vmem:[%s9379_s11 + $0xf4c] ss:$16 sps:$4 sm:$0xff]  }
 0x305   : > { %5098 = vmatprep.subr.bf16.mxu0 %v7914_v22  ;;  %5139 = vmatprep.subr.bf16.mxu1 %v7917_v23  ;;  %v7960_v22 = vld [vmem:[%s9379_s11 + $0xf40] ss:$16 sps:$4 sm:$0xff]   ;;  %v7963_v23 = vld [vmem:[%s9379_s11 + $0xf48] ss:$16 sps:$4 sm:$0xff]  }
 0x308   : > { %5099 = vmatpush1.bf16.msra.mxu0 %v7912_v24  ;;  %5140 = vmatpush1.bf16.msra.mxu1 %v7915_v25  ;;  %v7968_v24 = vld [vmem:[%s9379_s11 + $0xf64] ss:$16 sps:$4 sm:$0xff]   ;;  %v7971_v25 = vld [vmem:[%s9379_s11 + $0xf6c] ss:$16 sps:$4 sm:$0xff]  }
 0x309   : > { %5100 = vmatprep.subr.bf16.mxu0 %v7920_v26  ;;  %5141 = vmatprep.subr.bf16.mxu1 %v7923_v27  ;;  %v7966_v26 = vld [vmem:[%s9379_s11 + $0xf60] ss:$16 sps:$4 sm:$0xff]   ;;  %v7969_v27 = vld [vmem:[%s9379_s11 + $0xf68] ss:$16 sps:$4 sm:$0xff]  }
 0x30c   : > { %5101 = vmatpush1.bf16.msra.mxu0 %v7918_v28  ;;  %5142 = vmatpush1.bf16.msra.mxu1 %v7921_v29  ;;  %v7974_v28 = vld [vmem:[%s9379_s11 + $0xf84] ss:$16 sps:$4 sm:$0xff]   ;;  %v7977_v29 = vld [vmem:[%s9379_s11 + $0xf8c] ss:$16 sps:$4 sm:$0xff]  }
 0x30d   : > { %5102 = vmatprep.subr.bf16.mxu0 %v7926_v30  ;;  %5143 = vmatprep.subr.bf16.mxu1 %v7929_v31  ;;  %v7972_v30 = vld [vmem:[%s9379_s11 + $0xf80] ss:$16 sps:$4 sm:$0xff]   ;;  %v7975_v31 = vld [vmem:[%s9379_s11 + $0xf88] ss:$16 sps:$4 sm:$0xff]  }
 0x310   : > { %5103 = vmatpush1.bf16.msra.mxu0 %v7924_v32  ;;  %5144 = vmatpush1.bf16.msra.mxu1 %v7927_v33  ;;  %v7980_v32 = vld [vmem:[%s9379_s11 + $0xfa4] ss:$16 sps:$4 sm:$0xff]   ;;  %v7983_v33 = vld [vmem:[%s9379_s11 + $0xfac] ss:$16 sps:$4 sm:$0xff]  }
 0x311   : > { %5104 = vmatprep.subr.bf16.mxu0 %v7932_v34  ;;  %5145 = vmatprep.subr.bf16.mxu1 %v7935_v35  ;;  %v7978_v34 = vld [vmem:[%s9379_s11 + $0xfa0] ss:$16 sps:$4 sm:$0xff]   ;;  %v7981_v35 = vld [vmem:[%s9379_s11 + $0xfa8] ss:$16 sps:$4 sm:$0xff]  }
 0x312   : > { %v9919_v44 = vpop.f32.mrb[12].mxu0  ;;  %v9921_v45 = vpop.f32.mrb[12].mxu1 }
 0x313   : > { %v7154_v46 = vpack.c.bf16 %v9919_v44, %v9843_v14  ;;  %v7170_v47 = vpack.c.bf16 %v9921_v45, %v9845_v15  ;;  %v9927_v48 = vpop.f32.mrb[13].mxu0  ;;  %v9929_v49 = vpop.f32.mrb[13].mxu1 }
 0x314   : > { %v7152_v52 = vpack.c.bf16 %v9927_v48, %v9847_v16  ;;  %v7168_v53 = vpack.c.bf16 %v9929_v49, %v9849_v17  ;;  %v3244_v60 = vpop.f32.mrb[14].mxu0  ;;  %v3285_v61 = vpop.f32.mrb[14].mxu1  ;;  %5105 = vmatpush1.bf16.msra.mxu0 %v7930_v38  ;;  %5146 = vmatpush1.bf16.msra.mxu1 %v7933_v39  ;;  %v7986_v38 = vld [vmem:[%s9379_s11 + $0xfc4] ss:$16 sps:$4 sm:$0xff]   ;;  %v7989_v39 = vld [vmem:[%s9379_s11 + $0xfcc] ss:$16 sps:$4 sm:$0xff]  }
 0x315   : > { %v3245_v2 = vpop.f32.mrb[15].mxu0  ;;  %v3286_v3 = vpop.f32.mrb[15].mxu1  ;;  %5106 = vmatprep.subr.bf16.mxu0 %v7938_v42  ;;  %5147 = vmatprep.subr.bf16.mxu1 %v7941_v43  ;;  %v7984_v42 = vld [vmem:[%s9379_s11 + $0xfc0] ss:$16 sps:$4 sm:$0xff]   ;;  %v7987_v43 = vld [vmem:[%s9379_s11 + $0xfc8] ss:$16 sps:$4 sm:$0xff]  }
 0x316   : > { %v7992_v60 = vld [vmem:[%s9379_s11 + $0xfe4] ss:$16 sps:$4 sm:$0xff]   ;;  %v7995_v61 = vld [vmem:[%s9379_s11 + $0xfec] ss:$16 sps:$4 sm:$0xff]  }
 0x317   : > { %v7998_v2 = vld [vmem:[%s9379_s11 + $0x1004] ss:$16 sps:$4 sm:$0xff]   ;;  %v8001_v3 = vld [vmem:[%s9379_s11 + $0x100c] ss:$16 sps:$4 sm:$0xff]  }
 0x318   : > { %5107 = vmatpush1.bf16.msra.mxu0 %v7936_v62  ;;  %5148 = vmatpush1.bf16.msra.mxu1 %v7939_v63  ;;  %v7990_v62 = vld [vmem:[%s9379_s11 + $0xfe0] ss:$16 sps:$4 sm:$0xff]   ;;  %v7993_v63 = vld [vmem:[%s9379_s11 + $0xfe8] ss:$16 sps:$4 sm:$0xff]  }
 0x319   : > { %5108 = vmatprep.subr.bf16.mxu0 %v7944_v4  ;;  %5149 = vmatprep.subr.bf16.mxu1 %v7947_v5  ;;  %v7996_v4 = vld [vmem:[%s9379_s11 + $0x1000] ss:$16 sps:$4 sm:$0xff]   ;;  %v7999_v5 = vld [vmem:[%s9379_s11 + $0x1008] ss:$16 sps:$4 sm:$0xff]  }
 0x31a   : > { %v5852_v48 = vld [vmem:[%s10141_s3] sm:$0xff]  ;;  %v7139_v49 = vld [vmem:[%s10141_s3 + $0x10] sm:$0xff] }
 0x31c   : > { %5109 = vmatpush1.bf16.msra.mxu0 %v7942_v7  ;;  %5150 = vmatpush1.bf16.msra.mxu1 %v7945_v8  ;;  %v8004_v7 = vld [vmem:[%s9379_s11 + $0x1024] ss:$16 sps:$4 sm:$0xff]   ;;  %v8007_v8 = vld [vmem:[%s9379_s11 + $0x102c] ss:$16 sps:$4 sm:$0xff]  }
 0x31d   : > { %5110 = vmatprep.subr.bf16.mxu0 %v7950_v9  ;;  %5151 = vmatprep.subr.bf16.mxu1 %v7953_v10  ;;  %v8002_v9 = vld [vmem:[%s9379_s11 + $0x1020] ss:$16 sps:$4 sm:$0xff]   ;;  %v8005_v10 = vld [vmem:[%s9379_s11 + $0x1028] ss:$16 sps:$4 sm:$0xff]  }
 0x320   : > { %5111 = vmatpush1.bf16.msra.mxu0 %v7948_v11  ;;  %5152 = vmatpush1.bf16.msra.mxu1 %v7951_v12  ;;  %v8010_v11 = vld [vmem:[%s9379_s11 + $0x1044] ss:$16 sps:$4 sm:$0xff]   ;;  %v8013_v12 = vld [vmem:[%s9379_s11 + $0x104c] ss:$16 sps:$4 sm:$0xff]  }
 0x321   : > { %5112 = vmatprep.subr.bf16.mxu0 %v7956_v0  ;;  %5153 = vmatprep.subr.bf16.mxu1 %v7959_v13  ;;  %v8008_v0 = vld [vmem:[%s9379_s11 + $0x1040] ss:$16 sps:$4 sm:$0xff]   ;;  %v8011_v13 = vld [vmem:[%s9379_s11 + $0x1048] ss:$16 sps:$4 sm:$0xff]  }
 0x324   : > { %5113 = vmatpush1.bf16.msra.mxu0 %v7954_v18  ;;  %5154 = vmatpush1.bf16.msra.mxu1 %v7957_v19  ;;  %v8016_v18 = vld [vmem:[%s9379_s11 + $0x1064] ss:$16 sps:$4 sm:$0xff]   ;;  %v8019_v19 = vld [vmem:[%s9379_s11 + $0x106c] ss:$16 sps:$4 sm:$0xff]  }
 0x325   : > { %5114 = vmatprep.subr.bf16.mxu0 %v7962_v20  ;;  %5155 = vmatprep.subr.bf16.mxu1 %v7965_v21  ;;  %v8014_v20 = vld [vmem:[%s9379_s11 + $0x1060] ss:$16 sps:$4 sm:$0xff]   ;;  %v8017_v21 = vld [vmem:[%s9379_s11 + $0x1068] ss:$16 sps:$4 sm:$0xff]  }
 0x328   : > { %5115 = vmatpush1.bf16.msra.mxu0 %v7960_v22  ;;  %5156 = vmatpush1.bf16.msra.mxu1 %v7963_v23  ;;  %v8025_v22 = vld [vmem:[%s9379_s11 + $0x108c] ss:$16 sps:$4 sm:$0xff]   ;;  %v8020_v23 = vld [vmem:[%s9379_s11 + $0x1080] ss:$16 sps:$4 sm:$0xff]  }
 0x329   : > { %5116 = vmatprep.subr.bf16.mxu0 %v7968_v24  ;;  %5157 = vmatprep.subr.bf16.mxu1 %v7971_v25  ;;  %v8023_v24 = vld [vmem:[%s9379_s11 + $0x1088] ss:$16 sps:$4 sm:$0xff]   ;;  %v8028_v25 = vld [vmem:[%s9379_s11 + $0x10a4] ss:$16 sps:$4 sm:$0xff]  }
 0x32c   : > { %5117 = vmatpush1.bf16.msra.mxu0 %v7966_v26  ;;  %5158 = vmatpush1.bf16.msra.mxu1 %v7969_v27  ;;  %v8031_v26 = vld [vmem:[%s9379_s11 + $0x10ac] ss:$16 sps:$4 sm:$0xff]   ;;  %v8026_v27 = vld [vmem:[%s9379_s11 + $0x10a0] ss:$16 sps:$4 sm:$0xff]  }
 0x32d   : > { %5118 = vmatprep.subr.bf16.mxu0 %v7974_v28  ;;  %5159 = vmatprep.subr.bf16.mxu1 %v7977_v29  ;;  %v8029_v28 = vld [vmem:[%s9379_s11 + $0x10a8] ss:$16 sps:$4 sm:$0xff]   ;;  %v8034_v29 = vld [vmem:[%s9379_s11 + $0x10c4] ss:$16 sps:$4 sm:$0xff]  }
 0x330   : > { %5119 = vmatpush1.bf16.msra.mxu0 %v7972_v30  ;;  %5160 = vmatpush1.bf16.msra.mxu1 %v7975_v31  ;;  %v8037_v30 = vld [vmem:[%s9379_s11 + $0x10cc] ss:$16 sps:$4 sm:$0xff]  }
 0x331   : > { %5120 = vmatprep.subr.bf16.mxu0 %v7980_v32  ;;  %5161 = vmatprep.subr.bf16.mxu1 %v7983_v33 }
 0x334   : > { %5121 = vmatpush1.bf16.msra.mxu0 %v7978_v34  ;;  %5162 = vmatpush1.bf16.msra.mxu1 %v7981_v35 }
 0x335   : > { %5122 = vmatprep.subr.bf16.mxu0 %v7986_v38  ;;  %5163 = vmatprep.subr.bf16.mxu1 %v7989_v39  ;;  %v8032_v39 = vld [vmem:[%s9379_s11 + $0x10c0] ss:$16 sps:$4 sm:$0xff]  }
 0x338   : > { %5123 = vmatpush1.bf16.msra.mxu0 %v7984_v42  ;;  %5164 = vmatpush1.bf16.msra.mxu1 %v7987_v43  ;;  %v8035_v42 = vld [vmem:[%s9379_s11 + $0x10c8] ss:$16 sps:$4 sm:$0xff]  }
 0x339   : > { %5124 = vmatprep.subr.bf16.mxu0 %v7992_v60  ;;  %5165 = vmatprep.subr.bf16.mxu1 %v7995_v61  ;;  %v8040_v61 = vld [vmem:[%s9379_s11 + $0x10e4] ss:$16 sps:$4 sm:$0xff]  }
 0x33c   : > { %5125 = vmatpush1.bf16.msra.mxu0 %v7990_v62  ;;  %5166 = vmatpush1.bf16.msra.mxu1 %v7993_v63  ;;  %v8043_v62 = vld [vmem:[%s9379_s11 + $0x10ec] ss:$16 sps:$4 sm:$0xff]   ;;  %v8038_v63 = vld [vmem:[%s9379_s11 + $0x10e0] ss:$16 sps:$4 sm:$0xff]  }
 0x33d   : > { %5566 = vmatprep.subr.bf16.mxu0 %v7998_v2  ;;  %5607 = vmatprep.subr.bf16.mxu1 %v8001_v3  ;;  %v8041_v2 = vld [vmem:[%s9379_s11 + $0x10e8] ss:$16 sps:$4 sm:$0xff]   ;;  %v8046_v3 = vld [vmem:[%s9379_s11 + $0x1104] ss:$16 sps:$4 sm:$0xff]  }
 0x33f   : > { %5127 = vmatmul.mubr.bf16.vlgmr.msra.gmra.mrb[28].mxu0 %v9449_v6  ;;  %5168 = vmatmul.mubr.bf16.vlgmr.msra.gmra.mrb[28].mxu1 %v9449_v6 }
 0x340   : > { %5567 = vmatpush1.bf16.msra.mxu0 %v7996_v4  ;;  %5608 = vmatpush1.bf16.msra.mxu1 %v7999_v5  ;;  %v8049_v4 = vld [vmem:[%s9379_s11 + $0x110c] ss:$16 sps:$4 sm:$0xff]   ;;  %v8044_v5 = vld [vmem:[%s9379_s11 + $0x1100] ss:$16 sps:$4 sm:$0xff]  }
 0x341   : > { %5568 = vmatprep.subr.bf16.mxu0 %v8004_v7  ;;  %5609 = vmatprep.subr.bf16.mxu1 %v8007_v8  ;;  %v8047_v7 = vld [vmem:[%s9379_s11 + $0x1108] ss:$16 sps:$4 sm:$0xff]   ;;  %v8052_v8 = vld [vmem:[%s9379_s11 + $0x1124] ss:$16 sps:$4 sm:$0xff]  }
 0x342   : > { %5598 = vmatprep.mubr.bf16.mxu0 %v9375_v1  ;;  %5639 = vmatprep.mubr.bf16.mxu1 %v9375_v1  ;;  %v8022_v1 = vld [vmem:[%s9379_s11 + $0x1084] ss:$16 sps:$4 sm:$0xff]  }
 0x344   : > { %5569 = vmatpush1.bf16.msra.mxu0 %v8002_v9  ;;  %5610 = vmatpush1.bf16.msra.mxu1 %v8005_v10  ;;  %v8055_v9 = vld [vmem:[%s9379_s11 + $0x112c] ss:$16 sps:$4 sm:$0xff]   ;;  %v8050_v10 = vld [vmem:[%s9379_s11 + $0x1120] ss:$16 sps:$4 sm:$0xff]  }
 0x345   : > { %5570 = vmatprep.subr.bf16.mxu0 %v8010_v11  ;;  %5611 = vmatprep.subr.bf16.mxu1 %v8013_v12  ;;  %v8053_v11 = vld [vmem:[%s9379_s11 + $0x1128] ss:$16 sps:$4 sm:$0xff]   ;;  %v8058_v12 = vld [vmem:[%s9379_s11 + $0x1144] ss:$16 sps:$4 sm:$0xff]  }
 0x348   : > { %5571 = vmatpush1.bf16.msra.mxu0 %v8008_v0  ;;  %5612 = vmatpush1.bf16.msra.mxu1 %v8011_v13  ;;  %v8061_v0 = vld [vmem:[%s9379_s11 + $0x114c] ss:$16 sps:$4 sm:$0xff]   ;;  %v8056_v13 = vld [vmem:[%s9379_s11 + $0x1140] ss:$16 sps:$4 sm:$0xff]  }
 0x349   : > { %5572 = vmatprep.subr.bf16.mxu0 %v8016_v18  ;;  %5613 = vmatprep.subr.bf16.mxu1 %v8019_v19  ;;  %v8059_v18 = vld [vmem:[%s9379_s11 + $0x1148] ss:$16 sps:$4 sm:$0xff]   ;;  %v8064_v19 = vld [vmem:[%s9379_s11 + $0x1164] ss:$16 sps:$4 sm:$0xff]  }
 0x34c   : > { %5573 = vmatpush1.bf16.msra.mxu0 %v8014_v20  ;;  %5614 = vmatpush1.bf16.msra.mxu1 %v8017_v21  ;;  %v8067_v20 = vld [vmem:[%s9379_s11 + $0x116c] ss:$16 sps:$4 sm:$0xff]   ;;  %v8062_v21 = vld [vmem:[%s9379_s11 + $0x1160] ss:$16 sps:$4 sm:$0xff]  }
 0x34d   : > { %5574 = vmatprep.subr.bf16.mxu0 %v8022_v1  ;;  %5615 = vmatprep.subr.bf16.mxu1 %v8025_v22  ;;  %v8065_v1 = vld [vmem:[%s9379_s11 + $0x1168] ss:$16 sps:$4 sm:$0xff]   ;;  %v8070_v22 = vld [vmem:[%s9379_s11 + $0x1184] ss:$16 sps:$4 sm:$0xff]  }
 0x350   : > { %5575 = vmatpush1.bf16.msra.mxu0 %v8020_v23  ;;  %5616 = vmatpush1.bf16.msra.mxu1 %v8023_v24  ;;  %v8073_v23 = vld [vmem:[%s9379_s11 + $0x118c] ss:$16 sps:$4 sm:$0xff]   ;;  %v8068_v24 = vld [vmem:[%s9379_s11 + $0x1180] ss:$16 sps:$4 sm:$0xff]  }
 0x351   : > { %5576 = vmatprep.subr.bf16.mxu0 %v8028_v25  ;;  %5617 = vmatprep.subr.bf16.mxu1 %v8031_v26  ;;  %v8071_v25 = vld [vmem:[%s9379_s11 + $0x1188] ss:$16 sps:$4 sm:$0xff]   ;;  %v8076_v26 = vld [vmem:[%s9379_s11 + $0x11a4] ss:$16 sps:$4 sm:$0xff]  }
 0x352   : > { %v10003_v31 = vpop.f32.mrb[16].mxu0  ;;  %v10005_v32 = vpop.f32.mrb[16].mxu1 }
 0x353   : > { %v10007_v33 = vpop.f32.mrb[17].mxu0  ;;  %v10009_v34 = vpop.f32.mrb[17].mxu1 }
 0x354   : > { %v3716_v35 = vpop.f32.mrb[18].mxu0  ;;  %v3757_v38 = vpop.f32.mrb[18].mxu1  ;;  %5577 = vmatpush1.bf16.msra.mxu0 %v8026_v27  ;;  %5618 = vmatpush1.bf16.msra.mxu1 %v8029_v28  ;;  %v8079_v27 = vld [vmem:[%s9379_s11 + $0x11ac] ss:$16 sps:$4 sm:$0xff]   ;;  %v8074_v28 = vld [vmem:[%s9379_s11 + $0x11a0] ss:$16 sps:$4 sm:$0xff]  }
 0x355   : > { %v3717_v43 = vpop.f32.mrb[19].mxu0  ;;  %v3758_v60 = vpop.f32.mrb[19].mxu1  ;;  %5578 = vmatprep.subr.bf16.mxu0 %v8034_v29  ;;  %5619 = vmatprep.subr.bf16.mxu1 %v8037_v30  ;;  %v8077_v29 = vld [vmem:[%s9379_s11 + $0x11a8] ss:$16 sps:$4 sm:$0xff]   ;;  %v8082_v30 = vld [vmem:[%s9379_s11 + $0x11c4] ss:$16 sps:$4 sm:$0xff]  }
 0x356   : > { %v8085_v35 = vld [vmem:[%s9379_s11 + $0x11cc] ss:$16 sps:$4 sm:$0xff]   ;;  %v8080_v38 = vld [vmem:[%s9379_s11 + $0x11c0] ss:$16 sps:$4 sm:$0xff]  }
 0x357   : > { %v8091_v43 = vld [vmem:[%s9379_s11 + $0x11ec] ss:$16 sps:$4 sm:$0xff]   ;;  %v8086_v60 = vld [vmem:[%s9379_s11 + $0x11e0] ss:$16 sps:$4 sm:$0xff]  }
 0x358   : > { %5579 = vmatpush1.bf16.msra.mxu0 %v8032_v39  ;;  %5620 = vmatpush1.bf16.msra.mxu1 %v8035_v42  ;;  %v8083_v39 = vld [vmem:[%s9379_s11 + $0x11c8] ss:$16 sps:$4 sm:$0xff]   ;;  %v8088_v42 = vld [vmem:[%s9379_s11 + $0x11e4] ss:$16 sps:$4 sm:$0xff]  }
 0x359   : > { %5580 = vmatprep.subr.bf16.mxu0 %v8040_v61  ;;  %5621 = vmatprep.subr.bf16.mxu1 %v8043_v62  ;;  %v8089_v61 = vld [vmem:[%s9379_s11 + $0x11e8] ss:$16 sps:$4 sm:$0xff]  }
 0x35c   : > { %5581 = vmatpush1.bf16.msra.mxu0 %v8038_v63  ;;  %5622 = vmatpush1.bf16.msra.mxu1 %v8041_v2 }
 0x35d   : > { %5582 = vmatprep.subr.bf16.mxu0 %v8046_v3  ;;  %5623 = vmatprep.subr.bf16.mxu1 %v8049_v4 }
 0x360   : > { %5583 = vmatpush1.bf16.msra.mxu0 %v8044_v5  ;;  %5624 = vmatpush1.bf16.msra.mxu1 %v8047_v7 }
 0x361   : > { %5584 = vmatprep.subr.bf16.mxu0 %v8052_v8  ;;  %5625 = vmatprep.subr.bf16.mxu1 %v8055_v9 }
 0x364   : > { %5585 = vmatpush1.bf16.msra.mxu0 %v8050_v10  ;;  %5626 = vmatpush1.bf16.msra.mxu1 %v8053_v11 }
 0x365   : > { %5586 = vmatprep.subr.bf16.mxu0 %v8058_v12  ;;  %5627 = vmatprep.subr.bf16.mxu1 %v8061_v0 }
 0x368   : > { %5587 = vmatpush1.bf16.msra.mxu0 %v8056_v13  ;;  %5628 = vmatpush1.bf16.msra.mxu1 %v8059_v18  ;;  %v5689_v13 = vld [vmem:[%s10140_s2] sm:$0xff] }
 0x369   : > { %5588 = vmatprep.subr.bf16.mxu0 %v8064_v19  ;;  %5629 = vmatprep.subr.bf16.mxu1 %v8067_v20 }
 0x36c   : > { %5589 = vmatpush1.bf16.msra.mxu0 %v8062_v21  ;;  %5630 = vmatpush1.bf16.msra.mxu1 %v8065_v1  ;;  %v5690_v1 = vld [vmem:[%s10140_s2 + $0x8] sm:$0xff] }
 0x36d   : > { %5590 = vmatprep.subr.bf16.mxu0 %v8070_v22  ;;  %5631 = vmatprep.subr.bf16.mxu1 %v8073_v23 }
 0x370   : > { %5591 = vmatpush1.bf16.msra.mxu0 %v8068_v24  ;;  %5632 = vmatpush1.bf16.msra.mxu1 %v8071_v25 }
 0x371   : > { %5592 = vmatprep.subr.bf16.mxu0 %v8076_v26  ;;  %5633 = vmatprep.subr.bf16.mxu1 %v8079_v27 }
 0x374   : > { %5593 = vmatpush1.bf16.msra.mxu0 %v8074_v28  ;;  %5634 = vmatpush1.bf16.msra.mxu1 %v8077_v29 }
 0x375   : > { %5594 = vmatprep.subr.bf16.mxu0 %v8082_v30  ;;  %5635 = vmatprep.subr.bf16.mxu1 %v8085_v35 }
 0x378   : > { %5595 = vmatpush1.bf16.msra.mxu0 %v8080_v38  ;;  %5636 = vmatpush1.bf16.msra.mxu1 %v8083_v39 }
 0x379   : > { %5596 = vmatprep.subr.bf16.mxu0 %v8088_v42  ;;  %5637 = vmatprep.subr.bf16.mxu1 %v8091_v43 }
 0x37c   : > { %5597 = vmatpush1.bf16.msra.mxu0 %v8086_v60  ;;  %5638 = vmatpush1.bf16.msra.mxu1 %v8089_v61 }
 0x37d   : > { %7149 = vmatprep.subr.bf16.mxu0 %v7148_v58  ;;  %7165 = vmatprep.subr.bf16.mxu1 %v7164_v59 }
 0x37f   : > { %5599 = vmatmul.mubr.bf16.vlgmr.msra.gmra.mrb[32].mxu0 %v9449_v6  ;;  %5640 = vmatmul.mubr.bf16.vlgmr.msra.gmra.mrb[32].mxu1 %v9449_v6 }
 0x380   : > { %7151 = vmatpush1.bf16.msra.mxu0 %v7150_v54  ;;  %7167 = vmatpush1.bf16.msra.mxu1 %v7166_v55 }
 0x381   : > { %7153 = vmatprep.subr.bf16.mxu0 %v7152_v52  ;;  %7169 = vmatprep.subr.bf16.mxu1 %v7168_v53  ;;  %v8133_v52 = vmov 0   ;;  %v5853_v53 = vld [vmem:[%s10141_s3 + $0x8] sm:$0xff] }
 0x382   : > { %7224 = vset.pattern.permute.xlu0 %v8133_v52  ;;  %7225 = vset.pattern.permute.xlu1 %v8133_v52 }
 0x383   : > { %5856 = vperm.xlu0 %7224, %v5852_v48   ;;  %5877 = vperm.xlu1 %7225, %v7139_v49  }
 0x384   : > { %7155 = vmatpush1.bf16.msra.mxu0 %v7154_v46  ;;  %7171 = vmatpush1.bf16.msra.mxu1 %v7170_v47  ;;  %v8132_v47 = vmov 0.0  }
 0x385   : > { %5762 = vmatprep.mubr.f32.mxu0 %v8132_v47  ;;  %5839 = vmatprep.mubr.f32.mxu1 %v8132_v47 }
 0x387   : > { %5861 = vperm.xlu0 %7224, %v5853_v53  }
 0x392   : > { %v4184_v6 = vpop.f32.mrb[20].mxu0  ;;  %v4225_v36 = vpop.f32.mrb[20].mxu1 }
 0x393   : > { %v7158_v37 = vpack.c.bf16 %v4184_v6, %v10003_v31  ;;  %v7174_v40 = vpack.c.bf16 %v4225_v36, %v10005_v32  ;;  %v4186_v41 = vpop.f32.mrb[21].mxu0  ;;  %v4227_v50 = vpop.f32.mrb[21].mxu1  ;;  %v7140_v31 = vld [vmem:[%s10141_s3 + $0x18] sm:$0xff] }
 0x394   : > { %v7156_v51 = vpack.c.bf16 %v4186_v41, %v10007_v33  ;;  %v7172_v54 = vpack.c.bf16 %v4227_v50, %v10009_v34  ;;  %v4188_v55 = vpop.f32.mrb[22].mxu0  ;;  %v4229_v56 = vpop.f32.mrb[22].mxu1  ;;  %5882 = vperm.xlu1 %7225, %v7140_v31  }
 0x395   : > { %v4189_v57 = vpop.f32.mrb[23].mxu0  ;;  %v4230_v58 = vpop.f32.mrb[23].mxu1 }
 0x396   : > { %7157 = vmatprep.subr.bf16.mxu0 %v7156_v51  ;;  %7173 = vmatprep.subr.bf16.mxu1 %v7172_v54 }
 0x397   : > { %7159 = vmatpush1.bf16.msra.mxu0 %v7158_v37  ;;  %7175 = vmatpush1.bf16.msra.mxu1 %v7174_v40 }
 0x3d2   : > { %v4656_v59 = vpop.f32.mrb[24].mxu0  ;;  %v4697_v14 = vpop.f32.mrb[24].mxu1 }
 0x3d3   : > { %v4658_v15 = vpop.f32.mrb[25].mxu0  ;;  %v4699_v16 = vpop.f32.mrb[25].mxu1 }
 0x3d4   : > { %v4660_v17 = vpop.f32.mrb[26].mxu0  ;;  %v4701_v44 = vpop.f32.mrb[26].mxu1 }
 0x3d5   : > { %v4661_v45 = vpop.f32.mrb[27].mxu0  ;;  %v4702_v46 = vpop.f32.mrb[27].mxu1 }
 0x402   : > { %v5857_v22 = vpop.permute.xlu0 %5856  ;;  %v5878_v23 = vpop.permute.xlu1 %5877 }
 0x406   : > { %v5862_v42 = vpop.permute.xlu0 %5861 }
 0x412   : > { %v5128_v32 = vpop.f32.mrb[28].mxu0  ;;  %v5169_v33 = vpop.f32.mrb[28].mxu1 }
 0x413   : > { %v7162_v34 = vpack.c.bf16 %v5128_v32, %v4656_v59  ;;  %v7178_v62 = vpack.c.bf16 %v5169_v33, %v4697_v14  ;;  %v5130_v63 = vpop.f32.mrb[29].mxu0  ;;  %v5171_v2 = vpop.f32.mrb[29].mxu1 }
 0x414   : > { %v7160_v3 = vpack.c.bf16 %v5130_v63, %v4658_v15  ;;  %v7176_v4 = vpack.c.bf16 %v5171_v2, %v4699_v16  ;;  %v5132_v5 = vpop.f32.mrb[30].mxu0  ;;  %v5173_v7 = vpop.f32.mrb[30].mxu1 }
 0x415   : > { %v5133_v8 = vpop.f32.mrb[31].mxu0  ;;  %v5174_v9 = vpop.f32.mrb[31].mxu1 }
 0x416   : > { %7161 = vmatprep.subr.bf16.mxu0 %v7160_v3  ;;  %7177 = vmatprep.subr.bf16.mxu1 %v7176_v4  ;;  %v5883_v56 = vpop.permute.xlu1 %5882 }
 0x417   : > { %7163 = vmatpush1.bf16.msra.mxu0 %v7162_v34  ;;  %7179 = vmatpush1.bf16.msra.mxu1 %v7178_v62 }
 0x452   : > { %v5600_v10 = vpop.f32.mrb[32].mxu0  ;;  %v5641_v11 = vpop.f32.mrb[32].mxu1 }
 0x453   : > { %v5602_v12 = vpop.f32.mrb[33].mxu0  ;;  %v5643_v0 = vpop.f32.mrb[33].mxu1 }
 0x454   : > { %v5604_v18 = vpop.f32.mrb[34].mxu0  ;;  %v5645_v19 = vpop.f32.mrb[34].mxu1  ;;  %5714 = vmatprep.subr.mxu0 %v5602_v12  ;;  %5791 = vmatprep.subr.mxu1 %v5643_v0 }
 0x455   : > { %v5605_v20 = vpop.f32.mrb[35].mxu0  ;;  %v5646_v21 = vpop.f32.mrb[35].mxu1  ;;  %5715 = vmatpush1.msra.mxu0 %v5600_v10  ;;  %5792 = vmatpush1.msra.mxu1 %v5641_v11 }
 0x456   : > { %7135 = vmatmul.mubr.msk.f32.vlgmr.msra.gmra.mrb[36].mxu0 %vm5691_vm0, %v5689_v13  ;;  %7137 = vmatmul.mubr.msk.f32.vlgmr.msra.gmra.mrb[36].mxu1 %vm5691_vm0, %v5689_v13 }
 0x457   : > { %5768 = vmatprep.mubr.f32.mxu0 %v8132_v47  ;;  %5845 = vmatprep.mubr.f32.mxu1 %v8132_v47 }
 0x45a   : > { %7136 = vmatmul.mubr.msk.f32.gmra.mrb[38].mxu0 %vm5691_vm0, %v5690_v1  ;;  %7138 = vmatmul.mubr.msk.f32.gmra.mrb[38].mxu1 %vm5691_vm0, %v5690_v1 }
 0x529   : > { %v5764_v24 = vpop.f32.mrb[36].mxu0  ;;  %v5841_v25 = vpop.f32.mrb[36].mxu1 }
 0x52a   : > { %v5864_v26 = vmul.f32 %v5857_v22, %v5764_v24  ;;  %v5866_v27 = vmul.f32 %v5857_v22, %v5841_v25  ;;  %v5766_v28 = vpop.f32.mrb[37].mxu0  ;;  %v5843_v29 = vpop.f32.mrb[37].mxu1 }
 0x52b   : > { %v5865_v30 = vmul.f32 %v5857_v22, %v5766_v28  ;;  %v5867_v35 = vmul.f32 %v5857_v22, %v5843_v29 }
 0x52c   : > { %v5885_v38 = vadd.f32 %v5878_v23, %v5864_v26  ;;  %v5887_v39 = vadd.f32 %v5878_v23, %v5866_v27 }
 0x52d   : > { %v5886_v43 = vadd.f32 %v5878_v23, %v5865_v30  ;;  %v5888_v60 = vadd.f32 %v5878_v23, %v5867_v35  ;;  %v5770_v61 = vpop.f32.mrb[38].mxu0  ;;  %v5847_v6 = vpop.f32.mrb[38].mxu1 }
 0x52e   : > { %v5893_v36 = vmax.f32 %v5885_v38, 0.0  ;;  %v5895_v37 = vmax.f32 %v5887_v39, 0.0  ;;  %v5868_v40 = vmul.f32 %v5862_v42, %v5770_v61  ;;  %v5870_v41 = vmul.f32 %v5862_v42, %v5847_v6  ;;  %v5772_v50 = vpop.f32.mrb[39].mxu0  ;;  %v5849_v51 = vpop.f32.mrb[39].mxu1 }
 0x52f   : > { %v5894_v54 = vmax.f32 %v5886_v43, 0.0  ;;  %v5896_v55 = vmax.f32 %v5888_v60, 0.0  ;;  %v5869_v57 = vmul.f32 %v5862_v42, %v5772_v50  ;;  %v5871_v58 = vmul.f32 %v5862_v42, %v5849_v51  ;;  %5915 = sbr.rel (!%p8194_p6) target bundleno = 1342 (0x53e), region = 63 }
 0x530   : > { %5901 = vst [vmem:[%s10099_s15] sm:$0xff] %v5893_v36  ;;  %5903 = vst [vmem:[%s10099_s15 + $0x10] sm:$0xff] %v5895_v37  ;;  %v5889_v59 = vadd.f32 %v5883_v56, %v5868_v40  ;;  %v5891_v14 = vadd.f32 %v5883_v56, %v5870_v41 }
 0x531   : > { %5902 = vst [vmem:[%s10099_s15 + $0x8] sm:$0xff] %v5894_v54  ;;  %5904 = vst [vmem:[%s10099_s15 + $0x18] sm:$0xff] %v5896_v55  ;;  %v5890_v15 = vadd.f32 %v5883_v56, %v5869_v57  ;;  %v5892_v16 = vadd.f32 %v5883_v56, %v5871_v58 }
 0x532   : > { %v5897_v17 = vmax.f32 %v5889_v59, 0.0  ;;  %v5899_v44 = vmax.f32 %v5891_v14, 0.0 }
 0x533   : > { %v5898_v45 = vmax.f32 %v5890_v15, 0.0  ;;  %v5900_v46 = vmax.f32 %v5892_v16, 0.0 }
 0x534   : > { %5905 = vst [vmem:[%s10099_s15 + $0x20] sm:$0xff] %v5897_v17  ;;  %5907 = vst [vmem:[%s10099_s15 + $0x30] sm:$0xff] %v5899_v44 }
 0x535   : > { %5906 = vst [vmem:[%s10099_s15 + $0x28] sm:$0xff] %v5898_v45  ;;  %5908 = vst [vmem:[%s10099_s15 + $0x38] sm:$0xff] %v5900_v46 }
 0x537   : > { %v5934_v47 = vld [vmem:[%s10099_s15] sm:$0xff]  ;;  %v5938_v49 = vld [vmem:[%s10099_s15 + $0x10] sm:$0xff] }
 0x538   : > { %v5936_v48 = vld [vmem:[%s10099_s15 + $0x8] sm:$0xff]  ;;  %v5940_v52 = vld [vmem:[%s10099_s15 + $0x18] sm:$0xff]  ;;  %5935 = vst [vmem:[%s5921_s10] sm:$0xff] %v5934_v47  ;;  %5939 = vst [vmem:[%s5921_s10 + $0x10] sm:$0xff] %v5938_v49 }
 0x539   : > { %5937 = vst [vmem:[%s5921_s10 + $0x8] sm:$0xff] %v5936_v48  ;;  %5941 = vst [vmem:[%s5921_s10 + $0x18] sm:$0xff] %v5940_v52 }
 0x53b   : > { %v5942_v53 = vld [vmem:[%s10099_s15 + $0x20] sm:$0xff]  ;;  %v5946_v32 = vld [vmem:[%s10099_s15 + $0x30] sm:$0xff] }
 0x53c   : > { %v5944_v31 = vld [vmem:[%s10099_s15 + $0x28] sm:$0xff]  ;;  %5943 = vst [vmem:[%s5921_s10 + $0x40] sm:$0xff] %v5942_v53  ;;  %v5948_v33 = vld [vmem:[%s10099_s15 + $0x38] sm:$0xff]  ;;  %5947 = vst [vmem:[%s5921_s10 + $0x50] sm:$0xff] %v5946_v32 }
 0x53d   : > { %5945 = vst [vmem:[%s5921_s10 + $0x48] sm:$0xff] %v5944_v31  ;;  %5949 = vst [vmem:[%s5921_s10 + $0x58] sm:$0xff] %v5948_v33 }
 0x53e PF: > { %s14_s19 = sadd.s32 1, %s8130_s19   ;;  %s10144_s15 = smov %s8118_s16 }
 0x53f   : > { %p11_p11 = scmp.ge.s32.totalorder %s14_s19, 4   ;;  %s10145_s16 = smov %s8199_s25 }
 0x540   : > { %s10146_s17 = smov %s8126_s18  ;;  %s10147_s18 = smov %s10149_s20 }
 0x541   :  { %13 = sbr.rel (!%p11_p11) target bundleno = 3 (0x3), region = 137 }

</bundles_post_ra>
